<compile_context>
chip_gen: v7x
topology: tpu7x:2x2x1
jax: 0.10.0
libtpu: 0.0.40
codegen_flags: <defaults>
</compile_context>

<pallas_src>
import functools
import math

import jax
import jax.numpy as jnp
from jax import lax
from jax.experimental import pallas as pl
from jax.experimental.pallas import tpu as pltpu


# ----------------------------------------------------------------------------
# Fused Pallas kernel: one batch element per grid step, everything in VMEM.
# Data layout inside the kernel: (channels, H*W) with the flattened spatial
# dimension on the lane axis (lane-dense).
# ----------------------------------------------------------------------------
def _decoder_fused_kernel(x_ref, w1_ref, bn1s_ref, bn1h_ref,
                          w2_ref, bn2s_ref, bn2h_ref,
                          fc1_ref, fc2_ref, up_ref, m1_ref, m2_ref,
                          o_ref, *, H, W):
    f32 = jnp.float32
    Wu = 2 * W
    np1 = H * W
    np2 = 4 * H * W
    Cout = fc2_ref.shape[0]
    Cred = fc2_ref.shape[1]

    taps = [(dh, dw) for dh in (-1, 0, 1) for dw in (-1, 0, 1)]

    def conv3x3(inp, w_ref, masks_ref, width, n_pix):
        # 3x3 / pad 1 conv as 9 per-tap MXU matmuls accumulated in registers.
        # Tap (dh, dw): shifted plane p -> p + dh*width + dw, built with an
        # XLU roll + a precomputed {0,1} border-validity mask.
        acc = None
        for t, (dh, dw) in enumerate(taps):
            s = dh * width + dw
            if s == 0:
                xt = inp                                     # centre tap, no shift
            else:
                xt = pltpu.roll(inp, shift=(-s) % n_pix, axis=1)
                xt = xt * masks_ref[t:t + 1, :]              # zero invalid sources
            part = jnp.dot(w_ref[t], xt, preferred_element_type=f32)
            acc = part if acc is None else acc + part
        return acc

    # --- conv1 (3x3, pad 1) + folded BN1 + SiLU --------------- (Cout, H*W)
    x = x_ref[0]                                             # (Cin, H*W)
    y = conv3x3(x, w1_ref, m1_ref, W, np1)
    y = y * bn1s_ref[...] + bn1h_ref[...]
    y = y * jax.nn.sigmoid(y)                                # SiLU

    # --- bilinear 2x upsample (align_corners=False) as ONE MXU matmul -------
    # up_ref = kron(U_H, U_W).T, shape (H*W, 4*H*W).  yu is also the skip.
    yu = jnp.dot(y, up_ref[...], preferred_element_type=f32)  # (Cout, 4*H*W)

    # --- conv2 (3x3, pad 1) + folded BN2 (no activation) --------------------
    z = conv3x3(yu, w2_ref, m2_ref, Wu, np2)
    z = z * bn2s_ref[...] + bn2h_ref[...]

    # --- SE: global average pool -> fc1 -> ELU -> fc2 -> sigmoid ------------
    s_pool = jnp.mean(z, axis=1, keepdims=True)              # (Cout, 1)
    # tiny FCs as unrolled VPU MACs (no degenerate N=1 MXU matmuls)
    h = fc1_ref[:, 0:1] * s_pool[0:1, :]
    for j in range(1, Cout):
        h = h + fc1_ref[:, j:j + 1] * s_pool[j:j + 1, :]     # (Cred, 1)
    h = jnp.where(h > 0.0, h, jnp.exp(h) - 1.0)              # ELU(alpha=1)
    g = fc2_ref[:, 0:1] * h[0:1, :]
    for r in range(1, Cred):
        g = g + fc2_ref[:, r:r + 1] * h[r:r + 1, :]          # (Cout, 1)
    g = jax.nn.sigmoid(g)

    # --- gate, residual add with the in-register skip, final SiLU -----------
    out = z * g + yu
    o_ref[0] = out * jax.nn.sigmoid(out)                     # lane-dense store


# ----------------------------------------------------------------------------
# Per-generation scoped-VMEM limit (review item).
# ----------------------------------------------------------------------------
def _vmem_limit_bytes():
    try:
        cap = getattr(pltpu.get_tpu_info(), "vmem_capacity_bytes", None)
    except Exception:
        cap = None
    if not cap:
        return 48 * 1024 * 1024          # conservative fallback (fits v7x too)
    return int(min(cap * 3 // 4, 100 * 1024 * 1024))


# ----------------------------------------------------------------------------
# Public wrapper (NCHW in / NCHW out, like the PyTorch module).
# Only metadata reshapes around the kernel -- no HBM transposes.
# ----------------------------------------------------------------------------
def decoder_con_forward(x_nchw, params):
    B, Cin, H, W = x_nchw.shape
    Cout, Cred = params['fc2_w'].shape
    np1, np2 = H * W, 4 * H * W
    f32 = jnp.float32

    x_flat = x_nchw.reshape(B, Cin, np1)        # pure metadata reshape (NCHW)

    kernel = functools.partial(_decoder_fused_kernel, H=H, W=W)

    out_flat = pl.pallas_call(
        kernel,
        out_shape=jax.ShapeDtypeStruct((B, Cout, np2), f32),
        grid=(B,),
        in_specs=[
            pl.BlockSpec((1, Cin, np1), lambda b: (b, 0, 0)),     # x (lane-dense)
            pl.BlockSpec((9, Cout, Cin), lambda b: (0, 0, 0)),    # conv1 tap weights
            pl.BlockSpec((Cout, 1), lambda b: (0, 0)),            # bn1 scale
            pl.BlockSpec((Cout, 1), lambda b: (0, 0)),            # bn1 shift
            pl.BlockSpec((9, Cout, Cout), lambda b: (0, 0, 0)),   # conv2 tap weights
            pl.BlockSpec((Cout, 1), lambda b: (0, 0)),            # bn2 scale
            pl.BlockSpec((Cout, 1), lambda b: (0, 0)),            # bn2 shift
            pl.BlockSpec((Cred, Cout), lambda b: (0, 0)),         # SE fc1 (PyTorch layout)
            pl.BlockSpec((Cout, Cred), lambda b: (0, 0)),         # SE fc2
            pl.BlockSpec((np1, np2), lambda b: (0, 0)),           # upsample kron op
            pl.BlockSpec((9, np1), lambda b: (0, 0)),             # conv1 tap masks
            pl.BlockSpec((9, np2), lambda b: (0, 0)),             # conv2 tap masks
        ],
        out_specs=pl.BlockSpec((1, Cout, np2), lambda b: (b, 0, 0)),
        compiler_params=pltpu.CompilerParams(
            dimension_semantics=("parallel",),
            vmem_limit_bytes=_vmem_limit_bytes()),
    )(x_flat, params['w1_k'], params['bn1_scale'], params['bn1_shift'],
      params['w2_k'], params['bn2_scale'], params['bn2_shift'],
      params['fc1_w'], params['fc2_w'], params['up_t'],
      params['mask1'], params['mask2'])

    return out_flat.reshape(B, Cout, 2 * H, 2 * W)   # metadata reshape, NCHW


# ----------------------------------------------------------------------------
# Host-side constant operators for the fused kernel.
# ----------------------------------------------------------------------------
def _upsample_matrix(n):
    # PyTorch nn.Upsample(scale_factor=2, mode='bilinear', align_corners=False)
    out = 2 * n
    src = jnp.maximum((jnp.arange(out, dtype=jnp.float32) + 0.5) / 2.0 - 0.5, 0.0)
    i0 = jnp.floor(src).astype(jnp.int32)
    lam = src - i0.astype(jnp.float32)
    i1 = jnp.minimum(i0 + 1, n - 1)
    return (jax.nn.one_hot(i0, n, dtype=jnp.float32) * (1.0 - lam)[:, None]
            + jax.nn.one_hot(i1, n, dtype=jnp.float32) * lam[:, None])   # (2n, n)


def _tap_masks(h, w):
    # mask[t, p] = 1 iff source pixel of tap t at flat position p is in-bounds
    hh = jnp.arange(h)
    ww = jnp.arange(w)
    rows = []
    for dh in (-1, 0, 1):
        hv = ((hh + dh >= 0) & (hh + dh < h)).astype(jnp.float32)
        for dw in (-1, 0, 1):
            wv = ((ww + dw >= 0) & (ww + dw < w)).astype(jnp.float32)
            rows.append((hv[:, None] * wv[None, :]).reshape(-1))
    return jnp.stack(rows, axis=0)                                       # (9, h*w)


# ----------------------------------------------------------------------------
# Deterministic parameter initialization (synthetic, eval-mode BN folded).
# ----------------------------------------------------------------------------
def init_params(key, cin, cout, h, w):
    ks = jax.random.split(key, 12)
    eps = 1e-5

    def bn_fold(kg, kb, km, kv, c):
        gamma = 1.0 + 0.1 * jax.random.normal(kg, (c,), jnp.float32)
        beta = 0.1 * jax.random.normal(kb, (c,), jnp.float32)
        mean = 0.1 * jax.random.normal(km, (c,), jnp.float32)
        var = jax.random.uniform(kv, (c,), jnp.float32, 0.5, 1.5)
        scale = gamma / jnp.sqrt(var + eps)
        shift = beta - mean * scale
        return scale[:, None], shift[:, None]          # (c, 1) column vectors

    w1 = jax.random.normal(ks[0], (3, 3, cin, cout), jnp.float32) / math.sqrt(9 * cin)
    w2 = jax.random.normal(ks[1], (3, 3, cout, cout), jnp.float32) / math.sqrt(9 * cout)
    bn1_scale, bn1_shift = bn_fold(ks[2], ks[3], ks[4], ks[5], cout)
    bn2_scale, bn2_shift = bn_fold(ks[6], ks[7], ks[8], ks[9], cout)
    cr = cout // 2
    fc1_w = jax.random.normal(ks[10], (cr, cout), jnp.float32) / math.sqrt(cout)
    fc2_w = jax.random.normal(ks[11], (cout, cr), jnp.float32) / math.sqrt(cr)

    return dict(
        # reference-side weights (HWIO for lax.conv)
        w1_hwio=w1, w2_hwio=w2,
        # kernel-side per-tap weights: (9, Cout, Cin) / (9, Cout, Cout)
        w1_k=jnp.transpose(w1, (0, 1, 3, 2)).reshape(9, cout, cin),
        w2_k=jnp.transpose(w2, (0, 1, 3, 2)).reshape(9, cout, cout),
        bn1_scale=bn1_scale, bn1_shift=bn1_shift,
        bn2_scale=bn2_scale, bn2_shift=bn2_shift,
        fc1_w=fc1_w, fc2_w=fc2_w,
        # constant operators
        up_t=jnp.kron(_upsample_matrix(h), _upsample_matrix(w)).T,  # (h*w, 4*h*w)
        mask1=_tap_masks(h, w),
        mask2=_tap_masks(2 * h, 2 * w),
    )


# ----------------------------------------------------------------------------
# Pure-JAX reference (same math, XLA conv) for the correctness check.
# ----------------------------------------------------------------------------
def bilinear_upsample_2x(x):  # NHWC
    B, H, W, C = x.shape
    mh = _upsample_matrix(H)
    mw = _upsample_matrix(W)
    x = jnp.einsum('oh,bhwc->bowc', mh, x, precision='highest')
    x = jnp.einsum('pw,bowc->bopc', mw, x, precision='highest')
    return x


def reference_forward(x_nchw, params):
    x = jnp.transpose(x_nchw, (0, 2, 3, 1))   # NHWC (reference only)

    def conv3x3(a, w):
        return lax.conv_general_dilated(
            a, w, (1, 1), ((1, 1), (1, 1)),
            dimension_numbers=('NHWC', 'HWIO', 'NHWC'),
            precision=lax.Precision.HIGHEST)

    y = conv3x3(x, params['w1_hwio'])
    y = y * params['bn1_scale'][:, 0] + params['bn1_shift'][:, 0]
    y = y * jax.nn.sigmoid(y)
    y = bilinear_upsample_2x(y)
    skip = y
    z = conv3x3(y, params['w2_hwio'])
    z = z * params['bn2_scale'][:, 0] + params['bn2_shift'][:, 0]
    s = jnp.mean(z, axis=(1, 2))                      # (B, Cout)
    h = s @ params['fc1_w'].T
    h = jnp.where(h > 0, h, jnp.exp(h) - 1.0)         # ELU
    g = jax.nn.sigmoid(h @ params['fc2_w'].T)
    z = z * g[:, None, None, :]
    out = z + skip
    out = out * jax.nn.sigmoid(out)
    return jnp.transpose(out, (0, 3, 1, 2))           # back to NCHW


if __name__ == "__main__":
    key = jax.random.PRNGKey(0)
    kx, kp = jax.random.split(key)
    B, Cin, Cout, H, W = 2, 4, 8, 16, 16
    x = jax.random.normal(kx, (B, Cin, H, W), jnp.float32)   # NCHW, like PyTorch
    params = init_params(kp, Cin, Cout, H, W)

    out = jax.jit(decoder_con_forward)(x, params)
    out = jax.block_until_ready(out)

    ref = reference_forward(x, params)
    assert out.shape == (B, Cout, 2 * H, 2 * W), out.shape
    max_err = float(jnp.max(jnp.abs(out - ref)))
    assert jnp.allclose(out, ref, rtol=2e-3, atol=2e-3), max_err
    print("KERNEL_OK")
</pallas_src>

<mosaic_0001>
module attributes {stable_mosaic.version = 11 : i64} {
  func.func @_decoder_fused_kernel(%arg0: i32, %arg1: memref<1x4x256xf32, #tpu.memory_space<vmem>>, %arg2: memref<9x8x4xf32, #tpu.memory_space<vmem>>, %arg3: memref<8x1xf32, #tpu.memory_space<vmem>>, %arg4: memref<8x1xf32, #tpu.memory_space<vmem>>, %arg5: memref<9x8x8xf32, #tpu.memory_space<vmem>>, %arg6: memref<8x1xf32, #tpu.memory_space<vmem>>, %arg7: memref<8x1xf32, #tpu.memory_space<vmem>>, %arg8: memref<4x8xf32, #tpu.memory_space<vmem>>, %arg9: memref<8x4xf32, #tpu.memory_space<vmem>>, %arg10: memref<256x1024xf32, #tpu.memory_space<vmem>>, %arg11: memref<9x256xf32, #tpu.memory_space<vmem>>, %arg12: memref<9x1024xf32, #tpu.memory_space<vmem>>, %arg13: memref<1x8x1024xf32, #tpu.memory_space<vmem>>) attributes {dimension_semantics = [#tpu.dimension_semantics<parallel>], iteration_bounds = array<i64: 2>, scalar_prefetch = 0 : i64, scratch_operands = 0 : i64, tpu.core_type = #tpu.core_type<tc>, window_params = [{transform_indices = @transform_0, window_bounds = array<i64: 1, 4, 256>}, {pipeline_mode = #tpu.pipeline_mode<synchronous>, transform_indices = @transform_1, window_bounds = array<i64: 9, 8, 4>}, {pipeline_mode = #tpu.pipeline_mode<synchronous>, transform_indices = @transform_2, window_bounds = array<i64: 8, 1>}, {pipeline_mode = #tpu.pipeline_mode<synchronous>, transform_indices = @transform_3, window_bounds = array<i64: 8, 1>}, {pipeline_mode = #tpu.pipeline_mode<synchronous>, transform_indices = @transform_4, window_bounds = array<i64: 9, 8, 8>}, {pipeline_mode = #tpu.pipeline_mode<synchronous>, transform_indices = @transform_5, window_bounds = array<i64: 8, 1>}, {pipeline_mode = #tpu.pipeline_mode<synchronous>, transform_indices = @transform_6, window_bounds = array<i64: 8, 1>}, {pipeline_mode = #tpu.pipeline_mode<synchronous>, transform_indices = @transform_7, window_bounds = array<i64: 4, 8>}, {pipeline_mode = #tpu.pipeline_mode<synchronous>, transform_indices = @transform_8, window_bounds = array<i64: 8, 4>}, {pipeline_mode = #tpu.pipeline_mode<synchronous>, transform_indices = @transform_9, window_bounds = array<i64: 256, 1024>}, {pipeline_mode = #tpu.pipeline_mode<synchronous>, transform_indices = @transform_10, window_bounds = array<i64: 9, 256>}, {pipeline_mode = #tpu.pipeline_mode<synchronous>, transform_indices = @transform_11, window_bounds = array<i64: 9, 1024>}, {transform_indices = @transform_12, window_bounds = array<i64: 1, 8, 1024>}]} {
    %c0 = arith.constant 0 : index
    %c0_0 = arith.constant 0 : index
    %c0_1 = arith.constant 0 : index
    %0 = vector.load %arg1[%c0, %c0_0, %c0_1] : memref<1x4x256xf32, #tpu.memory_space<vmem>>, vector<1x4x256xf32>
    %1 = vector.shape_cast %0 : vector<1x4x256xf32> to vector<4x256xf32>
    %c17_i32 = arith.constant 17 : i32
    %2 = tpu.dynamic_rotate %1 by %c17_i32 dim 1 : vector<4x256xf32>, i32 -> vector<4x256xf32>
    %c0_2 = arith.constant 0 : index
    %c0_3 = arith.constant 0 : index
    %3 = vector.load %arg11[%c0_2, %c0_3] : memref<9x256xf32, #tpu.memory_space<vmem>>, vector<1x256xf32>
    %4 = vector.broadcast %3 : vector<1x256xf32> to vector<4x256xf32>
    %5 = arith.mulf %2, %4 : vector<4x256xf32>
    %c0_4 = arith.constant 0 : index
    %c0_5 = arith.constant 0 : index
    %c0_6 = arith.constant 0 : index
    %6 = vector.load %arg2[%c0_4, %c0_5, %c0_6] : memref<9x8x4xf32, #tpu.memory_space<vmem>>, vector<1x8x4xf32>
    %7 = vector.shape_cast %6 : vector<1x8x4xf32> to vector<8x4xf32>
    %cst = arith.constant dense<0.000000e+00> : vector<8x256xf32>
    %8 = tpu.matmul %7, %5, %cst {dimension_numbers = #tpu.dot_dimension_numbers<[1], [0], [0], [1], [0, 0, 1, 1], [], []>} : vector<8x4xf32>, vector<4x256xf32>, vector<8x256xf32> -> vector<8x256xf32>
    %c16_i32 = arith.constant 16 : i32
    %9 = tpu.dynamic_rotate %1 by %c16_i32 dim 1 : vector<4x256xf32>, i32 -> vector<4x256xf32>
    %c1 = arith.constant 1 : index
    %c0_7 = arith.constant 0 : index
    %10 = vector.load %arg11[%c1, %c0_7] : memref<9x256xf32, #tpu.memory_space<vmem>>, vector<1x256xf32>
    %11 = vector.broadcast %10 : vector<1x256xf32> to vector<4x256xf32>
    %12 = arith.mulf %9, %11 : vector<4x256xf32>
    %c1_8 = arith.constant 1 : index
    %c0_9 = arith.constant 0 : index
    %c0_10 = arith.constant 0 : index
    %13 = vector.load %arg2[%c1_8, %c0_9, %c0_10] : memref<9x8x4xf32, #tpu.memory_space<vmem>>, vector<1x8x4xf32>
    %14 = vector.shape_cast %13 : vector<1x8x4xf32> to vector<8x4xf32>
    %cst_11 = arith.constant dense<0.000000e+00> : vector<8x256xf32>
    %15 = tpu.matmul %14, %12, %cst_11 {dimension_numbers = #tpu.dot_dimension_numbers<[1], [0], [0], [1], [0, 0, 1, 1], [], []>} : vector<8x4xf32>, vector<4x256xf32>, vector<8x256xf32> -> vector<8x256xf32>
    %16 = arith.addf %8, %15 : vector<8x256xf32>
    %c15_i32 = arith.constant 15 : i32
    %17 = tpu.dynamic_rotate %1 by %c15_i32 dim 1 : vector<4x256xf32>, i32 -> vector<4x256xf32>
    %c2 = arith.constant 2 : index
    %c0_12 = arith.constant 0 : index
    %18 = vector.load %arg11[%c2, %c0_12] : memref<9x256xf32, #tpu.memory_space<vmem>>, vector<1x256xf32>
    %19 = vector.broadcast %18 : vector<1x256xf32> to vector<4x256xf32>
    %20 = arith.mulf %17, %19 : vector<4x256xf32>
    %c2_13 = arith.constant 2 : index
    %c0_14 = arith.constant 0 : index
    %c0_15 = arith.constant 0 : index
    %21 = vector.load %arg2[%c2_13, %c0_14, %c0_15] : memref<9x8x4xf32, #tpu.memory_space<vmem>>, vector<1x8x4xf32>
    %22 = vector.shape_cast %21 : vector<1x8x4xf32> to vector<8x4xf32>
    %cst_16 = arith.constant dense<0.000000e+00> : vector<8x256xf32>
    %23 = tpu.matmul %22, %20, %cst_16 {dimension_numbers = #tpu.dot_dimension_numbers<[1], [0], [0], [1], [0, 0, 1, 1], [], []>} : vector<8x4xf32>, vector<4x256xf32>, vector<8x256xf32> -> vector<8x256xf32>
    %24 = arith.addf %16, %23 : vector<8x256xf32>
    %c1_i32 = arith.constant 1 : i32
    %25 = tpu.dynamic_rotate %1 by %c1_i32 dim 1 : vector<4x256xf32>, i32 -> vector<4x256xf32>
    %c3 = arith.constant 3 : index
    %c0_17 = arith.constant 0 : index
    %26 = vector.load %arg11[%c3, %c0_17] : memref<9x256xf32, #tpu.memory_space<vmem>>, vector<1x256xf32>
    %27 = vector.broadcast %26 : vector<1x256xf32> to vector<4x256xf32>
    %28 = arith.mulf %25, %27 : vector<4x256xf32>
    %c3_18 = arith.constant 3 : index
    %c0_19 = arith.constant 0 : index
    %c0_20 = arith.constant 0 : index
    %29 = vector.load %arg2[%c3_18, %c0_19, %c0_20] : memref<9x8x4xf32, #tpu.memory_space<vmem>>, vector<1x8x4xf32>
    %30 = vector.shape_cast %29 : vector<1x8x4xf32> to vector<8x4xf32>
    %cst_21 = arith.constant dense<0.000000e+00> : vector<8x256xf32>
    %31 = tpu.matmul %30, %28, %cst_21 {dimension_numbers = #tpu.dot_dimension_numbers<[1], [0], [0], [1], [0, 0, 1, 1], [], []>} : vector<8x4xf32>, vector<4x256xf32>, vector<8x256xf32> -> vector<8x256xf32>
    %32 = arith.addf %24, %31 : vector<8x256xf32>
    %c4 = arith.constant 4 : index
    %c0_22 = arith.constant 0 : index
    %c0_23 = arith.constant 0 : index
    %33 = vector.load %arg2[%c4, %c0_22, %c0_23] : memref<9x8x4xf32, #tpu.memory_space<vmem>>, vector<1x8x4xf32>
    %34 = vector.shape_cast %33 : vector<1x8x4xf32> to vector<8x4xf32>
    %cst_24 = arith.constant dense<0.000000e+00> : vector<8x256xf32>
    %35 = tpu.matmul %34, %1, %cst_24 {dimension_numbers = #tpu.dot_dimension_numbers<[1], [0], [0], [1], [0, 0, 1, 1], [], []>} : vector<8x4xf32>, vector<4x256xf32>, vector<8x256xf32> -> vector<8x256xf32>
    %36 = arith.addf %32, %35 : vector<8x256xf32>
    %c255_i32 = arith.constant 255 : i32
    %37 = tpu.dynamic_rotate %1 by %c255_i32 dim 1 : vector<4x256xf32>, i32 -> vector<4x256xf32>
    %c5 = arith.constant 5 : index
    %c0_25 = arith.constant 0 : index
    %38 = vector.load %arg11[%c5, %c0_25] : memref<9x256xf32, #tpu.memory_space<vmem>>, vector<1x256xf32>
    %39 = vector.broadcast %38 : vector<1x256xf32> to vector<4x256xf32>
    %40 = arith.mulf %37, %39 : vector<4x256xf32>
    %c5_26 = arith.constant 5 : index
    %c0_27 = arith.constant 0 : index
    %c0_28 = arith.constant 0 : index
    %41 = vector.load %arg2[%c5_26, %c0_27, %c0_28] : memref<9x8x4xf32, #tpu.memory_space<vmem>>, vector<1x8x4xf32>
    %42 = vector.shape_cast %41 : vector<1x8x4xf32> to vector<8x4xf32>
    %cst_29 = arith.constant dense<0.000000e+00> : vector<8x256xf32>
    %43 = tpu.matmul %42, %40, %cst_29 {dimension_numbers = #tpu.dot_dimension_numbers<[1], [0], [0], [1], [0, 0, 1, 1], [], []>} : vector<8x4xf32>, vector<4x256xf32>, vector<8x256xf32> -> vector<8x256xf32>
    %44 = arith.addf %36, %43 : vector<8x256xf32>
    %c241_i32 = arith.constant 241 : i32
    %45 = tpu.dynamic_rotate %1 by %c241_i32 dim 1 : vector<4x256xf32>, i32 -> vector<4x256xf32>
    %c6 = arith.constant 6 : index
    %c0_30 = arith.constant 0 : index
    %46 = vector.load %arg11[%c6, %c0_30] : memref<9x256xf32, #tpu.memory_space<vmem>>, vector<1x256xf32>
    %47 = vector.broadcast %46 : vector<1x256xf32> to vector<4x256xf32>
    %48 = arith.mulf %45, %47 : vector<4x256xf32>
    %c6_31 = arith.constant 6 : index
    %c0_32 = arith.constant 0 : index
    %c0_33 = arith.constant 0 : index
    %49 = vector.load %arg2[%c6_31, %c0_32, %c0_33] : memref<9x8x4xf32, #tpu.memory_space<vmem>>, vector<1x8x4xf32>
    %50 = vector.shape_cast %49 : vector<1x8x4xf32> to vector<8x4xf32>
    %cst_34 = arith.constant dense<0.000000e+00> : vector<8x256xf32>
    %51 = tpu.matmul %50, %48, %cst_34 {dimension_numbers = #tpu.dot_dimension_numbers<[1], [0], [0], [1], [0, 0, 1, 1], [], []>} : vector<8x4xf32>, vector<4x256xf32>, vector<8x256xf32> -> vector<8x256xf32>
    %52 = arith.addf %44, %51 : vector<8x256xf32>
    %c240_i32 = arith.constant 240 : i32
    %53 = tpu.dynamic_rotate %1 by %c240_i32 dim 1 : vector<4x256xf32>, i32 -> vector<4x256xf32>
    %c7 = arith.constant 7 : index
    %c0_35 = arith.constant 0 : index
    %54 = vector.load %arg11[%c7, %c0_35] : memref<9x256xf32, #tpu.memory_space<vmem>>, vector<1x256xf32>
    %55 = vector.broadcast %54 : vector<1x256xf32> to vector<4x256xf32>
    %56 = arith.mulf %53, %55 : vector<4x256xf32>
    %c7_36 = arith.constant 7 : index
    %c0_37 = arith.constant 0 : index
    %c0_38 = arith.constant 0 : index
    %57 = vector.load %arg2[%c7_36, %c0_37, %c0_38] : memref<9x8x4xf32, #tpu.memory_space<vmem>>, vector<1x8x4xf32>
    %58 = vector.shape_cast %57 : vector<1x8x4xf32> to vector<8x4xf32>
    %cst_39 = arith.constant dense<0.000000e+00> : vector<8x256xf32>
    %59 = tpu.matmul %58, %56, %cst_39 {dimension_numbers = #tpu.dot_dimension_numbers<[1], [0], [0], [1], [0, 0, 1, 1], [], []>} : vector<8x4xf32>, vector<4x256xf32>, vector<8x256xf32> -> vector<8x256xf32>
    %60 = arith.addf %52, %59 : vector<8x256xf32>
    %c239_i32 = arith.constant 239 : i32
    %61 = tpu.dynamic_rotate %1 by %c239_i32 dim 1 : vector<4x256xf32>, i32 -> vector<4x256xf32>
    %c8 = arith.constant 8 : index
    %c0_40 = arith.constant 0 : index
    %62 = vector.load %arg11[%c8, %c0_40] : memref<9x256xf32, #tpu.memory_space<vmem>>, vector<1x256xf32>
    %63 = vector.broadcast %62 : vector<1x256xf32> to vector<4x256xf32>
    %64 = arith.mulf %61, %63 : vector<4x256xf32>
    %c8_41 = arith.constant 8 : index
    %c0_42 = arith.constant 0 : index
    %c0_43 = arith.constant 0 : index
    %65 = vector.load %arg2[%c8_41, %c0_42, %c0_43] : memref<9x8x4xf32, #tpu.memory_space<vmem>>, vector<1x8x4xf32>
    %66 = vector.shape_cast %65 : vector<1x8x4xf32> to vector<8x4xf32>
    %cst_44 = arith.constant dense<0.000000e+00> : vector<8x256xf32>
    %67 = tpu.matmul %66, %64, %cst_44 {dimension_numbers = #tpu.dot_dimension_numbers<[1], [0], [0], [1], [0, 0, 1, 1], [], []>} : vector<8x4xf32>, vector<4x256xf32>, vector<8x256xf32> -> vector<8x256xf32>
    %68 = arith.addf %60, %67 : vector<8x256xf32>
    %c0_45 = arith.constant 0 : index
    %c0_46 = arith.constant 0 : index
    %69 = vector.load %arg3[%c0_45, %c0_46] : memref<8x1xf32, #tpu.memory_space<vmem>>, vector<8x1xf32>
    %70 = vector.broadcast %69 : vector<8x1xf32> to vector<8x256xf32>
    %71 = arith.mulf %68, %70 : vector<8x256xf32>
    %c0_47 = arith.constant 0 : index
    %c0_48 = arith.constant 0 : index
    %72 = vector.load %arg4[%c0_47, %c0_48] : memref<8x1xf32, #tpu.memory_space<vmem>>, vector<8x1xf32>
    %73 = vector.broadcast %72 : vector<8x1xf32> to vector<8x256xf32>
    %74 = arith.addf %71, %73 : vector<8x256xf32>
    %75 = arith.negf %74 : vector<8x256xf32>
    %76 = math.exp %75 : vector<8x256xf32>
    %cst_49 = arith.constant 1.000000e+00 : f32
    %77 = vector.broadcast %cst_49 : f32 to vector<8x256xf32>
    %78 = arith.addf %77, %76 : vector<8x256xf32>
    %79 = arith.divf %77, %78 : vector<8x256xf32>
    %80 = arith.mulf %74, %79 : vector<8x256xf32>
    %c0_50 = arith.constant 0 : index
    %c0_51 = arith.constant 0 : index
    %81 = vector.load %arg10[%c0_50, %c0_51] : memref<256x1024xf32, #tpu.memory_space<vmem>>, vector<256x1024xf32>
    %cst_52 = arith.constant dense<0.000000e+00> : vector<8x1024xf32>
    %82 = tpu.matmul %80, %81, %cst_52 {dimension_numbers = #tpu.dot_dimension_numbers<[1], [0], [0], [1], [0, 0, 1, 1], [], []>} : vector<8x256xf32>, vector<256x1024xf32>, vector<8x1024xf32> -> vector<8x1024xf32>
    %c33_i32 = arith.constant 33 : i32
    %83 = tpu.dynamic_rotate %82 by %c33_i32 dim 1 : vector<8x1024xf32>, i32 -> vector<8x1024xf32>
    %c0_53 = arith.constant 0 : index
    %c0_54 = arith.constant 0 : index
    %84 = vector.load %arg12[%c0_53, %c0_54] : memref<9x1024xf32, #tpu.memory_space<vmem>>, vector<1x1024xf32>
    %85 = vector.broadcast %84 : vector<1x1024xf32> to vector<8x1024xf32>
    %86 = arith.mulf %83, %85 : vector<8x1024xf32>
    %c0_55 = arith.constant 0 : index
    %c0_56 = arith.constant 0 : index
    %c0_57 = arith.constant 0 : index
    %87 = vector.load %arg5[%c0_55, %c0_56, %c0_57] : memref<9x8x8xf32, #tpu.memory_space<vmem>>, vector<1x8x8xf32>
    %88 = vector.shape_cast %87 : vector<1x8x8xf32> to vector<8x8xf32>
    %cst_58 = arith.constant dense<0.000000e+00> : vector<8x1024xf32>
    %89 = tpu.matmul %88, %86, %cst_58 {dimension_numbers = #tpu.dot_dimension_numbers<[1], [0], [0], [1], [0, 0, 1, 1], [], []>} : vector<8x8xf32>, vector<8x1024xf32>, vector<8x1024xf32> -> vector<8x1024xf32>
    %c32_i32 = arith.constant 32 : i32
    %90 = tpu.dynamic_rotate %82 by %c32_i32 dim 1 : vector<8x1024xf32>, i32 -> vector<8x1024xf32>
    %c1_59 = arith.constant 1 : index
    %c0_60 = arith.constant 0 : index
    %91 = vector.load %arg12[%c1_59, %c0_60] : memref<9x1024xf32, #tpu.memory_space<vmem>>, vector<1x1024xf32>
    %92 = vector.broadcast %91 : vector<1x1024xf32> to vector<8x1024xf32>
    %93 = arith.mulf %90, %92 : vector<8x1024xf32>
    %c1_61 = arith.constant 1 : index
    %c0_62 = arith.constant 0 : index
    %c0_63 = arith.constant 0 : index
    %94 = vector.load %arg5[%c1_61, %c0_62, %c0_63] : memref<9x8x8xf32, #tpu.memory_space<vmem>>, vector<1x8x8xf32>
    %95 = vector.shape_cast %94 : vector<1x8x8xf32> to vector<8x8xf32>
    %cst_64 = arith.constant dense<0.000000e+00> : vector<8x1024xf32>
    %96 = tpu.matmul %95, %93, %cst_64 {dimension_numbers = #tpu.dot_dimension_numbers<[1], [0], [0], [1], [0, 0, 1, 1], [], []>} : vector<8x8xf32>, vector<8x1024xf32>, vector<8x1024xf32> -> vector<8x1024xf32>
    %97 = arith.addf %89, %96 : vector<8x1024xf32>
    %c31_i32 = arith.constant 31 : i32
    %98 = tpu.dynamic_rotate %82 by %c31_i32 dim 1 : vector<8x1024xf32>, i32 -> vector<8x1024xf32>
    %c2_65 = arith.constant 2 : index
    %c0_66 = arith.constant 0 : index
    %99 = vector.load %arg12[%c2_65, %c0_66] : memref<9x1024xf32, #tpu.memory_space<vmem>>, vector<1x1024xf32>
    %100 = vector.broadcast %99 : vector<1x1024xf32> to vector<8x1024xf32>
    %101 = arith.mulf %98, %100 : vector<8x1024xf32>
    %c2_67 = arith.constant 2 : index
    %c0_68 = arith.constant 0 : index
    %c0_69 = arith.constant 0 : index
    %102 = vector.load %arg5[%c2_67, %c0_68, %c0_69] : memref<9x8x8xf32, #tpu.memory_space<vmem>>, vector<1x8x8xf32>
    %103 = vector.shape_cast %102 : vector<1x8x8xf32> to vector<8x8xf32>
    %cst_70 = arith.constant dense<0.000000e+00> : vector<8x1024xf32>
    %104 = tpu.matmul %103, %101, %cst_70 {dimension_numbers = #tpu.dot_dimension_numbers<[1], [0], [0], [1], [0, 0, 1, 1], [], []>} : vector<8x8xf32>, vector<8x1024xf32>, vector<8x1024xf32> -> vector<8x1024xf32>
    %105 = arith.addf %97, %104 : vector<8x1024xf32>
    %c1_i32_71 = arith.constant 1 : i32
    %106 = tpu.dynamic_rotate %82 by %c1_i32_71 dim 1 : vector<8x1024xf32>, i32 -> vector<8x1024xf32>
    %c3_72 = arith.constant 3 : index
    %c0_73 = arith.constant 0 : index
    %107 = vector.load %arg12[%c3_72, %c0_73] : memref<9x1024xf32, #tpu.memory_space<vmem>>, vector<1x1024xf32>
    %108 = vector.broadcast %107 : vector<1x1024xf32> to vector<8x1024xf32>
    %109 = arith.mulf %106, %108 : vector<8x1024xf32>
    %c3_74 = arith.constant 3 : index
    %c0_75 = arith.constant 0 : index
    %c0_76 = arith.constant 0 : index
    %110 = vector.load %arg5[%c3_74, %c0_75, %c0_76] : memref<9x8x8xf32, #tpu.memory_space<vmem>>, vector<1x8x8xf32>
    %111 = vector.shape_cast %110 : vector<1x8x8xf32> to vector<8x8xf32>
    %cst_77 = arith.constant dense<0.000000e+00> : vector<8x1024xf32>
    %112 = tpu.matmul %111, %109, %cst_77 {dimension_numbers = #tpu.dot_dimension_numbers<[1], [0], [0], [1], [0, 0, 1, 1], [], []>} : vector<8x8xf32>, vector<8x1024xf32>, vector<8x1024xf32> -> vector<8x1024xf32>
    %113 = arith.addf %105, %112 : vector<8x1024xf32>
    %c4_78 = arith.constant 4 : index
    %c0_79 = arith.constant 0 : index
    %c0_80 = arith.constant 0 : index
    %114 = vector.load %arg5[%c4_78, %c0_79, %c0_80] : memref<9x8x8xf32, #tpu.memory_space<vmem>>, vector<1x8x8xf32>
    %115 = vector.shape_cast %114 : vector<1x8x8xf32> to vector<8x8xf32>
    %cst_81 = arith.constant dense<0.000000e+00> : vector<8x1024xf32>
    %116 = tpu.matmul %115, %82, %cst_81 {dimension_numbers = #tpu.dot_dimension_numbers<[1], [0], [0], [1], [0, 0, 1, 1], [], []>} : vector<8x8xf32>, vector<8x1024xf32>, vector<8x1024xf32> -> vector<8x1024xf32>
    %117 = arith.addf %113, %116 : vector<8x1024xf32>
    %c1023_i32 = arith.constant 1023 : i32
    %118 = tpu.dynamic_rotate %82 by %c1023_i32 dim 1 : vector<8x1024xf32>, i32 -> vector<8x1024xf32>
    %c5_82 = arith.constant 5 : index
    %c0_83 = arith.constant 0 : index
    %119 = vector.load %arg12[%c5_82, %c0_83] : memref<9x1024xf32, #tpu.memory_space<vmem>>, vector<1x1024xf32>
    %120 = vector.broadcast %119 : vector<1x1024xf32> to vector<8x1024xf32>
    %121 = arith.mulf %118, %120 : vector<8x1024xf32>
    %c5_84 = arith.constant 5 : index
    %c0_85 = arith.constant 0 : index
    %c0_86 = arith.constant 0 : index
    %122 = vector.load %arg5[%c5_84, %c0_85, %c0_86] : memref<9x8x8xf32, #tpu.memory_space<vmem>>, vector<1x8x8xf32>
    %123 = vector.shape_cast %122 : vector<1x8x8xf32> to vector<8x8xf32>
    %cst_87 = arith.constant dense<0.000000e+00> : vector<8x1024xf32>
    %124 = tpu.matmul %123, %121, %cst_87 {dimension_numbers = #tpu.dot_dimension_numbers<[1], [0], [0], [1], [0, 0, 1, 1], [], []>} : vector<8x8xf32>, vector<8x1024xf32>, vector<8x1024xf32> -> vector<8x1024xf32>
    %125 = arith.addf %117, %124 : vector<8x1024xf32>
    %c993_i32 = arith.constant 993 : i32
    %126 = tpu.dynamic_rotate %82 by %c993_i32 dim 1 : vector<8x1024xf32>, i32 -> vector<8x1024xf32>
    %c6_88 = arith.constant 6 : index
    %c0_89 = arith.constant 0 : index
    %127 = vector.load %arg12[%c6_88, %c0_89] : memref<9x1024xf32, #tpu.memory_space<vmem>>, vector<1x1024xf32>
    %128 = vector.broadcast %127 : vector<1x1024xf32> to vector<8x1024xf32>
    %129 = arith.mulf %126, %128 : vector<8x1024xf32>
    %c6_90 = arith.constant 6 : index
    %c0_91 = arith.constant 0 : index
    %c0_92 = arith.constant 0 : index
    %130 = vector.load %arg5[%c6_90, %c0_91, %c0_92] : memref<9x8x8xf32, #tpu.memory_space<vmem>>, vector<1x8x8xf32>
    %131 = vector.shape_cast %130 : vector<1x8x8xf32> to vector<8x8xf32>
    %cst_93 = arith.constant dense<0.000000e+00> : vector<8x1024xf32>
    %132 = tpu.matmul %131, %129, %cst_93 {dimension_numbers = #tpu.dot_dimension_numbers<[1], [0], [0], [1], [0, 0, 1, 1], [], []>} : vector<8x8xf32>, vector<8x1024xf32>, vector<8x1024xf32> -> vector<8x1024xf32>
    %133 = arith.addf %125, %132 : vector<8x1024xf32>
    %c992_i32 = arith.constant 992 : i32
    %134 = tpu.dynamic_rotate %82 by %c992_i32 dim 1 : vector<8x1024xf32>, i32 -> vector<8x1024xf32>
    %c7_94 = arith.constant 7 : index
    %c0_95 = arith.constant 0 : index
    %135 = vector.load %arg12[%c7_94, %c0_95] : memref<9x1024xf32, #tpu.memory_space<vmem>>, vector<1x1024xf32>
    %136 = vector.broadcast %135 : vector<1x1024xf32> to vector<8x1024xf32>
    %137 = arith.mulf %134, %136 : vector<8x1024xf32>
    %c7_96 = arith.constant 7 : index
    %c0_97 = arith.constant 0 : index
    %c0_98 = arith.constant 0 : index
    %138 = vector.load %arg5[%c7_96, %c0_97, %c0_98] : memref<9x8x8xf32, #tpu.memory_space<vmem>>, vector<1x8x8xf32>
    %139 = vector.shape_cast %138 : vector<1x8x8xf32> to vector<8x8xf32>
    %cst_99 = arith.constant dense<0.000000e+00> : vector<8x1024xf32>
    %140 = tpu.matmul %139, %137, %cst_99 {dimension_numbers = #tpu.dot_dimension_numbers<[1], [0], [0], [1], [0, 0, 1, 1], [], []>} : vector<8x8xf32>, vector<8x1024xf32>, vector<8x1024xf32> -> vector<8x1024xf32>
    %141 = arith.addf %133, %140 : vector<8x1024xf32>
    %c991_i32 = arith.constant 991 : i32
    %142 = tpu.dynamic_rotate %82 by %c991_i32 dim 1 : vector<8x1024xf32>, i32 -> vector<8x1024xf32>
    %c8_100 = arith.constant 8 : index
    %c0_101 = arith.constant 0 : index
    %143 = vector.load %arg12[%c8_100, %c0_101] : memref<9x1024xf32, #tpu.memory_space<vmem>>, vector<1x1024xf32>
    %144 = vector.broadcast %143 : vector<1x1024xf32> to vector<8x1024xf32>
    %145 = arith.mulf %142, %144 : vector<8x1024xf32>
    %c8_102 = arith.constant 8 : index
    %c0_103 = arith.constant 0 : index
    %c0_104 = arith.constant 0 : index
    %146 = vector.load %arg5[%c8_102, %c0_103, %c0_104] : memref<9x8x8xf32, #tpu.memory_space<vmem>>, vector<1x8x8xf32>
    %147 = vector.shape_cast %146 : vector<1x8x8xf32> to vector<8x8xf32>
    %cst_105 = arith.constant dense<0.000000e+00> : vector<8x1024xf32>
    %148 = tpu.matmul %147, %145, %cst_105 {dimension_numbers = #tpu.dot_dimension_numbers<[1], [0], [0], [1], [0, 0, 1, 1], [], []>} : vector<8x8xf32>, vector<8x1024xf32>, vector<8x1024xf32> -> vector<8x1024xf32>
    %149 = arith.addf %141, %148 : vector<8x1024xf32>
    %c0_106 = arith.constant 0 : index
    %c0_107 = arith.constant 0 : index
    %150 = vector.load %arg6[%c0_106, %c0_107] : memref<8x1xf32, #tpu.memory_space<vmem>>, vector<8x1xf32>
    %151 = vector.broadcast %150 : vector<8x1xf32> to vector<8x1024xf32>
    %152 = arith.mulf %149, %151 : vector<8x1024xf32>
    %c0_108 = arith.constant 0 : index
    %c0_109 = arith.constant 0 : index
    %153 = vector.load %arg7[%c0_108, %c0_109] : memref<8x1xf32, #tpu.memory_space<vmem>>, vector<8x1xf32>
    %154 = vector.broadcast %153 : vector<8x1xf32> to vector<8x1024xf32>
    %155 = arith.addf %152, %154 : vector<8x1024xf32>
    %cst_110 = arith.constant dense<0.000000e+00> : vector<8xf32>
    %156 = vector.multi_reduction <add>, %155, %cst_110 [1] : vector<8x1024xf32> to vector<8xf32>
    %157 = vector.shape_cast %156 : vector<8xf32> to vector<8x1xf32>
    %cst_111 = arith.constant 1.024000e+03 : f32
    %158 = vector.broadcast %cst_111 : f32 to vector<8x1xf32>
    %159 = arith.divf %157, %158 : vector<8x1xf32>
    %c0_112 = arith.constant 0 : index
    %c0_113 = arith.constant 0 : index
    %160 = vector.load %arg8[%c0_112, %c0_113] : memref<4x8xf32, #tpu.memory_space<vmem>>, vector<4x1xf32>
    %161 = vector.extract_strided_slice %159 {offsets = [0, 0], sizes = [1, 1], strides = [1, 1]} : vector<8x1xf32> to vector<1x1xf32>
    %162 = vector.broadcast %161 : vector<1x1xf32> to vector<4x1xf32>
    %163 = arith.mulf %160, %162 : vector<4x1xf32>
    %c0_114 = arith.constant 0 : index
    %c1_115 = arith.constant 1 : index
    %164 = vector.load %arg8[%c0_114, %c1_115] : memref<4x8xf32, #tpu.memory_space<vmem>>, vector<4x1xf32>
    %165 = vector.extract_strided_slice %159 {offsets = [1, 0], sizes = [1, 1], strides = [1, 1]} : vector<8x1xf32> to vector<1x1xf32>
    %166 = vector.broadcast %165 : vector<1x1xf32> to vector<4x1xf32>
    %167 = arith.mulf %164, %166 : vector<4x1xf32>
    %168 = arith.addf %163, %167 : vector<4x1xf32>
    %c0_116 = arith.constant 0 : index
    %c2_117 = arith.constant 2 : index
    %169 = vector.load %arg8[%c0_116, %c2_117] : memref<4x8xf32, #tpu.memory_space<vmem>>, vector<4x1xf32>
    %170 = vector.extract_strided_slice %159 {offsets = [2, 0], sizes = [1, 1], strides = [1, 1]} : vector<8x1xf32> to vector<1x1xf32>
    %171 = vector.broadcast %170 : vector<1x1xf32> to vector<4x1xf32>
    %172 = arith.mulf %169, %171 : vector<4x1xf32>
    %173 = arith.addf %168, %172 : vector<4x1xf32>
    %c0_118 = arith.constant 0 : index
    %c3_119 = arith.constant 3 : index
    %174 = vector.load %arg8[%c0_118, %c3_119] : memref<4x8xf32, #tpu.memory_space<vmem>>, vector<4x1xf32>
    %175 = vector.extract_strided_slice %159 {offsets = [3, 0], sizes = [1, 1], strides = [1, 1]} : vector<8x1xf32> to vector<1x1xf32>
    %176 = vector.broadcast %175 : vector<1x1xf32> to vector<4x1xf32>
    %177 = arith.mulf %174, %176 : vector<4x1xf32>
    %178 = arith.addf %173, %177 : vector<4x1xf32>
    %c0_120 = arith.constant 0 : index
    %c4_121 = arith.constant 4 : index
    %179 = vector.load %arg8[%c0_120, %c4_121] : memref<4x8xf32, #tpu.memory_space<vmem>>, vector<4x1xf32>
    %180 = vector.extract_strided_slice %159 {offsets = [4, 0], sizes = [1, 1], strides = [1, 1]} : vector<8x1xf32> to vector<1x1xf32>
    %181 = vector.broadcast %180 : vector<1x1xf32> to vector<4x1xf32>
    %182 = arith.mulf %179, %181 : vector<4x1xf32>
    %183 = arith.addf %178, %182 : vector<4x1xf32>
    %c0_122 = arith.constant 0 : index
    %c5_123 = arith.constant 5 : index
    %184 = vector.load %arg8[%c0_122, %c5_123] : memref<4x8xf32, #tpu.memory_space<vmem>>, vector<4x1xf32>
    %185 = vector.extract_strided_slice %159 {offsets = [5, 0], sizes = [1, 1], strides = [1, 1]} : vector<8x1xf32> to vector<1x1xf32>
    %186 = vector.broadcast %185 : vector<1x1xf32> to vector<4x1xf32>
    %187 = arith.mulf %184, %186 : vector<4x1xf32>
    %188 = arith.addf %183, %187 : vector<4x1xf32>
    %c0_124 = arith.constant 0 : index
    %c6_125 = arith.constant 6 : index
    %189 = vector.load %arg8[%c0_124, %c6_125] : memref<4x8xf32, #tpu.memory_space<vmem>>, vector<4x1xf32>
    %190 = vector.extract_strided_slice %159 {offsets = [6, 0], sizes = [1, 1], strides = [1, 1]} : vector<8x1xf32> to vector<1x1xf32>
    %191 = vector.broadcast %190 : vector<1x1xf32> to vector<4x1xf32>
    %192 = arith.mulf %189, %191 : vector<4x1xf32>
    %193 = arith.addf %188, %192 : vector<4x1xf32>
    %c0_126 = arith.constant 0 : index
    %c7_127 = arith.constant 7 : index
    %194 = vector.load %arg8[%c0_126, %c7_127] : memref<4x8xf32, #tpu.memory_space<vmem>>, vector<4x1xf32>
    %195 = vector.extract_strided_slice %159 {offsets = [7, 0], sizes = [1, 1], strides = [1, 1]} : vector<8x1xf32> to vector<1x1xf32>
    %196 = vector.broadcast %195 : vector<1x1xf32> to vector<4x1xf32>
    %197 = arith.mulf %194, %196 : vector<4x1xf32>
    %198 = arith.addf %193, %197 : vector<4x1xf32>
    %cst_128 = arith.constant 0.000000e+00 : f32
    %199 = vector.broadcast %cst_128 : f32 to vector<4x1xf32>
    %200 = arith.cmpf ogt, %198, %199 : vector<4x1xf32>
    %201 = math.exp %198 : vector<4x1xf32>
    %cst_129 = arith.constant 1.000000e+00 : f32
    %202 = vector.broadcast %cst_129 : f32 to vector<4x1xf32>
    %203 = arith.subf %201, %202 : vector<4x1xf32>
    %204 = arith.select %200, %198, %203 : vector<4x1xi1>, vector<4x1xf32>
    %c0_130 = arith.constant 0 : index
    %c0_131 = arith.constant 0 : index
    %205 = vector.load %arg9[%c0_130, %c0_131] : memref<8x4xf32, #tpu.memory_space<vmem>>, vector<8x1xf32>
    %206 = vector.extract_strided_slice %204 {offsets = [0, 0], sizes = [1, 1], strides = [1, 1]} : vector<4x1xf32> to vector<1x1xf32>
    %207 = vector.broadcast %206 : vector<1x1xf32> to vector<8x1xf32>
    %208 = arith.mulf %205, %207 : vector<8x1xf32>
    %c0_132 = arith.constant 0 : index
    %c1_133 = arith.constant 1 : index
    %209 = vector.load %arg9[%c0_132, %c1_133] : memref<8x4xf32, #tpu.memory_space<vmem>>, vector<8x1xf32>
    %210 = vector.extract_strided_slice %204 {offsets = [1, 0], sizes = [1, 1], strides = [1, 1]} : vector<4x1xf32> to vector<1x1xf32>
    %211 = vector.broadcast %210 : vector<1x1xf32> to vector<8x1xf32>
    %212 = arith.mulf %209, %211 : vector<8x1xf32>
    %213 = arith.addf %208, %212 : vector<8x1xf32>
    %c0_134 = arith.constant 0 : index
    %c2_135 = arith.constant 2 : index
    %214 = vector.load %arg9[%c0_134, %c2_135] : memref<8x4xf32, #tpu.memory_space<vmem>>, vector<8x1xf32>
    %215 = vector.extract_strided_slice %204 {offsets = [2, 0], sizes = [1, 1], strides = [1, 1]} : vector<4x1xf32> to vector<1x1xf32>
    %216 = vector.broadcast %215 : vector<1x1xf32> to vector<8x1xf32>
    %217 = arith.mulf %214, %216 : vector<8x1xf32>
    %218 = arith.addf %213, %217 : vector<8x1xf32>
    %c0_136 = arith.constant 0 : index
    %c3_137 = arith.constant 3 : index
    %219 = vector.load %arg9[%c0_136, %c3_137] : memref<8x4xf32, #tpu.memory_space<vmem>>, vector<8x1xf32>
    %220 = vector.extract_strided_slice %204 {offsets = [3, 0], sizes = [1, 1], strides = [1, 1]} : vector<4x1xf32> to vector<1x1xf32>
    %221 = vector.broadcast %220 : vector<1x1xf32> to vector<8x1xf32>
    %222 = arith.mulf %219, %221 : vector<8x1xf32>
    %223 = arith.addf %218, %222 : vector<8x1xf32>
    %224 = arith.negf %223 : vector<8x1xf32>
    %225 = math.exp %224 : vector<8x1xf32>
    %cst_138 = arith.constant 1.000000e+00 : f32
    %226 = vector.broadcast %cst_138 : f32 to vector<8x1xf32>
    %227 = arith.addf %226, %225 : vector<8x1xf32>
    %228 = arith.divf %226, %227 : vector<8x1xf32>
    %229 = vector.broadcast %228 : vector<8x1xf32> to vector<8x1024xf32>
    %230 = arith.mulf %155, %229 : vector<8x1024xf32>
    %231 = arith.addf %230, %82 : vector<8x1024xf32>
    %232 = arith.negf %231 : vector<8x1024xf32>
    %233 = math.exp %232 : vector<8x1024xf32>
    %cst_139 = arith.constant 1.000000e+00 : f32
    %234 = vector.broadcast %cst_139 : f32 to vector<8x1024xf32>
    %235 = arith.addf %234, %233 : vector<8x1024xf32>
    %236 = arith.divf %234, %235 : vector<8x1024xf32>
    %237 = arith.mulf %231, %236 : vector<8x1024xf32>
    %c0_140 = arith.constant 0 : index
    %c0_141 = arith.constant 0 : index
    %c0_142 = arith.constant 0 : index
    %238 = vector.load %arg13[%c0_140, %c0_141, %c0_142] : memref<1x8x1024xf32, #tpu.memory_space<vmem>>, vector<1x8x1024xf32>
    %239 = vector.shape_cast %238 : vector<1x8x1024xf32> to vector<8x1024xf32>
    %240 = vector.shape_cast %237 : vector<8x1024xf32> to vector<1x8x1024xf32>
    tpu.vector_store %arg13[%c0_140, %c0_141, %c0_142], %240 {strides = array<i32>} : memref<1x8x1024xf32, #tpu.memory_space<vmem>>, vector<1x8x1024xf32>,
    return
  }
  func.func @transform_0(%arg0: i32) -> (i32, i32, i32) {
    %c0_i32 = arith.constant 0 : i32
    %c0_i32_0 = arith.constant 0 : i32
    %c0_i32_1 = arith.constant 0 : i32
    return %arg0, %c0_i32, %c0_i32_0 : i32, i32, i32
  }
  func.func @transform_1(%arg0: i32) -> (i32, i32, i32) {
    %c0_i32 = arith.constant 0 : i32
    %c0_i32_0 = arith.constant 0 : i32
    %c0_i32_1 = arith.constant 0 : i32
    %c0_i32_2 = arith.constant 0 : i32
    return %c0_i32, %c0_i32_0, %c0_i32_1 : i32, i32, i32
  }
  func.func @transform_2(%arg0: i32) -> (i32, i32) {
    %c0_i32 = arith.constant 0 : i32
    %c0_i32_0 = arith.constant 0 : i32
    %c0_i32_1 = arith.constant 0 : i32
    return %c0_i32, %c0_i32_0 : i32, i32
  }
  func.func @transform_3(%arg0: i32) -> (i32, i32) {
    %c0_i32 = arith.constant 0 : i32
    %c0_i32_0 = arith.constant 0 : i32
    %c0_i32_1 = arith.constant 0 : i32
    return %c0_i32, %c0_i32_0 : i32, i32
  }
  func.func @transform_4(%arg0: i32) -> (i32, i32, i32) {
    %c0_i32 = arith.constant 0 : i32
    %c0_i32_0 = arith.constant 0 : i32
    %c0_i32_1 = arith.constant 0 : i32
    %c0_i32_2 = arith.constant 0 : i32
    return %c0_i32, %c0_i32_0, %c0_i32_1 : i32, i32, i32
  }
  func.func @transform_5(%arg0: i32) -> (i32, i32) {
    %c0_i32 = arith.constant 0 : i32
    %c0_i32_0 = arith.constant 0 : i32
    %c0_i32_1 = arith.constant 0 : i32
    return %c0_i32, %c0_i32_0 : i32, i32
  }
  func.func @transform_6(%arg0: i32) -> (i32, i32) {
    %c0_i32 = arith.constant 0 : i32
    %c0_i32_0 = arith.constant 0 : i32
    %c0_i32_1 = arith.constant 0 : i32
    return %c0_i32, %c0_i32_0 : i32, i32
  }
  func.func @transform_7(%arg0: i32) -> (i32, i32) {
    %c0_i32 = arith.constant 0 : i32
    %c0_i32_0 = arith.constant 0 : i32
    %c0_i32_1 = arith.constant 0 : i32
    return %c0_i32, %c0_i32_0 : i32, i32
  }
  func.func @transform_8(%arg0: i32) -> (i32, i32) {
    %c0_i32 = arith.constant 0 : i32
    %c0_i32_0 = arith.constant 0 : i32
    %c0_i32_1 = arith.constant 0 : i32
    return %c0_i32, %c0_i32_0 : i32, i32
  }
  func.func @transform_9(%arg0: i32) -> (i32, i32) {
    %c0_i32 = arith.constant 0 : i32
    %c0_i32_0 = arith.constant 0 : i32
    %c0_i32_1 = arith.constant 0 : i32
    return %c0_i32, %c0_i32_0 : i32, i32
  }
  func.func @transform_10(%arg0: i32) -> (i32, i32) {
    %c0_i32 = arith.constant 0 : i32
    %c0_i32_0 = arith.constant 0 : i32
    %c0_i32_1 = arith.constant 0 : i32
    return %c0_i32, %c0_i32_0 : i32, i32
  }
  func.func @transform_11(%arg0: i32) -> (i32, i32) {
    %c0_i32 = arith.constant 0 : i32
    %c0_i32_0 = arith.constant 0 : i32
    %c0_i32_1 = arith.constant 0 : i32
    return %c0_i32, %c0_i32_0 : i32, i32
  }
  func.func @transform_12(%arg0: i32) -> (i32, i32, i32) {
    %c0_i32 = arith.constant 0 : i32
    %c0_i32_0 = arith.constant 0 : i32
    %c0_i32_1 = arith.constant 0 : i32
    return %arg0, %c0_i32, %c0_i32_0 : i32, i32, i32
  }
}

</mosaic_0001>

<bundles_post_ra>
// kernel: decoder_con_forward.1
= control target key start
LH: loop header
LB: loop body
LE: loop exit
PB: predicated region body
PF: predicated region fallthrough
CT: control target
= control target key end

     0   :  { %17 = vsyncpa [#allocation3], 0  ;;  %s6224_s21 = smov 0   ;;  %s7151_s0 = inlined_call_operand.vmem [shape: f32[2,4,256], index: 0, kind: input, shape index: {}]   ;;  %s7152_s1 = inlined_call_operand.vmem [shape: f32[9,8,4], index: 1, kind: input, shape index: {}]   ;;  %s7153_s2 = inlined_call_operand.vmem [shape: f32[8,1], index: 2, kind: input, shape index: {}]   ;;  %s7154_s3 = inlined_call_operand.vmem [shape: f32[8,1], index: 3, kind: input, shape index: {}]   ;;  %s7155_s4 = inlined_call_operand.vmem [shape: f32[9,8,8], index: 4, kind: input, shape index: {}]   ;;  %s7156_s5 = inlined_call_operand.vmem [shape: f32[8,1], index: 5, kind: input, shape index: {}]   ;;  %s7157_s6 = inlined_call_operand.vmem [shape: f32[8,1], index: 6, kind: input, shape index: {}]   ;;  %s7158_s7 = inlined_call_operand.vmem [shape: f32[4,8], index: 7, kind: input, shape index: {}]   ;;  %s7159_s8 = inlined_call_operand.vmem [shape: f32[8,4], index: 8, kind: input, shape index: {}]   ;;  %s7160_s9 = inlined_call_operand.hbm [shape: f32[256,1024], index: 9, kind: input, shape index: {}]   ;;  %s7161_s10 = inlined_call_operand.vmem [shape: f32[9,256], index: 10, kind: input, shape index: {}]   ;;  %s7162_s11 = inlined_call_operand.vmem [shape: f32[9,1024], index: 11, kind: input, shape index: {}]   ;;  %s7163_s12 = inlined_call_operand.vmem [shape: f32[2,8,1024], index: 12, kind: output, shape index: {}]  }
   0x1 LB: > { %s6230_s22 = sadd.s32 4294967295, %s6130_s21   ;;  %p5537_p0 = scmp.ge.s32.totalorder %s6130_s21, 1  ;;  %s6130_s21 = sphi %s6224_s21, %s23_s21  }
   0x2   : > { %p311_p1 = scmp.lt.s32.totalorder %s6130_s21, 3  ;;  %s6132_s23 = smov [#allocation2]  }
   0x3   : > { %s347_s24 = sshll.u32 %s6132_s23, 4  ;;  %p7164_p3 = scmp.eq.s32.totalorder %s6230_s22, 0  ;;  %s348_s24 = int_to_ptr.vmem [resolvable:$true] %s347_s24 }
   0x4   : > { %p6234_p2 = pnand %p5537_p0, %p311_p1  ;;  %s6092_s29 = scalar_lea.hbm %s7160_s9, 32768 }
   0x5   : > { %p6093_p6 = scmp.ne.s32.totalorder %s7160_s9, %s6092_s29  ;;  %p6099_p10 = scmp.lt.u32.totalorder %s6092_s29, %s7160_s9 }
   0x6   : > { %s7166_s25 = scalar_select %p6234_p2, 1, 0 }
   0x7   : > { %p6002_p4 = pneg %p6234_p2 }
   0x9   : > { %p6243_p5 = pnand %p7164_p3, %p6002_p4 }
   0xb   : > { %p6094_p7 = pneg %p6243_p5 }
   0xd   : > { %p6095_p8 = pnand %p6094_p7, %p6093_p6 }
   0xf   : > { %p6096_p9 = pneg %p6095_p8 }
  0x11   : > { %p6101_p11 = pnand %p6099_p10, %p6096_p9 }
  0x13   : > { %6104 = shalt.err (!%p6101_p11)
}
  0x14   : > { %s6105_s16 = scalar_lea.vmem %s348_s24, 32768  ;;  %p6113_p1 = scmp.lt.s32.totalorder %s348_s24, %s348_s24 }
  0x15   : > { %p6106_p12 = scmp.ne.s32.totalorder %s348_s24, %s6105_s16  ;;  %p6114_p4 = scmp.lt.s32.totalorder %s6105_s16, %s6105_s16 }
  0x17   : > { %p6108_p13 = pnand %p6106_p12, %p6094_p7  ;;  %p6115_p3 = por %p6114_p4, %p6113_p1 }
  0x19   : > { %p6109_p0 = pneg %p6108_p13 }
  0x1b   : > { %p6116_p2 = pnand %p6115_p3, %p6109_p0 }
  0x1d   : > { %6119 = shalt.err (!%p6116_p2)
}
  0x1e   : > { %s6133_s17 = smov 1024   ;;  %s6134_s18 = smov 64  }
  0x1f   : > { %6005 = dma.hbm_to_vmem [thread:$0]  (!%p6243_p5), %s7160_s9, 32768, %s348_s24, [#allocation3], %s6133_s17, %s6133_s17, %s6134_s18  }
  0x20   : > { %p7168_p6 = scmp.ne.s32.totalorder %s7166_s25, 0 }
  0x21   : > { %p7169_p8 = scmp.eq.s32.totalorder (!%p7168_p6), %s6230_s22, 0 }
  0x22   : > { %377 = sbr.rel (%p7168_p6) target bundleno = 2032 (0x7f0), region = 68 }
  0x29   : > { %6125 = dma.done.wait (%p7169_p8), [#allocation3], 32768   ;;  %p7170_p7 = pmov %p7169_p8 }
  0x2a   : > { %p419_p2 = scmp.lt.s32.totalorder %s6230_s22, 1  ;;  %v6135_v0 = vmov 0.0   ;;  %s6136_s27 = smov 1   ;;  %v1361_v3 = vld [vmem:[%s7153_s2] sm:$0xff]  ;;  %v6144_v5 = vmov 0   ;;  %v437_v6 = vlaneseq  ;;  %vm485_vm2 = vcmask 1043456  }
  0x2b   : > { %6127 = vsyncadd (%p7170_p7), [#allocation3], 4294934528  ;;  %740 = vmatprep.mubr.f32.mxu0 %v6135_v0  ;;  %556 = vmatprep.mubr.f32.mxu1 %v6135_v0  ;;  %s6137_s28 = smov 15   ;;  %s6138_s29 = smov 127   ;;  %v1369_v4 = vld [vmem:[%s7154_s3] sm:$0xff]  ;;  %vm481_vm3 = vcmask 31744  }
  0x2c   : > { %s7172_s22 = smov (!%p419_p2, %s6230_s22), 1  ;;  %s6139_s30 = smov 113   ;;  %6043 = vset.pattern.permute.xlu0 %v6144_v5  ;;  %6044 = vset.pattern.permute.xlu1 %v6144_v5  ;;  %v6311_v7 = vshrl.u32 %v437_v6, 7  ;;  %v6313_v8 = vand.u32 127, %v437_v6  ;;  %v5555_v29 = vld [vmem:[%s7152_s1 + $0x10] sm:$0xff]  ;;  %v5560_v40 = vld [vmem:[%s7152_s1 + $0x18] sm:$0xff] }
  0x2d   : > { %s5660_s23 = sshll.u32 %s7172_s22, 3  ;;  %s6140_s13 = smov 16   ;;  %v5559_v11 = vld [vmem:[%s7161_s10 + $0x3] ss:$8 sm:$0x3]  ;;  %vm2089_vm11 = vcmask 64512  }
  0x2e   : > { %s423_s26 = scalar_lea.vmem %s7151_s0, %s5660_s23  ;;  %s6141_s14 = smov 112   ;;  %v6316_v9 = vsub.s32 0, %v6311_v7  ;;  %v6319_v10 = vsub.s32 1, %v6311_v7  ;;  %v5554_v12 = vld [vmem:[%s7161_s10 + $0x2] ss:$8 sm:$0x3] }
  0x2f   : > { %v6279_v1 = vld [vmem:[%s423_s26] sm:$0xff]  ;;  %s6142_s15 = smov 17   ;;  %s6143_s16 = smov 111   ;;  %vm753_vm0 = vcmp.lt.s32.totalorder %v6313_v8, 1  ;;  %vm647_vm1 = vcmp.lt.s32.totalorder %v6313_v8, 15  ;;  %vm941_vm4 = vcmp.lt.s32.totalorder %v6313_v8, 127 }
  0x30   : > { %749 = vrot.lane.b32.xlu1 %v6279_v1, %s6136_s27  ;;  %643 = vrot.lane.b32.xlu0 %v6279_v1, %s6137_s28  ;;  %v6286_v2 = vcombine.high %v6279_v1, %v6279_v1  ;;  %v766_v15 = vrot.slane %v5559_v11, %v6319_v10  ;;  %v656_v16 = vrot.slane %v5554_v12, %v6316_v9  ;;  %v5568_v32 = vld [vmem:[%s7161_s10 + $0x5] ss:$8 sm:$0x3]  ;;  %v5546_v33 = vld [vmem:[%s7161_s10 + $0x1] ss:$8 sm:$0x3] }
  0x31   : > { %v660_v17 = vrot.slane %v5554_v12, %v6319_v10  ;;  %v762_v18 = vrot.slane %v5559_v11, %v6316_v9  ;;  %v954_v34 = vrot.slane %v5568_v32, %v6319_v10  ;;  %vm461_vm5 = vcmp.lt.s32.totalorder %v6313_v8, 16  ;;  %v6367_v44 = vld [vmem:[%s7161_s10 + $0x6] ss:$8 sm:$0x3]  ;;  %s6146_s18 = smov 33   ;;  %s6147_s19 = smov 31  }
  0x32   : > { %v470_v38 = vrot.slane %v5546_v33, %v6316_v9  ;;  %v474_v39 = vrot.slane %v5546_v33, %v6319_v10  ;;  %vm1047_vm6 = vcmp.lt.s32.totalorder %v6313_v8, 113  ;;  %v950_v49 = vrot.slane %v5568_v32, %v6316_v9  ;;  %v5547_v50 = vld [vmem:[%s7152_s1 + $0x8] sm:$0xff]  ;;  %v5564_v60 = vld [vmem:[%s7152_s1 + $0x20] sm:$0xff]  ;;  %v5583_v32 = vld [vmem:[%s7161_s10 + $0x10] ss:$8 sm:$0x3] }
  0x33   : > { %v442_v51 = vld [vmem:[%s7161_s10] ss:$8 sm:$0x3]  ;;  %v1060_v53 = vrot.slane %v6367_v44, %v6319_v10  ;;  %vm439_vm7 = vcmp.lt.s32.totalorder %v6313_v8, 17  ;;  %vm1153_vm8 = vcmp.lt.s32.totalorder %v6313_v8, 112  ;;  %vm1259_vm9 = vcmp.lt.s32.totalorder %v6313_v8, 111 }
  0x34   : > { %751 = vrot.lane.b32.xlu1 %v6286_v2, %s6136_s27  ;;  %645 = vrot.lane.b32.xlu0 %v6286_v2, %s6137_s28  ;;  %v447_v57 = vrot.slane %v442_v51, %v6316_v9  ;;  %v451_v58 = vrot.slane %v442_v51, %v6319_v10  ;;  %v1396_v61 = vld [vmem:[#allocation2 + $0x28] sm:$0xff]  ;;  %v5574_v51 = vld [vmem:[%s7152_s1 + $0x30] sm:$0xff]  ;;  %vm2025_vm10 = vcmp.lt.s32.totalorder %v6313_v8, 32  ;;  %s6148_s20 = smov 97   ;;  %s6149_s23 = smov 96   ;;  %vm1947_vm12 = vcmp.lt.s32.totalorder %v6313_v8, 33 }
  0x35   : > { %v1404_v62 = vld [vmem:[#allocation2 + $0x68] sm:$0xff]  ;;  %s6150_s24 = smov 95   ;;  %vm2680_vm13 = vcmp.lt.s32.totalorder %v6313_v8, 31  ;;  %vm4100_vm14 = vcmp.lt.s32.totalorder %v6313_v8, 97  ;;  %vm4475_vm15 = vcmp.lt.s32.totalorder %v6313_v8, 96  ;;  %s6155_s25 = smov 122  }
  0x36   : > { %v5578_v5 = vld [vmem:[%s7161_s10 + $0x7] ss:$8 sm:$0x3]  ;;  %s6156_s26 = smov 121   ;;  %s6157_s28 = smov 3  }
  0x37   : > { %v1412_v12 = vld [vmem:[#allocation2 + $0xa8] sm:$0xff] }
  0x38   : > { %939 = vrot.lane.b32.xlu1 %v6286_v2, %s6138_s29  ;;  %937 = vrot.lane.b32.xlu0 %v6279_v1, %s6138_s29 }
  0x3c   : > { %1045 = vrot.lane.b32.xlu1 %v6286_v2, %s6139_s30  ;;  %1043 = vrot.lane.b32.xlu0 %v6279_v1, %s6139_s30  ;;  %s6158_s30 = smov 2  }
  0x40   : > { %459 = vrot.lane.b32.xlu1 %v6286_v2, %s6140_s13  ;;  %457 = vrot.lane.b32.xlu0 %v6279_v1, %s6140_s13  ;;  %s6145_s13 = smov 32  }
  0x44   : > { %1151 = vrot.lane.b32.xlu1 %v6286_v2, %s6141_s14  ;;  %1149 = vrot.lane.b32.xlu0 %v6279_v1, %s6141_s14 }
  0x48   : > { %435 = vrot.lane.b32.xlu1 %v6286_v2, %s6142_s15  ;;  %433 = vrot.lane.b32.xlu0 %v6279_v1, %s6142_s15 }
  0x4c   : > { %1257 = vrot.lane.b32.xlu1 %v6286_v2, %s6143_s16  ;;  %1255 = vrot.lane.b32.xlu0 %v6279_v1, %s6143_s16 }
  0x50   : > { %1364 = vperm.xlu0 %6043, %v1361_v3   ;;  %1372 = vperm.xlu1 %6044, %v1369_v4   ;;  %v1395_v3 = vld [vmem:[#allocation2 + $0x20] sm:$0xff] }
  0x51   : > { %v1403_v4 = vld [vmem:[#allocation2 + $0x60] sm:$0xff] }
  0xa2   : > { %v750_v13 = vpop.permute.xlu1 %749  ;;  %v644_v14 = vpop.permute.xlu0 %643 }
  0xa6   : > { %v752_v19 = vpop.permute.xlu1 %751  ;;  %v646_v20 = vpop.permute.xlu0 %645 }
  0xa7   : > { %v754_v21 = vsel %vm753_vm0, %v750_v13, %v752_v19  ;;  %v755_v22 = vsel %vm753_vm0, %v752_v19, %v750_v13  ;;  %v649_v23 = vsel %vm647_vm1, %v646_v20, %v644_v14  ;;  %v648_v24 = vsel %vm647_vm1, %v644_v14, %v646_v20  ;;  %v1420_v13 = vld [vmem:[#allocation2 + $0xe8] sm:$0xff] }
  0xa8   : > { %v770_v25 = vmul.f32 %v766_v15, %v754_v21  ;;  %v664_v26 = vmul.f32 %v660_v17, %v648_v24  ;;  %v663_v27 = vmul.f32 %v656_v16, %v649_v23  ;;  %v769_v28 = vmul.f32 %v762_v18, %v755_v22  ;;  %v456_v18 = vld [vmem:[%s7152_s1] sm:$0xff] }
  0xa9   : > { %v5790_v16 = vpack.c.bf16 %v1404_v62, %v1396_v61  ;;  %v1056_v17 = vrot.slane %v6367_v44, %v6316_v9  ;;  %v5792_v19 = vpack.c.bf16 %v1403_v4, %v1395_v3  ;;  %v1166_v21 = vrot.slane %v5578_v5, %v6319_v10  ;;  %v1411_v24 = vld [vmem:[#allocation2 + $0xa0] sm:$0xff]  ;;  %v1400_v61 = vld [vmem:[#allocation2 + $0x48] sm:$0xff] }
  0xaa   : > { %5556 = vmatprep.subr.msk.mxu0 %vm485_vm2, %v664_v26  ;;  %v940_v30 = vpop.permute.xlu1 %939  ;;  %v938_v31 = vpop.permute.xlu0 %937  ;;  %v5794_v22 = vpack.c.bf16 %v1420_v13, %v1412_v12  ;;  %v1428_v26 = vld [vmem:[#allocation2 + $0x128] sm:$0xff]  ;;  %v1399_v3 = vld [vmem:[#allocation2 + $0x40] sm:$0xff] }
  0xab   : > { %5557 = vmatpush1.msk.msra.mxu0 %vm485_vm2, %v663_v27  ;;  %v943_v37 = vsel %vm941_vm4, %v940_v30, %v938_v31  ;;  %v942_v52 = vsel %vm941_vm4, %v938_v31, %v940_v30  ;;  %v1436_v27 = vld [vmem:[#allocation2 + $0x168] sm:$0xff]  ;;  %v1407_v13 = vld [vmem:[#allocation2 + $0x80] sm:$0xff] }
  0xac   : > { %5558 = vmatmul.mubr.msk.f32.vlgmr.msra.gmra.mrb[0].mxu0 %vm481_vm3, %v5555_v29  ;;  %5561 = vmatprep.subr.msk.mxu0 %vm485_vm2, %v770_v25  ;;  %v958_v41 = vmul.f32 %v954_v34, %v943_v37  ;;  %v957_v59 = vmul.f32 %v950_v49, %v942_v52  ;;  %v1419_v25 = vld [vmem:[#allocation2 + $0xe0] sm:$0xff]  ;;  %v5569_v29 = vld [vmem:[%s7152_s1 + $0x28] sm:$0xff]  ;;  %v5798_v33 = vpack.c.bf16 %v1436_v27, %v1428_v26 }
  0xad   : > { %5562 = vmatpush1.msk.msra.mxu0 %vm485_vm2, %v769_v28  ;;  %846 = vmatprep.mubr.f32.mxu0 %v6135_v0  ;;  %v5796_v31 = vpack.c.bf16 %v1419_v25, %v1411_v24  ;;  %v1427_v34 = vld [vmem:[#allocation2 + $0x120] sm:$0xff]  ;;  %v1468_v49 = vld [vmem:[#allocation2 + $0x268] sm:$0xff] }
  0xae   : > { %5565 = vmatprep.subr.msk.mxu0 %vm485_vm2, %v6286_v2  ;;  %v1046_v35 = vpop.permute.xlu1 %1045  ;;  %v1044_v36 = vpop.permute.xlu0 %1043  ;;  %v1408_v4 = vld [vmem:[#allocation2 + $0x88] sm:$0xff]  ;;  %v1439_v25 = vld [vmem:[#allocation2 + $0x180] sm:$0xff] }
  0xaf   : > { %v1049_v56 = vsel %vm1047_vm6, %v1046_v35, %v1044_v36  ;;  %v1048_v20 = vsel %vm1047_vm6, %v1044_v36, %v1046_v35  ;;  %v1435_v35 = vld [vmem:[#allocation2 + $0x160] sm:$0xff]  ;;  %v1456_v27 = vld [vmem:[#allocation2 + $0x208] sm:$0xff] }
  0xb0   : > { %v1064_v63 = vmul.f32 %v1060_v53, %v1049_v56  ;;  %v1063_v28 = vmul.f32 %v1056_v17, %v1048_v20  ;;  %v1467_v56 = vld [vmem:[#allocation2 + $0x260] sm:$0xff] }
  0xb1   : > { %v1431_v20 = vld [vmem:[#allocation2 + $0x140] sm:$0xff] }
  0xb2   : > { %v460_v42 = vpop.permute.xlu1 %459  ;;  %v458_v43 = vpop.permute.xlu0 %457  ;;  %v1447_v26 = vld [vmem:[#allocation2 + $0x1c0] sm:$0xff] }
  0xb3   : > { %v463_v45 = vsel %vm461_vm5, %v460_v42, %v458_v43  ;;  %v462_v46 = vsel %vm461_vm5, %v458_v43, %v460_v42  ;;  %v1272_v42 = vrot.slane %v5583_v32, %v6319_v10  ;;  %v5800_v43 = vpack.c.bf16 %v1435_v35, %v1427_v34  ;;  %v1472_v34 = vld [vmem:[#allocation2 + $0x288] sm:$0xff] }
  0xb4   : > { %5563 = vmatmul.mubr.msk.f32.vlgmr.msra.gmra.mrb[0].mxu0 %vm481_vm3, %v5560_v40  ;;  %v478_v47 = vmul.f32 %v474_v39, %v462_v46  ;;  %v477_v48 = vmul.f32 %v470_v38, %v463_v45  ;;  %v1444_v38 = vld [vmem:[#allocation2 + $0x1a8] sm:$0xff]  ;;  %v1162_v40 = vrot.slane %v5578_v5, %v6316_v9  ;;  %v1443_v46 = vld [vmem:[#allocation2 + $0x1a0] sm:$0xff] }
  0xb5   : > { %5566 = vmatpush1.msk.msra.mxu0 %vm485_vm2, %v6279_v1  ;;  %928 = vmatprep.mubr.f32.mxu0 %v6135_v0  ;;  %v1452_v39 = vld [vmem:[#allocation2 + $0x1e8] sm:$0xff] }
  0xb6   : > { %5570 = vmatprep.subr.msk.mxu0 %vm485_vm2, %v958_v41  ;;  %v6386_v54 = vpop.permute.xlu1 %1151  ;;  %5548 = vmatprep.subr.msk.mxu1 %vm485_vm2, %v478_v47  ;;  %v6389_v55 = vpop.permute.xlu0 %1149  ;;  %v5802_v45 = vpack.c.bf16 %v1452_v39, %v1444_v38  ;;  %v1451_v47 = vld [vmem:[#allocation2 + $0x1e0] sm:$0xff]  ;;  %v1416_v5 = vld [vmem:[#allocation2 + $0xc8] sm:$0xff] }
  0xb7   : > { %5549 = vmatpush1.msk.msra.mxu1 %vm485_vm2, %v477_v48  ;;  %v1155_v23 = vsel %vm1153_vm8, %v6386_v54, %v6389_v55  ;;  %v1154_v41 = vsel %vm1153_vm8, %v6389_v55, %v6386_v54  ;;  %v1460_v48 = vld [vmem:[#allocation2 + $0x228] sm:$0xff]  ;;  %v5804_v53 = vpack.c.bf16 %v1451_v47, %v1443_v46  ;;  %v1459_v55 = vld [vmem:[#allocation2 + $0x220] sm:$0xff]  ;;  %v5666_v12 = vpack.c.bf16 %v1416_v5, %v1408_v4 }
  0xb8   : > { %5550 = vmatmul.mubr.msk.f32.vlgmr.msra.gmra.mrb[0].mxu1 %vm481_vm3, %v5547_v50  ;;  %v1170_v30 = vmul.f32 %v1166_v21, %v1155_v23  ;;  %v1169_v50 = vmul.f32 %v1162_v40, %v1154_v41  ;;  %v5806_v54 = vpack.c.bf16 %v1468_v49, %v1460_v48  ;;  %v1440_v21 = vld [vmem:[#allocation2 + $0x188] sm:$0xff]  ;;  %v1479_v38 = vld [vmem:[#allocation2 + $0x2c0] sm:$0xff] }
  0xb9   : > { %636 = vmatprep.mubr.f32.mxu1 %v6135_v0  ;;  %v1480_v35 = vld [vmem:[#allocation2 + $0x2c8] sm:$0xff]  ;;  %v1487_v48 = vld [vmem:[#allocation2 + $0x300] sm:$0xff] }
  0xba   : > { %v436_v1 = vpop.permute.xlu1 %435  ;;  %v434_v2 = vpop.permute.xlu0 %433  ;;  %v1476_v39 = vld [vmem:[#allocation2 + $0x2a8] sm:$0xff]  ;;  %v1495_v49 = vld [vmem:[#allocation2 + $0x340] sm:$0xff] }
  0xbb   : > { %v440_v6 = vsel %vm439_vm7, %v434_v2, %v436_v1  ;;  %v441_v11 = vsel %vm439_vm7, %v436_v1, %v434_v2  ;;  %v1391_v2 = vld [vmem:[#allocation2] sm:$0xff]  ;;  %v1484_v40 = vld [vmem:[#allocation2 + $0x2e8] sm:$0xff] }
  0xbc   : > { %5567 = vmatmul.mubr.msk.f32.vlgmr.msra.gmra.mrb[0].mxu0 %vm481_vm3, %v5564_v60  ;;  %v454_v14 = vmul.f32 %v447_v57, %v441_v11  ;;  %v455_v15 = vmul.f32 %v451_v58, %v440_v6  ;;  %v1268_v57 = vrot.slane %v5583_v32, %v6316_v9  ;;  %v1392_v60 = vld [vmem:[#allocation2 + $0x8] sm:$0xff]  ;;  %v5584_v6 = vld [vmem:[%s7152_s1 + $0x40] sm:$0xff]  ;;  %v5664_v11 = vpack.c.bf16 %v1399_v3, %v1391_v2 }
  0xbd   : > { %5571 = vmatpush1.msk.msra.mxu0 %vm485_vm2, %v957_v59  ;;  %1034 = vmatprep.mubr.f32.mxu0 %v6135_v0  ;;  %v5808_v59 = vpack.c.bf16 %v1467_v56, %v1459_v55  ;;  %v5662_v1 = vpack.c.bf16 %v1400_v61, %v1392_v60  ;;  %v1463_v32 = vld [vmem:[#allocation2 + $0x240] sm:$0xff]  ;;  %v1496_v47 = vld [vmem:[#allocation2 + $0x348] sm:$0xff] }
  0xbe   : > { %5575 = vmatprep.subr.msk.mxu0 %vm485_vm2, %v1064_v63  ;;  %5551 = vmatprep.subr.msk.mxu1 %vm485_vm2, %v455_v15  ;;  %v1258_v36 = vpop.permute.xlu1 %1257  ;;  %v1256_v37 = vpop.permute.xlu0 %1255  ;;  %v5579_v63 = vld [vmem:[%s7152_s1 + $0x38] sm:$0xff]  ;;  %v1424_v15 = vld [vmem:[#allocation2 + $0x108] sm:$0xff]  ;;  %v1499_v56 = vld [vmem:[#allocation2 + $0x360] sm:$0xff] }
  0xbf   : > { %5552 = vmatpush1.msk.msra.mxu1 %vm485_vm2, %v454_v14  ;;  %v1261_v44 = vsel %vm1259_vm9, %v1258_v36, %v1256_v37  ;;  %v1260_v58 = vsel %vm1259_vm9, %v1256_v37, %v1258_v36  ;;  %v1415_v14 = vld [vmem:[#allocation2 + $0xc0] sm:$0xff]  ;;  %v5682_v37 = vpack.c.bf16 %v1480_v35, %v1472_v34  ;;  %v1516_v2 = vld [vmem:[#allocation2 + $0x3e8] sm:$0xff] }
  0xc0   : > { %5553 = vmatmul.mubr.msk.f32.vlgmr.msra.gmra.mrb[0].mxu1 %vm481_vm3, %v456_v18  ;;  %5791 = vmatprep.subr.bf16.mxu1 %v5790_v16  ;;  %v1276_v52 = vmul.f32 %v1272_v42, %v1261_v44  ;;  %v1275_v62 = vmul.f32 %v1268_v57, %v1260_v58  ;;  %v1432_v16 = vld [vmem:[#allocation2 + $0x148] sm:$0xff]  ;;  %v5668_v17 = vpack.c.bf16 %v1415_v14, %v1407_v13  ;;  %v1471_v36 = vld [vmem:[#allocation2 + $0x280] sm:$0xff] }
  0xc1   : > { %5793 = vmatpush1.bf16.msra.mxu1 %v5792_v19  ;;  %v5670_v18 = vpack.c.bf16 %v1432_v16, %v1424_v15  ;;  %v1423_v19 = vld [vmem:[#allocation2 + $0x100] sm:$0xff]  ;;  %v5684_v41 = vpack.c.bf16 %v1479_v38, %v1471_v36  ;;  %v5810_v42 = vpack.c.bf16 %v1484_v40, %v1476_v39  ;;  %v1504_v58 = vld [vmem:[#allocation2 + $0x388] sm:$0xff] }
  0xc2   : > { %5795 = vmatprep.subr.bf16.mxu1 %v5794_v22  ;;  %v1448_v22 = vld [vmem:[#allocation2 + $0x1c8] sm:$0xff]  ;;  %v5672_v23 = vpack.c.bf16 %v1431_v20, %v1423_v19  ;;  %v1483_v44 = vld [vmem:[#allocation2 + $0x2e0] sm:$0xff] }
  0xc3   : > { %v5674_v24 = vpack.c.bf16 %v1448_v22, %v1440_v21  ;;  %v1503_v61 = vld [vmem:[#allocation2 + $0x380] sm:$0xff]  ;;  %v1524_v16 = vld [vmem:[#allocation2 + $0x428] sm:$0xff] }
  0xc4   : > { %5572 = vmatmul.mubr.msk.f32.vlgmr.msra.gmra.mrb[0].mxu0 %vm481_vm3, %v5569_v29  ;;  %v5676_v29 = vpack.c.bf16 %v1447_v26, %v1439_v25  ;;  %v1507_v3 = vld [vmem:[#allocation2 + $0x3a0] sm:$0xff]  ;;  %v1552_v35 = vld [vmem:[#allocation2 + $0x508] sm:$0xff] }
  0xc5   : > { %5576 = vmatpush1.msk.msra.mxu0 %vm485_vm2, %v1063_v28  ;;  %1140 = vmatprep.mubr.f32.mxu0 %v6135_v0  ;;  %v1464_v28 = vld [vmem:[#allocation2 + $0x248] sm:$0xff]  ;;  %v1515_v4 = vld [vmem:[#allocation2 + $0x3e0] sm:$0xff] }
  0xc6   : > { %5580 = vmatprep.subr.msk.mxu0 %vm485_vm2, %v1170_v30  ;;  %5797 = vmatpush1.bf16.msra.mxu1 %v5796_v31  ;;  %v5678_v30 = vpack.c.bf16 %v1464_v28, %v1456_v27  ;;  %v1455_v31 = vld [vmem:[#allocation2 + $0x200] sm:$0xff]  ;;  %v1540_v28 = vld [vmem:[#allocation2 + $0x4a8] sm:$0xff] }
  0xc7   : > { %5799 = vmatprep.subr.bf16.mxu1 %v5798_v33  ;;  %v5680_v33 = vpack.c.bf16 %v1463_v32, %v1455_v31  ;;  %v1519_v14 = vld [vmem:[#allocation2 + $0x400] sm:$0xff]  ;;  %v1560_v36 = vld [vmem:[#allocation2 + $0x548] sm:$0xff] }
  0xc8   : > { %v1527_v15 = vld [vmem:[#allocation2 + $0x440] sm:$0xff]  ;;  %v1556_v40 = vld [vmem:[#allocation2 + $0x528] sm:$0xff] }
  0xc9   : > { %v1523_v19 = vld [vmem:[#allocation2 + $0x420] sm:$0xff] }
  0xca   : > { %5801 = vmatpush1.bf16.msra.mxu1 %v5800_v43  ;;  %v1475_v43 = vld [vmem:[#allocation2 + $0x2a0] sm:$0xff] }
  0xcb   : > { %5803 = vmatprep.subr.bf16.mxu1 %v5802_v45  ;;  %v1488_v45 = vld [vmem:[#allocation2 + $0x308] sm:$0xff]  ;;  %v5812_v46 = vpack.c.bf16 %v1483_v44, %v1475_v43  ;;  %v1531_v20 = vld [vmem:[#allocation2 + $0x460] sm:$0xff] }
  0xcc   : > { %5577 = vmatmul.mubr.msk.f32.vlgmr.msra.gmra.mrb[0].mxu0 %vm481_vm3, %v5574_v51  ;;  %v5688_v51 = vpack.c.bf16 %v1495_v49, %v1487_v48  ;;  %v5824_v22 = vpack.c.bf16 %v1531_v20, %v1523_v19  ;;  %v1535_v26 = vld [vmem:[#allocation2 + $0x480] sm:$0xff]  ;;  %v1576_v48 = vld [vmem:[#allocation2 + $0x5c8] sm:$0xff] }
  0xcd   : > { %5581 = vmatpush1.msk.msra.mxu0 %vm485_vm2, %v1169_v50  ;;  %1246 = vmatprep.mubr.f32.mxu0 %v6135_v0  ;;  %v5686_v50 = vpack.c.bf16 %v1496_v47, %v1488_v45  ;;  %v1543_v27 = vld [vmem:[#allocation2 + $0x4c0] sm:$0xff]  ;;  %v1568_v47 = vld [vmem:[#allocation2 + $0x588] sm:$0xff] }
  0xce   : > { %5585 = vmatprep.subr.msk.mxu0 %vm485_vm2, %v1276_v52  ;;  %5805 = vmatpush1.bf16.msra.mxu1 %v5804_v53  ;;  %v1492_v52 = vld [vmem:[#allocation2 + $0x328] sm:$0xff]  ;;  %v1539_v31 = vld [vmem:[#allocation2 + $0x4a0] sm:$0xff]  ;;  %v5706_v49 = vpack.c.bf16 %v1576_v48, %v1568_v47  ;;  %v1394_v48 = vld [vmem:[#allocation2 + $0x18] sm:$0xff] }
  0xcf   : > { %5807 = vmatprep.subr.bf16.mxu1 %v5806_v54  ;;  %v1500_v53 = vld [vmem:[#allocation2 + $0x368] sm:$0xff]  ;;  %v1491_v54 = vld [vmem:[#allocation2 + $0x320] sm:$0xff] }
  0xd0   : > { %v5814_v55 = vpack.c.bf16 %v1500_v53, %v1492_v52  ;;  %v5816_v57 = vpack.c.bf16 %v1499_v56, %v1491_v54  ;;  %v1547_v32 = vld [vmem:[#allocation2 + $0x4e0] sm:$0xff]  ;;  %v1572_v52 = vld [vmem:[#allocation2 + $0x5a8] sm:$0xff] }
  0xd1   : > { %v5828_v34 = vpack.c.bf16 %v1547_v32, %v1539_v31  ;;  %v1551_v38 = vld [vmem:[#allocation2 + $0x500] sm:$0xff]  ;;  %v1580_v54 = vld [vmem:[#allocation2 + $0x5e8] sm:$0xff] }
  0xd2   : > { %5809 = vmatpush1.bf16.msra.mxu1 %v5808_v59  ;;  %v1512_v59 = vld [vmem:[#allocation2 + $0x3c8] sm:$0xff]  ;;  %v1559_v39 = vld [vmem:[#allocation2 + $0x540] sm:$0xff] }
  0xd3   : > { %5811 = vmatprep.subr.bf16.mxu1 %v5810_v42  ;;  %v5690_v60 = vpack.c.bf16 %v1512_v59, %v1504_v58  ;;  %v1564_v42 = vld [vmem:[#allocation2 + $0x568] sm:$0xff]  ;;  %v1555_v43 = vld [vmem:[#allocation2 + $0x520] sm:$0xff] }
  0xd4   : > { %5582 = vmatmul.mubr.msk.f32.vlgmr.msra.gmra.mrb[0].mxu0 %vm481_vm3, %v5579_v63  ;;  %v1508_v63 = vld [vmem:[#allocation2 + $0x3a8] sm:$0xff]  ;;  %v1563_v44 = vld [vmem:[#allocation2 + $0x560] sm:$0xff]  ;;  %v5830_v45 = vpack.c.bf16 %v1564_v42, %v1556_v40 }
  0xd5   : > { %5586 = vmatpush1.msk.msra.mxu0 %vm485_vm2, %v1275_v62  ;;  %1352 = vmatprep.mubr.f32.mxu0 %v6135_v0  ;;  %v1511_v62 = vld [vmem:[#allocation2 + $0x3c0] sm:$0xff]  ;;  %v5818_v5 = vpack.c.bf16 %v1516_v2, %v1508_v63  ;;  %v1584_v59 = vld [vmem:[#allocation2 + $0x608] sm:$0xff] }
  0xd6   : > { %5663 = vmatprep.subr.bf16.mxu0 %v5662_v1  ;;  %5813 = vmatpush1.bf16.msra.mxu1 %v5812_v46  ;;  %v5692_v1 = vpack.c.bf16 %v1511_v62, %v1503_v61  ;;  %v5832_v46 = vpack.c.bf16 %v1563_v44, %v1555_v43  ;;  %v1579_v56 = vld [vmem:[#allocation2 + $0x5e0] sm:$0xff]  ;;  %v1612_v19 = vld [vmem:[#allocation2 + $0x6e8] sm:$0xff] }
  0xd7   : > { %5815 = vmatprep.subr.bf16.mxu1 %v5814_v55  ;;  %v1571_v55 = vld [vmem:[#allocation2 + $0x5a0] sm:$0xff]  ;;  %v1628_v31 = vld [vmem:[#allocation2 + $0x768] sm:$0xff] }
  0xd8   : > { %v5836_v58 = vpack.c.bf16 %v1579_v56, %v1571_v55  ;;  %v1583_v62 = vld [vmem:[#allocation2 + $0x600] sm:$0xff]  ;;  %v1644_v43 = vld [vmem:[#allocation2 + $0x7e8] sm:$0xff] }
  0xd9   : > { %v1591_v63 = vld [vmem:[#allocation2 + $0x640] sm:$0xff] }
  0xda   : > { %5817 = vmatpush1.bf16.msra.mxu1 %v5816_v57  ;;  %v5834_v57 = vpack.c.bf16 %v1580_v54, %v1572_v52  ;;  %v5712_v2 = vpack.c.bf16 %v1591_v63, %v1583_v62  ;;  %v1603_v20 = vld [vmem:[#allocation2 + $0x6a0] sm:$0xff]  ;;  %v1365_v54 = vpop.permute.xlu0 %1364 }
  0xdb   : > { %5819 = vmatprep.subr.bf16.mxu1 %v5818_v5  ;;  %v1595_v5 = vld [vmem:[#allocation2 + $0x660] sm:$0xff] }
  0xdc   : > { %5587 = vmatmul.mubr.msk.f32.vlgmr.msra.gmra.mrb[0].mxu0 %vm481_vm3, %v5584_v6  ;;  %v5820_v6 = vpack.c.bf16 %v1515_v4, %v1507_v3  ;;  %v1596_v3 = vld [vmem:[#allocation2 + $0x668] sm:$0xff]  ;;  %v1587_v4 = vld [vmem:[#allocation2 + $0x620] sm:$0xff] }
  0xdd   : > { %5665 = vmatpush1.bf16.msra.mxu0 %v5664_v11  ;;  %v1520_v11 = vld [vmem:[#allocation2 + $0x408] sm:$0xff]  ;;  %v1619_v32 = vld [vmem:[#allocation2 + $0x720] sm:$0xff] }
  0xde   : > { %5667 = vmatprep.subr.bf16.mxu0 %v5666_v12  ;;  %v1528_v12 = vld [vmem:[#allocation2 + $0x448] sm:$0xff]  ;;  %5821 = vmatpush1.bf16.msra.mxu1 %v5820_v6  ;;  %v1639_v40 = vld [vmem:[#allocation2 + $0x7c0] sm:$0xff] }
  0xdf   : > { %v5694_v13 = vpack.c.bf16 %v1528_v12, %v1520_v11  ;;  %v5840_v11 = vpack.c.bf16 %v1595_v5, %v1587_v4  ;;  %v1600_v12 = vld [vmem:[#allocation2 + $0x688] sm:$0xff]  ;;  %v1635_v44 = vld [vmem:[#allocation2 + $0x7a0] sm:$0xff] }
  0xe1   : > { %5669 = vmatpush1.bf16.msra.mxu0 %v5668_v17  ;;  %v5696_v17 = vpack.c.bf16 %v1527_v15, %v1519_v14  ;;  %v1599_v15 = vld [vmem:[#allocation2 + $0x680] sm:$0xff] }
  0xe2   : > { %5671 = vmatprep.subr.bf16.mxu0 %v5670_v18  ;;  %v1532_v18 = vld [vmem:[#allocation2 + $0x468] sm:$0xff] }
  0xe3   : > { %v5822_v21 = vpack.c.bf16 %v1532_v18, %v1524_v16  ;;  %v1607_v16 = vld [vmem:[#allocation2 + $0x6c0] sm:$0xff] }
  0xe4   : > { %v5716_v18 = vpack.c.bf16 %v1607_v16, %v1599_v15 }
  0xe5   : > { %5673 = vmatpush1.bf16.msra.mxu0 %v5672_v23  ;;  %v1536_v23 = vld [vmem:[#allocation2 + $0x488] sm:$0xff]  ;;  %5823 = vmatprep.subr.bf16.mxu1 %v5822_v21  ;;  %v1611_v21 = vld [vmem:[#allocation2 + $0x6e0] sm:$0xff] }
  0xe6   : > { %5675 = vmatprep.subr.bf16.mxu0 %v5674_v24  ;;  %v1544_v24 = vld [vmem:[#allocation2 + $0x4c8] sm:$0xff]  ;;  %5825 = vmatpush1.bf16.msra.mxu1 %v5824_v22 }
  0xe7   : > { %v5698_v25 = vpack.c.bf16 %v1544_v24, %v1536_v23  ;;  %v5844_v23 = vpack.c.bf16 %v1611_v21, %v1603_v20  ;;  %v1616_v24 = vld [vmem:[#allocation2 + $0x708] sm:$0xff]  ;;  %v1409_v20 = vld [vmem:[#allocation2 + $0x90] sm:$0xff] }
  0xe8   : > { %v1417_v21 = vld [vmem:[#allocation2 + $0xd0] sm:$0xff] }
  0xe9   : > { %5677 = vmatpush1.bf16.msra.mxu0 %v5676_v29  ;;  %v5700_v29 = vpack.c.bf16 %v1543_v27, %v1535_v26  ;;  %v1615_v27 = vld [vmem:[#allocation2 + $0x700] sm:$0xff] }
  0xea   : > { %5679 = vmatprep.subr.bf16.mxu0 %v5678_v30  ;;  %v1548_v30 = vld [vmem:[#allocation2 + $0x4e8] sm:$0xff] }
  0xed   : > { %5681 = vmatpush1.bf16.msra.mxu0 %v5680_v33  ;;  %v5826_v33 = vpack.c.bf16 %v1548_v30, %v1540_v28  ;;  %v1623_v28 = vld [vmem:[#allocation2 + $0x740] sm:$0xff] }
  0xee   : > { %5683 = vmatprep.subr.bf16.mxu0 %v5682_v37  ;;  %v5702_v37 = vpack.c.bf16 %v1560_v36, %v1552_v35  ;;  %v5720_v30 = vpack.c.bf16 %v1623_v28, %v1615_v27  ;;  %v1632_v36 = vld [vmem:[#allocation2 + $0x788] sm:$0xff]  ;;  %v1433_v27 = vld [vmem:[#allocation2 + $0x150] sm:$0xff]  ;;  %v1442_v28 = vld [vmem:[#allocation2 + $0x198] sm:$0xff] }
  0xef   : > { %5827 = vmatprep.subr.bf16.mxu1 %v5826_v33  ;;  %v1627_v33 = vld [vmem:[#allocation2 + $0x760] sm:$0xff] }
  0xf0   : > { %5829 = vmatpush1.bf16.msra.mxu1 %v5828_v34  ;;  %v5848_v35 = vpack.c.bf16 %v1627_v33, %v1619_v32  ;;  %v1441_v32 = vld [vmem:[#allocation2 + $0x190] sm:$0xff] }
  0xf1   : > { %5685 = vmatpush1.bf16.msra.mxu0 %v5684_v41  ;;  %v5704_v41 = vpack.c.bf16 %v1559_v39, %v1551_v38  ;;  %5831 = vmatprep.subr.bf16.mxu1 %v5830_v45  ;;  %v1631_v39 = vld [vmem:[#allocation2 + $0x780] sm:$0xff]  ;;  %v1449_v33 = vld [vmem:[#allocation2 + $0x1d0] sm:$0xff] }
  0xf2   : > { %5687 = vmatprep.subr.bf16.mxu0 %v5686_v50  ;;  %v1567_v50 = vld [vmem:[#allocation2 + $0x580] sm:$0xff]  ;;  %v5724_v42 = vpack.c.bf16 %v1639_v40, %v1631_v39  ;;  %v1465_v39 = vld [vmem:[#allocation2 + $0x250] sm:$0xff]  ;;  %v1474_v40 = vld [vmem:[#allocation2 + $0x298] sm:$0xff] }
  0xf3   : > { %v1643_v45 = vld [vmem:[#allocation2 + $0x7e0] sm:$0xff] }
  0xf4   : > { %5833 = vmatpush1.bf16.msra.mxu1 %v5832_v46  ;;  %v5852_v47 = vpack.c.bf16 %v1643_v45, %v1635_v44  ;;  %v1473_v44 = vld [vmem:[#allocation2 + $0x290] sm:$0xff] }
  0xf5   : > { %5689 = vmatpush1.bf16.msra.mxu0 %v5688_v51  ;;  %v1575_v51 = vld [vmem:[#allocation2 + $0x5c0] sm:$0xff]  ;;  %5835 = vmatprep.subr.bf16.mxu1 %v5834_v57  ;;  %v1481_v45 = vld [vmem:[#allocation2 + $0x2d0] sm:$0xff] }
  0xf6   : > { %5691 = vmatprep.subr.bf16.mxu0 %v5690_v60  ;;  %v5708_v53 = vpack.c.bf16 %v1575_v51, %v1567_v50  ;;  %v1592_v60 = vld [vmem:[#allocation2 + $0x648] sm:$0xff] }
  0xf7   : > { %v5710_v61 = vpack.c.bf16 %v1592_v60, %v1584_v59 }
  0xf8   : > { %5837 = vmatpush1.bf16.msra.mxu1 %v5836_v58  ;;  %v1373_v58 = vpop.permute.xlu1 %1372 }
  0xf9   : > { %5693 = vmatpush1.bf16.msra.mxu0 %v5692_v1  ;;  %v1588_v1 = vld [vmem:[#allocation2 + $0x628] sm:$0xff] }
  0xfa   : > { %5695 = vmatprep.subr.bf16.mxu0 %v5694_v13  ;;  %v5838_v6 = vpack.c.bf16 %v1596_v3, %v1588_v1  ;;  %v1608_v13 = vld [vmem:[#allocation2 + $0x6c8] sm:$0xff] }
  0xfb   : > { %v5714_v14 = vpack.c.bf16 %v1608_v13, %v1600_v12  ;;  %v1410_v13 = vld [vmem:[#allocation2 + $0x98] sm:$0xff] }
  0xfc   : > { %5839 = vmatprep.subr.bf16.mxu1 %v5838_v6  ;;  %v1393_v6 = vld [vmem:[#allocation2 + $0x10] sm:$0xff] }
  0xfd   : > { %5697 = vmatpush1.bf16.msra.mxu0 %v5696_v17  ;;  %v1604_v17 = vld [vmem:[#allocation2 + $0x6a8] sm:$0xff]  ;;  %5841 = vmatpush1.bf16.msra.mxu1 %v5840_v11  ;;  %v1401_v11 = vld [vmem:[#allocation2 + $0x50] sm:$0xff] }
  0xfe   : > { %5699 = vmatprep.subr.bf16.mxu0 %v5698_v25  ;;  %v5842_v22 = vpack.c.bf16 %v1612_v19, %v1604_v17  ;;  %v1624_v25 = vld [vmem:[#allocation2 + $0x748] sm:$0xff]  ;;  %v5728_v17 = vpack.c.bf16 %v1401_v11, %v1393_v6  ;;  %v1545_v6 = vld [vmem:[#allocation2 + $0x4d0] sm:$0xff]  ;;  %v1554_v11 = vld [vmem:[#allocation2 + $0x518] sm:$0xff] }
  0xff   : > { %v5718_v26 = vpack.c.bf16 %v1624_v25, %v1616_v24  ;;  %v5732_v24 = vpack.c.bf16 %v1417_v21, %v1409_v20  ;;  %v1578_v20 = vld [vmem:[#allocation2 + $0x5d8] sm:$0xff] }
 0x100   : > { %5843 = vmatprep.subr.bf16.mxu1 %v5842_v22  ;;  %v1426_v22 = vld [vmem:[#allocation2 + $0x118] sm:$0xff] }
 0x101   : > { %5701 = vmatpush1.bf16.msra.mxu0 %v5700_v29  ;;  %v1620_v29 = vld [vmem:[#allocation2 + $0x728] sm:$0xff]  ;;  %5845 = vmatpush1.bf16.msra.mxu1 %v5844_v23  ;;  %v1434_v23 = vld [vmem:[#allocation2 + $0x158] sm:$0xff] }
 0x102   : > { %5703 = vmatprep.subr.bf16.mxu0 %v5702_v37  ;;  %v5846_v34 = vpack.c.bf16 %v1628_v31, %v1620_v29  ;;  %v1640_v37 = vld [vmem:[#allocation2 + $0x7c8] sm:$0xff]  ;;  %v5734_v25 = vpack.c.bf16 %v1434_v23, %v1426_v22  ;;  %v1450_v29 = vld [vmem:[#allocation2 + $0x1d8] sm:$0xff]  ;;  %v1569_v23 = vld [vmem:[#allocation2 + $0x590] sm:$0xff] }
 0x103   : > { %v5722_v38 = vpack.c.bf16 %v1640_v37, %v1632_v36  ;;  %v5738_v31 = vpack.c.bf16 %v1450_v29, %v1442_v28  ;;  %v5740_v36 = vpack.c.bf16 %v1449_v33, %v1441_v32  ;;  %v1585_v29 = vld [vmem:[#allocation2 + $0x610] sm:$0xff]  ;;  %v1610_v32 = vld [vmem:[#allocation2 + $0x6d8] sm:$0xff] }
 0x104   : > { %5847 = vmatprep.subr.bf16.mxu1 %v5846_v34  ;;  %v1458_v34 = vld [vmem:[#allocation2 + $0x218] sm:$0xff] }
 0x105   : > { %5705 = vmatpush1.bf16.msra.mxu0 %v5704_v41  ;;  %v1636_v41 = vld [vmem:[#allocation2 + $0x7a8] sm:$0xff]  ;;  %5849 = vmatpush1.bf16.msra.mxu1 %v5848_v35  ;;  %v1466_v35 = vld [vmem:[#allocation2 + $0x258] sm:$0xff] }
 0x106   : > { %5707 = vmatprep.subr.bf16.mxu0 %v5706_v49  ;;  %v5850_v46 = vpack.c.bf16 %v1644_v43, %v1636_v41  ;;  %v1402_v49 = vld [vmem:[#allocation2 + $0x58] sm:$0xff]  ;;  %v5742_v37 = vpack.c.bf16 %v1466_v35, %v1458_v34  ;;  %v1601_v35 = vld [vmem:[#allocation2 + $0x690] sm:$0xff] }
 0x107   : > { %v5726_v50 = vpack.c.bf16 %v1402_v49, %v1394_v48  ;;  %v1482_v41 = vld [vmem:[#allocation2 + $0x2d8] sm:$0xff]  ;;  %v5748_v48 = vpack.c.bf16 %v1481_v45, %v1473_v44 }
 0x108   : > { %5851 = vmatprep.subr.bf16.mxu1 %v5850_v46  ;;  %v5746_v43 = vpack.c.bf16 %v1482_v41, %v1474_v40  ;;  %v1490_v46 = vld [vmem:[#allocation2 + $0x318] sm:$0xff]  ;;  %v1617_v41 = vld [vmem:[#allocation2 + $0x710] sm:$0xff] }
 0x109   : > { %5709 = vmatpush1.bf16.msra.mxu0 %v5708_v53  ;;  %5853 = vmatpush1.bf16.msra.mxu1 %v5852_v47  ;;  %v1498_v47 = vld [vmem:[#allocation2 + $0x358] sm:$0xff] }
 0x10a   : > { %5711 = vmatprep.subr.bf16.mxu0 %v5710_v61  ;;  %v5750_v49 = vpack.c.bf16 %v1498_v47, %v1490_v46  ;;  %v1642_v44 = vld [vmem:[#allocation2 + $0x7d8] sm:$0xff]  ;;  %v1633_v47 = vld [vmem:[#allocation2 + $0x790] sm:$0xff] }
 0x10d   : > { %5713 = vmatpush1.bf16.msra.mxu0 %v5712_v2 }
 0x10e   : > { %5715 = vmatprep.subr.bf16.mxu0 %v5714_v14  ;;  %v1418_v14 = vld [vmem:[#allocation2 + $0xd8] sm:$0xff] }
 0x10f   : > { %v5730_v19 = vpack.c.bf16 %v1418_v14, %v1410_v13 }
 0x111   : > { %5717 = vmatpush1.bf16.msra.mxu0 %v5716_v18 }
 0x112   : > { %5719 = vmatprep.subr.bf16.mxu0 %v5718_v26  ;;  %v1425_v26 = vld [vmem:[#allocation2 + $0x110] sm:$0xff] }
 0x115   : > { %5721 = vmatpush1.bf16.msra.mxu0 %v5720_v30  ;;  %v5736_v30 = vpack.c.bf16 %v1433_v27, %v1425_v26  ;;  %v1594_v26 = vld [vmem:[#allocation2 + $0x658] sm:$0xff] }
 0x116   : > { %5723 = vmatprep.subr.bf16.mxu0 %v5722_v38  ;;  %v1457_v38 = vld [vmem:[#allocation2 + $0x210] sm:$0xff] }
 0x119   : > { %5725 = vmatpush1.bf16.msra.mxu0 %v5724_v42  ;;  %v5744_v42 = vpack.c.bf16 %v1465_v39, %v1457_v38  ;;  %v1626_v38 = vld [vmem:[#allocation2 + $0x758] sm:$0xff] }
 0x11a   : > { %5727 = vmatprep.subr.bf16.mxu0 %v5726_v50  ;;  %v1489_v50 = vld [vmem:[#allocation2 + $0x310] sm:$0xff] }
 0x193   : > { %v638_v51 = vpop.f32.mrb[0].mxu1 }
 0x194   : > { %v640_v52 = vpop.f32.mrb[1].mxu1 }
 0x1af   : > { %v1354_v53 = vpop.f32.mrb[0].mxu0 }
 0x1b0   : > { %v5918_v55 = vadd.f32 %v1354_v53, %v638_v51  ;;  %v1356_v56 = vpop.f32.mrb[1].mxu0  ;;  %v1497_v51 = vld [vmem:[#allocation2 + $0x350] sm:$0xff]  ;;  %v1514_v53 = vld [vmem:[#allocation2 + $0x3d8] sm:$0xff] }
 0x1b1   : > { %v5919_v57 = vadd.f32 %v1356_v56, %v640_v52  ;;  %v1506_v52 = vld [vmem:[#allocation2 + $0x398] sm:$0xff]  ;;  %v1505_v56 = vld [vmem:[#allocation2 + $0x390] sm:$0xff] }
 0x1b2   : > { %v1367_v59 = vmul.f32 %v5918_v55, %v1365_v54  ;;  %v5754_v55 = vpack.c.bf16 %v1514_v53, %v1506_v52  ;;  %v1397_v53 = vld [vmem:[#allocation2 + $0x30] sm:$0xff] }
 0x1b3   : > { %v1368_v60 = vmul.f32 %v5919_v57, %v1365_v54  ;;  %v5752_v54 = vpack.c.bf16 %v1497_v51, %v1489_v50  ;;  %v1513_v57 = vld [vmem:[#allocation2 + $0x3d0] sm:$0xff]  ;;  %v1406_v50 = vld [vmem:[#allocation2 + $0x78] sm:$0xff] }
 0x1b4   : > { %v1375_v61 = vadd.f32 %v1373_v58, %v1367_v59  ;;  %v1530_v59 = vld [vmem:[#allocation2 + $0x458] sm:$0xff] }
 0x1b5   : > { %v1376_v62 = vadd.f32 %v1373_v58, %v1368_v60  ;;  %v1522_v58 = vld [vmem:[#allocation2 + $0x418] sm:$0xff]  ;;  %v5756_v60 = vpack.c.bf16 %v1513_v57, %v1505_v56 }
 0x1b6   : > { %v5588_v63 = vmul.f32 -1.442695, %v1375_v61  ;;  %v1422_v56 = vld [vmem:[#allocation2 + $0xf8] sm:$0xff] }
 0x1b7   : > { %v5589_v1 = vmul.f32 -1.442695, %v1376_v62 }
 0x1b8   : > { %6046 = vpow2.f32 %v5588_v63  ;;  %v1529_v63 = vld [vmem:[#allocation2 + $0x450] sm:$0xff] }
 0x1b9   : > { %6048 = vpow2.f32 %v5589_v1  ;;  %v1538_v1 = vld [vmem:[#allocation2 + $0x498] sm:$0xff] }
 0x1c2   : > { %v6047_v2 = vpop.eup %6046 }
 0x1c3   : > { %v6049_v3 = vpop.eup %6048  ;;  %v1383_v4 = vadd.f32 1.0, %v6047_v2  ;;  %v1546_v2 = vld [vmem:[#allocation2 + $0x4d8] sm:$0xff] }
 0x1c4   : > { %v1384_v5 = vadd.f32 1.0, %v6049_v3 }
 0x1c5   : > { %6050 = vrcp.f32 %v1383_v4  ;;  %v5762_v4 = vpack.c.bf16 %v1546_v2, %v1538_v1  ;;  %v1429_v2 = vld [vmem:[#allocation2 + $0x130] sm:$0xff] }
 0x1c6   : > { %6052 = vrcp.f32 %v1384_v5  ;;  %v1537_v5 = vld [vmem:[#allocation2 + $0x490] sm:$0xff] }
 0x1c7   : > { %v5764_v13 = vpack.c.bf16 %v1545_v6, %v1537_v5  ;;  %v1454_v5 = vld [vmem:[#allocation2 + $0x1f8] sm:$0xff] }
 0x1cf   : > { %v6051_v12 = vpop.eup %6050 }
 0x1d0   : > { %v6053_v15 = vpop.eup %6052  ;;  %v6466_v18 = vmul.f32 %v6051_v12, %v1375_v61  ;;  %v5758_v61 = vpack.c.bf16 %v1530_v59, %v1522_v58  ;;  %v1562_v12 = vld [vmem:[#allocation2 + $0x558] sm:$0xff]  ;;  %v1413_v59 = vld [vmem:[#allocation2 + $0xb0] sm:$0xff] }
 0x1d1   : > { %v6464_v16 = vmul.f32 %v6053_v15, %v1376_v62  ;;  %v1521_v62 = vld [vmem:[#allocation2 + $0x410] sm:$0xff]  ;;  %v5766_v14 = vpack.c.bf16 %v1562_v12, %v1554_v11 }
 0x1d2   : > { %v5760_v3 = vpack.c.bf16 %v1529_v63, %v1521_v62  ;;  %v1553_v15 = vld [vmem:[#allocation2 + $0x510] sm:$0xff]  ;;  %v1438_v62 = vld [vmem:[#allocation2 + $0x178] sm:$0xff] }
 0x1d3   : > { %1711 = vmatprep.mubr.f32.mxu0 %v6464_v16  ;;  %1853 = vmatprep.mubr.f32.mxu1 %v6464_v16  ;;  %v1445_v12 = vld [vmem:[#allocation2 + $0x1b0] sm:$0xff] }
 0x1d4   : > { %1712 = vmatmul.mubr.f32.vlgmr.msra.gmra.mrb[2].mxu0 %v6466_v18  ;;  %1854 = vmatmul.mubr.f32.vlgmr.msra.gmra.mrb[2].mxu1 %v6466_v18 }
 0x1d5   : > { %5729 = vmatpush1.bf16.msra.mxu0 %v5728_v17  ;;  %1782 = vmatprep.mubr.f32.mxu0 %v6464_v16  ;;  %v1561_v17 = vld [vmem:[#allocation2 + $0x550] sm:$0xff] }
 0x1d6   : > { %5731 = vmatprep.subr.bf16.mxu0 %v5730_v19  ;;  %2157 = vmatprep.mubr.f32.mxu1 %v6135_v0  ;;  %v1570_v19 = vld [vmem:[#allocation2 + $0x598] sm:$0xff]  ;;  %v5768_v21 = vpack.c.bf16 %v1561_v17, %v1553_v15 }
 0x1d7   : > { %v5770_v22 = vpack.c.bf16 %v1578_v20, %v1570_v19  ;;  %v1470_v15 = vld [vmem:[#allocation2 + $0x278] sm:$0xff]  ;;  %v1469_v20 = vld [vmem:[#allocation2 + $0x270] sm:$0xff] }
 0x1d9   : > { %5733 = vmatpush1.bf16.msra.mxu0 %v5732_v24  ;;  %v1577_v24 = vld [vmem:[#allocation2 + $0x5d0] sm:$0xff] }
 0x1da   : > { %5735 = vmatprep.subr.bf16.mxu0 %v5734_v25  ;;  %v1586_v25 = vld [vmem:[#allocation2 + $0x618] sm:$0xff]  ;;  %v5772_v27 = vpack.c.bf16 %v1577_v24, %v1569_v23 }
 0x1db   : > { %v5774_v28 = vpack.c.bf16 %v1594_v26, %v1586_v25  ;;  %v1477_v25 = vld [vmem:[#allocation2 + $0x2b0] sm:$0xff] }
 0x1dc   : > { %v1485_v26 = vld [vmem:[#allocation2 + $0x2f0] sm:$0xff] }
 0x1dd   : > { %5737 = vmatpush1.bf16.msra.mxu0 %v5736_v30  ;;  %v1593_v30 = vld [vmem:[#allocation2 + $0x650] sm:$0xff] }
 0x1de   : > { %5739 = vmatprep.subr.bf16.mxu0 %v5738_v31  ;;  %v1602_v31 = vld [vmem:[#allocation2 + $0x698] sm:$0xff]  ;;  %v5776_v33 = vpack.c.bf16 %v1593_v30, %v1585_v29  ;;  %v5876_v29 = vpack.c.bf16 %v1485_v26, %v1477_v25 }
 0x1df   : > { %v5778_v34 = vpack.c.bf16 %v1610_v32, %v1602_v31  ;;  %v1493_v31 = vld [vmem:[#allocation2 + $0x330] sm:$0xff] }
 0x1e0   : > { %v1501_v32 = vld [vmem:[#allocation2 + $0x370] sm:$0xff] }
 0x1e1   : > { %5741 = vmatpush1.bf16.msra.mxu0 %v5740_v36  ;;  %v1609_v36 = vld [vmem:[#allocation2 + $0x6d0] sm:$0xff] }
 0x1e2   : > { %5743 = vmatprep.subr.bf16.mxu0 %v5742_v37  ;;  %v1618_v37 = vld [vmem:[#allocation2 + $0x718] sm:$0xff]  ;;  %v5780_v39 = vpack.c.bf16 %v1609_v36, %v1601_v35  ;;  %v5880_v35 = vpack.c.bf16 %v1501_v32, %v1493_v31 }
 0x1e3   : > { %v5782_v40 = vpack.c.bf16 %v1626_v38, %v1618_v37  ;;  %v1509_v37 = vld [vmem:[#allocation2 + $0x3b0] sm:$0xff] }
 0x1e4   : > { %v1517_v38 = vld [vmem:[#allocation2 + $0x3f0] sm:$0xff] }
 0x1e5   : > { %5745 = vmatpush1.bf16.msra.mxu0 %v5744_v42  ;;  %v1625_v42 = vld [vmem:[#allocation2 + $0x750] sm:$0xff] }
 0x1e6   : > { %5747 = vmatprep.subr.bf16.mxu0 %v5746_v43  ;;  %v1634_v43 = vld [vmem:[#allocation2 + $0x798] sm:$0xff]  ;;  %v5784_v45 = vpack.c.bf16 %v1625_v42, %v1617_v41  ;;  %v5884_v41 = vpack.c.bf16 %v1517_v38, %v1509_v37 }
 0x1e7   : > { %v5786_v46 = vpack.c.bf16 %v1642_v44, %v1634_v43  ;;  %v1525_v43 = vld [vmem:[#allocation2 + $0x430] sm:$0xff] }
 0x1e8   : > { %v1533_v44 = vld [vmem:[#allocation2 + $0x470] sm:$0xff] }
 0x1e9   : > { %5749 = vmatpush1.bf16.msra.mxu0 %v5748_v48  ;;  %v1641_v48 = vld [vmem:[#allocation2 + $0x7d0] sm:$0xff] }
 0x1ea   : > { %5751 = vmatprep.subr.bf16.mxu0 %v5750_v49  ;;  %v1398_v49 = vld [vmem:[#allocation2 + $0x38] sm:$0xff]  ;;  %v5788_v51 = vpack.c.bf16 %v1641_v48, %v1633_v47  ;;  %v5888_v47 = vpack.c.bf16 %v1533_v44, %v1525_v43 }
 0x1eb   : > { %v5854_v52 = vpack.c.bf16 %v1406_v50, %v1398_v49  ;;  %v1541_v49 = vld [vmem:[#allocation2 + $0x4b0] sm:$0xff] }
 0x1ec   : > { %v1549_v50 = vld [vmem:[#allocation2 + $0x4f0] sm:$0xff] }
 0x1ed   : > { %5753 = vmatpush1.bf16.msra.mxu0 %v5752_v54  ;;  %v1405_v54 = vld [vmem:[#allocation2 + $0x70] sm:$0xff] }
 0x1ee   : > { %5755 = vmatprep.subr.bf16.mxu0 %v5754_v55  ;;  %v1414_v55 = vld [vmem:[#allocation2 + $0xb8] sm:$0xff]  ;;  %v5856_v57 = vpack.c.bf16 %v1405_v54, %v1397_v53  ;;  %v5892_v53 = vpack.c.bf16 %v1549_v50, %v1541_v49  ;;  %v6602_v49 = vsub.s32 3, %v6311_v7  ;;  %v6605_v50 = vsub.s32 2, %v6311_v7 }
 0x1ef   : > { %v5858_v58 = vpack.c.bf16 %v1422_v56, %v1414_v55  ;;  %v1557_v55 = vld [vmem:[#allocation2 + $0x530] sm:$0xff] }
 0x1f0   : > { %v1565_v56 = vld [vmem:[#allocation2 + $0x570] sm:$0xff] }
 0x1f1   : > { %5757 = vmatpush1.bf16.msra.mxu0 %v5756_v60  ;;  %v1421_v60 = vld [vmem:[#allocation2 + $0xf0] sm:$0xff] }
 0x1f2   : > { %5759 = vmatprep.subr.bf16.mxu0 %v5758_v61  ;;  %v1430_v61 = vld [vmem:[#allocation2 + $0x138] sm:$0xff]  ;;  %v5860_v63 = vpack.c.bf16 %v1421_v60, %v1413_v59  ;;  %v5896_v59 = vpack.c.bf16 %v1565_v56, %v1557_v55  ;;  %v5592_v56 = vld [vmem:[%s7155_s4 + $0x8] sm:$0xff] }
 0x1f3   : > { %v5862_v1 = vpack.c.bf16 %v1438_v62, %v1430_v61  ;;  %v1573_v61 = vld [vmem:[#allocation2 + $0x5b0] sm:$0xff] }
 0x1f4   : > { %v1581_v62 = vld [vmem:[#allocation2 + $0x5f0] sm:$0xff] }
 0x1f5   : > { %5761 = vmatpush1.bf16.msra.mxu0 %v5760_v3  ;;  %v1437_v3 = vld [vmem:[#allocation2 + $0x170] sm:$0xff] }
 0x1f6   : > { %5763 = vmatprep.subr.bf16.mxu0 %v5762_v4  ;;  %v1446_v4 = vld [vmem:[#allocation2 + $0x1b8] sm:$0xff]  ;;  %v5864_v6 = vpack.c.bf16 %v1437_v3, %v1429_v2  ;;  %v5900_v2 = vpack.c.bf16 %v1581_v62, %v1573_v61  ;;  %v6629_v62 = vsub.s32 7, %v6311_v7 }
 0x1f7   : > { %v5866_v11 = vpack.c.bf16 %v1454_v5, %v1446_v4  ;;  %v1589_v4 = vld [vmem:[#allocation2 + $0x630] sm:$0xff] }
 0x1f8   : > { %v1597_v5 = vld [vmem:[#allocation2 + $0x670] sm:$0xff] }
 0x1f9   : > { %5765 = vmatpush1.bf16.msra.mxu0 %v5764_v13  ;;  %v1453_v13 = vld [vmem:[#allocation2 + $0x1f0] sm:$0xff] }
 0x1fa   : > { %5767 = vmatprep.subr.bf16.mxu0 %v5766_v14  ;;  %v1462_v14 = vld [vmem:[#allocation2 + $0x238] sm:$0xff]  ;;  %v5868_v17 = vpack.c.bf16 %v1453_v13, %v1445_v12  ;;  %v5904_v12 = vpack.c.bf16 %v1597_v5, %v1589_v4  ;;  %v6641_v4 = vsub.s32 6, %v6311_v7 }
 0x1fb   : > { %v5870_v19 = vpack.c.bf16 %v1470_v15, %v1462_v14  ;;  %v1605_v14 = vld [vmem:[#allocation2 + $0x6b0] sm:$0xff] }
 0x1fc   : > { %v1613_v15 = vld [vmem:[#allocation2 + $0x6f0] sm:$0xff] }
 0x1fd   : > { %5769 = vmatpush1.bf16.msra.mxu0 %v5768_v21  ;;  %v1478_v21 = vld [vmem:[#allocation2 + $0x2b8] sm:$0xff] }
 0x1fe   : > { %5771 = vmatprep.subr.bf16.mxu0 %v5770_v22  ;;  %v1486_v22 = vld [vmem:[#allocation2 + $0x2f8] sm:$0xff] }
 0x1ff   : > { %v5874_v24 = vpack.c.bf16 %v1486_v22, %v1478_v21  ;;  %v1621_v21 = vld [vmem:[#allocation2 + $0x730] sm:$0xff] }
 0x200   : > { %v1629_v22 = vld [vmem:[#allocation2 + $0x770] sm:$0xff] }
 0x201   : > { %5773 = vmatpush1.bf16.msra.mxu0 %v5772_v27  ;;  %v1494_v27 = vld [vmem:[#allocation2 + $0x338] sm:$0xff]  ;;  %v5912_v25 = vpack.c.bf16 %v1629_v22, %v1621_v21 }
 0x202   : > { %5775 = vmatprep.subr.bf16.mxu0 %v5774_v28  ;;  %v1502_v28 = vld [vmem:[#allocation2 + $0x378] sm:$0xff] }
 0x203   : > { %v5878_v30 = vpack.c.bf16 %v1502_v28, %v1494_v27  ;;  %v1637_v27 = vld [vmem:[#allocation2 + $0x7b0] sm:$0xff] }
 0x204   : > { %v1645_v28 = vld [vmem:[#allocation2 + $0x7f0] sm:$0xff] }
 0x205   : > { %5777 = vmatpush1.bf16.msra.mxu0 %v5776_v33  ;;  %v1510_v33 = vld [vmem:[#allocation2 + $0x3b8] sm:$0xff] }
 0x206   : > { %5779 = vmatprep.subr.bf16.mxu0 %v5778_v34  ;;  %v1518_v34 = vld [vmem:[#allocation2 + $0x3f8] sm:$0xff] }
 0x207   : > { %v5882_v36 = vpack.c.bf16 %v1518_v34, %v1510_v33 }
 0x209   : > { %5781 = vmatpush1.bf16.msra.mxu0 %v5780_v39  ;;  %v1526_v39 = vld [vmem:[#allocation2 + $0x438] sm:$0xff] }
 0x20a   : > { %5783 = vmatprep.subr.bf16.mxu0 %v5782_v40  ;;  %v1534_v40 = vld [vmem:[#allocation2 + $0x478] sm:$0xff] }
 0x20b   : > { %v5886_v42 = vpack.c.bf16 %v1534_v40, %v1526_v39 }
 0x20d   : > { %5785 = vmatpush1.bf16.msra.mxu0 %v5784_v45  ;;  %v1542_v45 = vld [vmem:[#allocation2 + $0x4b8] sm:$0xff] }
 0x20e   : > { %5787 = vmatprep.subr.bf16.mxu0 %v5786_v46  ;;  %v1550_v46 = vld [vmem:[#allocation2 + $0x4f8] sm:$0xff] }
 0x20f   : > { %v5890_v48 = vpack.c.bf16 %v1550_v46, %v1542_v45 }
 0x211   : > { %5789 = vmatpush1.bf16.msra.mxu0 %v5788_v51  ;;  %v1558_v51 = vld [vmem:[#allocation2 + $0x538] sm:$0xff] }
 0x212   : > { %5855 = vmatprep.subr.bf16.mxu0 %v5854_v52  ;;  %v1566_v52 = vld [vmem:[#allocation2 + $0x578] sm:$0xff] }
 0x213   : > { %v5894_v54 = vpack.c.bf16 %v1566_v52, %v1558_v51 }
 0x214   : > { %1783 = vmatmul.mubr.f32.vlgmr.msra.gmra.mrb[4].mxu0 %v6466_v18 }
 0x215   : > { %5857 = vmatpush1.bf16.msra.mxu0 %v5856_v57  ;;  %1924 = vmatprep.mubr.f32.mxu0 %v6464_v16  ;;  %v1461_v16 = vld [vmem:[#allocation2 + $0x230] sm:$0xff]  ;;  %v1574_v57 = vld [vmem:[#allocation2 + $0x5b8] sm:$0xff] }
 0x216   : > { %5859 = vmatprep.subr.bf16.mxu0 %v5858_v58  ;;  %v5872_v23 = vpack.c.bf16 %v1469_v20, %v1461_v16  ;;  %v1582_v58 = vld [vmem:[#allocation2 + $0x5f8] sm:$0xff]  ;;  %v5908_v16 = vpack.c.bf16 %v1613_v15, %v1605_v14  ;;  %v5209_v14 = vld [vmem:[%s7156_s5] sm:$0xff] }
 0x217   : > { %v5898_v60 = vpack.c.bf16 %v1582_v58, %v1574_v57  ;;  %v6618_v57 = vsub.s32 5, %v6311_v7 }
 0x219   : > { %5861 = vmatpush1.bf16.msra.mxu0 %v5860_v63  ;;  %v1590_v63 = vld [vmem:[#allocation2 + $0x638] sm:$0xff] }
 0x21a   : > { %5863 = vmatprep.subr.bf16.mxu0 %v5862_v1  ;;  %v1598_v1 = vld [vmem:[#allocation2 + $0x678] sm:$0xff] }
 0x21b   : > { %v5902_v3 = vpack.c.bf16 %v1598_v1, %v1590_v63  ;;  %v1956_v1 = vld [vmem:[%s7162_s11] ss:$8 sm:$0xf] }
 0x21d   : > { %5865 = vmatpush1.bf16.msra.mxu0 %v5864_v6  ;;  %v1606_v6 = vld [vmem:[#allocation2 + $0x6b8] sm:$0xff] }
 0x21e   : > { %5867 = vmatprep.subr.bf16.mxu0 %v5866_v11  ;;  %v1614_v11 = vld [vmem:[#allocation2 + $0x6f8] sm:$0xff] }
 0x21f   : > { %v5906_v13 = vpack.c.bf16 %v1614_v11, %v1606_v6 }
 0x221   : > { %5869 = vmatpush1.bf16.msra.mxu0 %v5868_v17  ;;  %v1622_v17 = vld [vmem:[#allocation2 + $0x738] sm:$0xff] }
 0x222   : > { %5871 = vmatprep.subr.bf16.mxu0 %v5870_v19  ;;  %v1630_v19 = vld [vmem:[#allocation2 + $0x778] sm:$0xff] }
 0x223   : > { %v5910_v20 = vpack.c.bf16 %v1630_v19, %v1622_v17 }
 0x225   : > { %5873 = vmatpush1.bf16.msra.mxu0 %v5872_v23  ;;  %v1638_v23 = vld [vmem:[#allocation2 + $0x7b8] sm:$0xff] }
 0x226   : > { %5875 = vmatprep.subr.bf16.mxu0 %v5874_v24  ;;  %v1646_v24 = vld [vmem:[#allocation2 + $0x7f8] sm:$0xff] }
 0x227   : > { %v5914_v26 = vpack.c.bf16 %v1646_v24, %v1638_v23 }
 0x229   : > { %5877 = vmatpush1.bf16.msra.mxu0 %v5876_v29  ;;  %v5916_v29 = vpack.c.bf16 %v1645_v28, %v1637_v27 }
 0x22a   : > { %5879 = vmatprep.subr.bf16.mxu0 %v5878_v30 }
 0x22d   : > { %5881 = vmatpush1.bf16.msra.mxu0 %v5880_v35 }
 0x22e   : > { %5883 = vmatprep.subr.bf16.mxu0 %v5882_v36  ;;  %v5591_v36 = vld [vmem:[%s7162_s11 + $0x1] ss:$8 sm:$0xf0] }
 0x231   : > { %5885 = vmatpush1.bf16.msra.mxu0 %v5884_v41 }
 0x232   : > { %5887 = vmatprep.subr.bf16.mxu0 %v5886_v42 }
 0x235   : > { %5889 = vmatpush1.bf16.msra.mxu0 %v5888_v47 }
 0x236   : > { %5891 = vmatprep.subr.bf16.mxu0 %v5890_v48  ;;  %v5223_v48 = vld [vmem:[%s7157_s6] sm:$0xff] }
 0x239   : > { %5893 = vmatpush1.bf16.msra.mxu0 %v5892_v53 }
 0x23a   : > { %5895 = vmatprep.subr.bf16.mxu0 %v5894_v54 }
 0x23d   : > { %5897 = vmatpush1.bf16.msra.mxu0 %v5896_v59 }
 0x23e   : > { %5899 = vmatprep.subr.bf16.mxu0 %v5898_v60  ;;  %v6623_v60 = vsub.s32 4, %v6311_v7 }
 0x241   : > { %5901 = vmatpush1.bf16.msra.mxu0 %v5900_v2 }
 0x242   : > { %5903 = vmatprep.subr.bf16.mxu0 %v5902_v3  ;;  %v1957_v3 = vld [vmem:[%s7162_s11] ss:$8 sm:$0xf0] }
 0x243   : > { %v6657_v17 = vor.u32 %v1957_v3, %v1956_v1 }
 0x245   : > { %5905 = vmatpush1.bf16.msra.mxu0 %v5904_v12  ;;  %v1967_v24 = vrot.slane %v6657_v17, %v6319_v10 }
 0x246   : > { %5907 = vmatprep.subr.bf16.mxu0 %v5906_v13 }
 0x249   : > { %5909 = vmatpush1.bf16.msra.mxu0 %v5908_v16 }
 0x24a   : > { %5911 = vmatprep.subr.bf16.mxu0 %v5910_v20 }
 0x24d   : > { %5913 = vmatpush1.bf16.msra.mxu0 %v5912_v25 }
 0x24e   : > { %5915 = vmatprep.subr.bf16.mxu0 %v5914_v26 }
 0x251   : > { %5917 = vmatpush1.bf16.msra.mxu0 %v5916_v29 }
 0x254   : > { %1925 = vmatmul.mubr.f32.vlgmr.msra.gmra.mrb[6].mxu0 %v6466_v18  ;;  %v5590_v18 = vld [vmem:[%s7162_s11 + $0x1] ss:$8 sm:$0xf] }
 0x255   : > { %v6499_v37 = vor.u32 %v5591_v36, %v5590_v18 }
 0x257   : > { %v2046_v38 = vrot.slane %v6499_v37, %v6319_v10  ;;  %v2042_v47 = vrot.slane %v6499_v37, %v6316_v9  ;;  %v2054_v55 = vrot.slane %v6499_v37, %v6602_v49  ;;  %v2050_v58 = vrot.slane %v6499_v37, %v6605_v50 }
 0x258   : > { %v2062_v6 = vrot.slane %v6499_v37, %v6618_v57  ;;  %v2058_v12 = vrot.slane %v6499_v37, %v6623_v60  ;;  %v2070_v7 = vrot.slane %v6499_v37, %v6629_v62  ;;  %v2066_v20 = vrot.slane %v6499_v37, %v6641_v4 }
 0x259   : > { %v1963_v37 = vrot.slane %v6657_v17, %v6316_v9 }
 0x2a7   : > { %v6477_v30 = vpop.f32.mrb[2].mxu0  ;;  %v6479_v31 = vpop.f32.mrb[2].mxu1 }
 0x2a8   : > { %v6481_v32 = vpop.f32.mrb[3].mxu1  ;;  %2009 = vrot.lane.b32.xlu1 %v6477_v30, %s6145_s13  ;;  %v6484_v33 = vpop.f32.mrb[3].mxu0 }
 0x2a9   : > { %2011 = vrot.lane.b32.xlu0 %v6484_v33, %s6145_s13 }
 0x2e7   : > { %v6487_v34 = vpop.f32.mrb[4].mxu0 }
 0x2e8   : > { %2013 = vrot.lane.b32.xlu0 %v6487_v34, %s6145_s13  ;;  %v6490_v35 = vpop.f32.mrb[5].mxu0 }
 0x2ec   : > { %2017 = vrot.lane.b32.xlu0 %v6479_v31, %s6145_s13 }
 0x31a   : > { %v6504_v39 = vpop.permute.xlu1 %2009 }
 0x31b   : > { %v6506_v40 = vpop.permute.xlu0 %2011 }
 0x31c   : > { %v2032_v41 = vsel %vm2025_vm10, %v6504_v39, %v6506_v40 }
 0x31d   : > { %v2080_v42 = vmul.f32 %v2046_v38, %v2032_v41 }
 0x31f   : > { %2093 = vmatprep.subr.mxu1 %v2080_v42  ;;  %v1975_v42 = vrot.slane %v6657_v17, %v6602_v49 }
 0x327   : > { %v6512_v43 = vpop.f32.mrb[6].mxu0 }
 0x328   : > { %2021 = vrot.lane.b32.xlu0 %v6512_v43, %s6145_s13  ;;  %v6515_v44 = vpop.f32.mrb[7].mxu0 }
 0x329   : > { %2023 = vrot.lane.b32.xlu1 %v6515_v44, %s6145_s13 }
 0x32c   : > { %1933 = vrot.lane.b32.xlu0 %v6484_v33, %s6146_s18 }
 0x32d   : > { %2015 = vrot.lane.b32.xlu1 %v6490_v35, %s6145_s13 }
 0x330   : > { %1935 = vrot.lane.b32.xlu0 %v6487_v34, %s6146_s18 }
 0x331   : > { %2019 = vrot.lane.b32.xlu1 %v6481_v32, %s6145_s13 }
 0x334   : > { %1939 = vrot.lane.b32.xlu0 %v6479_v31, %s6146_s18 }
 0x335   : > { %1931 = vrot.lane.b32.xlu1 %v6477_v30, %s6146_s18 }
 0x338   : > { %1943 = vrot.lane.b32.xlu0 %v6512_v43, %s6146_s18 }
 0x339   : > { %1945 = vrot.lane.b32.xlu1 %v6515_v44, %s6146_s18 }
 0x33c   : > { %2666 = vrot.lane.b32.xlu0 %v6484_v33, %s6147_s19 }
 0x33d   : > { %1937 = vrot.lane.b32.xlu1 %v6490_v35, %s6146_s18 }
 0x340   : > { %2668 = vrot.lane.b32.xlu0 %v6487_v34, %s6147_s19 }
 0x341   : > { %1941 = vrot.lane.b32.xlu1 %v6481_v32, %s6146_s18 }
 0x344   : > { %2672 = vrot.lane.b32.xlu0 %v6479_v31, %s6147_s19 }
 0x345   : > { %2664 = vrot.lane.b32.xlu1 %v6477_v30, %s6147_s19 }
 0x348   : > { %2676 = vrot.lane.b32.xlu0 %v6512_v43, %s6147_s19 }
 0x349   : > { %2678 = vrot.lane.b32.xlu1 %v6515_v44, %s6147_s19 }
 0x34c   : > { %3041 = vrot.lane.b32.xlu0 %v6484_v33, %s6136_s27 }
 0x34d   : > { %2670 = vrot.lane.b32.xlu1 %v6490_v35, %s6147_s19 }
 0x350   : > { %3043 = vrot.lane.b32.xlu0 %v6487_v34, %s6136_s27 }
 0x351   : > { %2674 = vrot.lane.b32.xlu1 %v6481_v32, %s6147_s19  ;;  %s6151_s19 = smov 126  }
 0x354   : > { %3047 = vrot.lane.b32.xlu0 %v6479_v31, %s6136_s27 }
 0x355   : > { %3039 = vrot.lane.b32.xlu1 %v6477_v30, %s6136_s27 }
 0x358   : > { %3051 = vrot.lane.b32.xlu0 %v6512_v43, %s6136_s27 }
 0x359   : > { %3053 = vrot.lane.b32.xlu1 %v6515_v44, %s6136_s27 }
 0x35a   : > { %v2014_v45 = vpop.permute.xlu0 %2013 }
 0x35b   : > { %v2031_v61 = vsel %vm2025_vm10, %v6506_v40, %v2014_v45 }
 0x35c   : > { %3714 = vrot.lane.b32.xlu0 %v6487_v34, %s6138_s29  ;;  %v2081_v11 = vmul.f32 %v2050_v58, %v2031_v61 }
 0x35d   : > { %3045 = vrot.lane.b32.xlu1 %v6490_v35, %s6136_s27 }
 0x35e   : > { %v2018_v46 = vpop.permute.xlu0 %2017 }
 0x360   : > { %3716 = vrot.lane.b32.xlu0 %v6490_v35, %s6138_s29 }
 0x361   : > { %3049 = vrot.lane.b32.xlu1 %v6481_v32, %s6136_s27 }
 0x364   : > { %3720 = vrot.lane.b32.xlu0 %v6481_v32, %s6138_s29 }
 0x365   : > { %3712 = vrot.lane.b32.xlu1 %v6484_v33, %s6138_s29 }
 0x368   : > { %3724 = vrot.lane.b32.xlu0 %v6515_v44, %s6138_s29 }
 0x369   : > { %3710 = vrot.lane.b32.xlu1 %v6477_v30, %s6138_s29 }
 0x36c   : > { %4088 = vrot.lane.b32.xlu0 %v6487_v34, %s6148_s20 }
 0x36d   : > { %3718 = vrot.lane.b32.xlu1 %v6479_v31, %s6138_s29 }
 0x370   : > { %4090 = vrot.lane.b32.xlu0 %v6490_v35, %s6148_s20 }
 0x371   : > { %3722 = vrot.lane.b32.xlu1 %v6512_v43, %s6138_s29 }
 0x374   : > { %4094 = vrot.lane.b32.xlu0 %v6481_v32, %s6148_s20 }
 0x375   : > { %4086 = vrot.lane.b32.xlu1 %v6484_v33, %s6148_s20 }
 0x378   : > { %4098 = vrot.lane.b32.xlu0 %v6515_v44, %s6148_s20 }
 0x379   : > { %4084 = vrot.lane.b32.xlu1 %v6477_v30, %s6148_s20 }
 0x37c   : > { %4463 = vrot.lane.b32.xlu0 %v6487_v34, %s6149_s23 }
 0x37d   : > { %4092 = vrot.lane.b32.xlu1 %v6479_v31, %s6148_s20 }
 0x380   : > { %4465 = vrot.lane.b32.xlu0 %v6490_v35, %s6149_s23 }
 0x381   : > { %4096 = vrot.lane.b32.xlu1 %v6512_v43, %s6148_s20  ;;  %s6152_s20 = smov 125  }
 0x384   : > { %4469 = vrot.lane.b32.xlu0 %v6481_v32, %s6149_s23 }
 0x385   : > { %4461 = vrot.lane.b32.xlu1 %v6484_v33, %s6149_s23 }
 0x388   : > { %4473 = vrot.lane.b32.xlu0 %v6515_v44, %s6149_s23 }
 0x389   : > { %4459 = vrot.lane.b32.xlu1 %v6477_v30, %s6149_s23 }
 0x38c   : > { %4838 = vrot.lane.b32.xlu0 %v6487_v34, %s6150_s24 }
 0x38d   : > { %4467 = vrot.lane.b32.xlu1 %v6479_v31, %s6149_s23 }
 0x390   : > { %4840 = vrot.lane.b32.xlu0 %v6490_v35, %s6150_s24 }
 0x391   : > { %4471 = vrot.lane.b32.xlu1 %v6512_v43, %s6149_s23  ;;  %s6153_s23 = smov 124  }
 0x394   : > { %4844 = vrot.lane.b32.xlu0 %v6481_v32, %s6150_s24 }
 0x395   : > { %4836 = vrot.lane.b32.xlu1 %v6484_v33, %s6150_s24 }
 0x398   : > { %4848 = vrot.lane.b32.xlu0 %v6515_v44, %s6150_s24 }
 0x399   : > { %4834 = vrot.lane.b32.xlu1 %v6477_v30, %s6150_s24 }
 0x39a   : > { %v2022_v51 = vpop.permute.xlu0 %2021 }
 0x39b   : > { %v2024_v52 = vpop.permute.xlu1 %2023 }
 0x39c   : > { %v2033_v53 = vsel %vm2025_vm10, %v2024_v52, %v6504_v39  ;;  %5226 = vperm.xlu0 %6043, %v5223_v48   ;;  %v2026_v16 = vsel %vm2025_vm10, %v2022_v51, %v2024_v52 }
 0x39d   : > { %v2079_v54 = vmul.f32 %v2042_v47, %v2033_v53  ;;  %4842 = vrot.lane.b32.xlu1 %v6479_v31, %s6150_s24  ;;  %v2086_v27 = vmul.f32 %v2070_v7, %v2026_v16  ;;  %v2008_v47 = vld [vmem:[%s7155_s4] sm:$0xff] }
 0x39e   : > { %v1934_v59 = vpop.permute.xlu0 %1933  ;;  %v5601_v53 = vld [vmem:[%s7162_s11 + $0x2] ss:$8 sm:$0xf] }
 0x39f   : > { %2094 = vmatpush1.msra.mxu1 %v2079_v54  ;;  %v2016_v63 = vpop.permute.xlu1 %2015  ;;  %v5602_v54 = vld [vmem:[%s7162_s11 + $0x2] ss:$8 sm:$0xf0] }
 0x3a0   : > { %v2030_v2 = vsel %vm2025_vm10, %v2014_v45, %v2016_v63  ;;  %5593 = vmatmul.mubr.msk.f32.vlgmr.msra.gmra.mrb[4].mxu1 %vm2089_vm11, %v5592_v56  ;;  %v2029_v15 = vsel %vm2025_vm10, %v2016_v63, %v2018_v46  ;;  %v1971_v45 = vrot.slane %v6657_v17, %v6605_v50  ;;  %v1991_v63 = vrot.slane %v6657_v17, %v6629_v62 }
 0x3a1   : > { %v2082_v5 = vmul.f32 %v2054_v55, %v2030_v2  ;;  %4846 = vrot.lane.b32.xlu1 %v6512_v43, %s6150_s24  ;;  %2228 = vmatprep.mubr.f32.mxu1 %v6135_v0  ;;  %v2083_v25 = vmul.f32 %v2058_v12, %v2029_v15  ;;  %v6709_v2 = vor.u32 %v5602_v54, %v5601_v53  ;;  %s6154_s24 = smov 123  }
 0x3a2   : > { %v1936_v13 = vpop.permute.xlu0 %1935 }
 0x3a3   : > { %2164 = vmatprep.subr.mxu1 %v2082_v5  ;;  %v2020_v19 = vpop.permute.xlu1 %2019  ;;  %v1953_v48 = vsel %vm1947_vm12, %v1934_v59, %v1936_v13 }
 0x3a4   : > { %v2028_v21 = vsel %vm2025_vm10, %v2018_v46, %v2020_v19  ;;  %2165 = vmatpush1.msra.mxu1 %v2081_v11  ;;  %v2027_v22 = vsel %vm2025_vm10, %v2020_v19, %v2022_v51  ;;  %v2002_v58 = vmul.f32 %v1971_v45, %v1953_v48  ;;  %v2725_v48 = vrot.slane %v6709_v2, %v6629_v62 }
 0x3a5   : > { %v2084_v23 = vmul.f32 %v2062_v6, %v2028_v21  ;;  %5212 = vperm.xlu1 %6044, %v5209_v14   ;;  %5594 = vmatmul.mubr.msk.f32.vlgmr.msra.gmra.mrb[6].mxu1 %vm2089_vm11, %v5592_v56  ;;  %v2085_v29 = vmul.f32 %v2066_v20, %v2027_v22  ;;  %v1987_v6 = vrot.slane %v6657_v17, %v6641_v4 }
 0x3a6   : > { %v1940_v26 = vpop.permute.xlu0 %1939  ;;  %2299 = vmatprep.mubr.f32.mxu1 %v6135_v0  ;;  %v2701_v14 = vrot.slane %v6709_v2, %v6319_v10  ;;  %v2697_v22 = vrot.slane %v6709_v2, %v6316_v9 }
 0x3a7   : > { %2235 = vmatprep.subr.mxu1 %v2084_v23  ;;  %v1932_v28 = vpop.permute.xlu1 %1931 }
 0x3a8   : > { %v1954_v18 = vsel %vm1947_vm12, %v1932_v28, %v1934_v59  ;;  %2236 = vmatpush1.msra.mxu1 %v2083_v25  ;;  %v1979_v59 = vrot.slane %v6657_v17, %v6623_v60 }
 0x3a9   : > { %v2001_v36 = vmul.f32 %v1967_v24, %v1954_v18  ;;  %5595 = vmatmul.mubr.msk.f32.vlgmr.msra.gmra.mrb[8].mxu1 %vm2089_vm11, %v5592_v56  ;;  %2306 = vmatprep.subr.mxu1 %v2086_v27  ;;  %v2709_v27 = vrot.slane %v6709_v2, %v6602_v49  ;;  %v5603_v18 = vld [vmem:[%s7155_s4 + $0x10] sm:$0xff] }
 0x3aa   : > { %v1944_v38 = vpop.permute.xlu0 %1943  ;;  %2307 = vmatpush1.msra.mxu1 %v2085_v29  ;;  %2370 = vmatprep.mubr.f32.mxu1 %v6135_v0 }
 0x3ab   : > { %2380 = vmatprep.subr.mxu1 %v2001_v36  ;;  %v1946_v39 = vpop.permute.xlu1 %1945 }
 0x3ac   : > { %v1955_v40 = vsel %vm1947_vm12, %v1946_v39, %v1932_v28  ;;  %v1948_v5 = vsel %vm1947_vm12, %v1944_v38, %v1946_v39  ;;  %v2705_v28 = vrot.slane %v6709_v2, %v6605_v50  ;;  %v5608_v39 = vld [vmem:[%s7162_s11 + $0x3] ss:$8 sm:$0xf] }
 0x3ad   : > { %v2000_v41 = vmul.f32 %v1963_v37, %v1955_v40  ;;  %5596 = vmatmul.mubr.msk.f32.vlgmr.msra.gmra.mrb[10].mxu1 %vm2089_vm11, %v5592_v56  ;;  %v1983_v56 = vrot.slane %v6657_v17, %v6618_v57  ;;  %v2007_v19 = vmul.f32 %v1991_v63, %v1948_v5  ;;  %v5609_v40 = vld [vmem:[%s7162_s11 + $0x3] ss:$8 sm:$0xf0] }
 0x3ae   : > { %v2667_v46 = vpop.permute.xlu0 %2666  ;;  %2444 = vmatprep.mubr.f32.mxu1 %v6135_v0 }
 0x3af   : > { %2381 = vmatpush1.msra.mxu1 %v2000_v41  ;;  %v1938_v51 = vpop.permute.xlu1 %1937 }
 0x3b0   : > { %v1952_v52 = vsel %vm1947_vm12, %v1936_v13, %v1938_v51  ;;  %v1951_v1 = vsel %vm1947_vm12, %v1938_v51, %v1940_v26 }
 0x3b1   : > { %v2003_v55 = vmul.f32 %v1975_v42, %v1952_v52  ;;  %5597 = vmatmul.mubr.msk.f32.vlgmr.msra.gmra.mrb[4].mxu1 %vm2089_vm11, %v2008_v47  ;;  %v2004_v7 = vmul.f32 %v1979_v59, %v1951_v1  ;;  %v2717_v42 = vrot.slane %v6709_v2, %v6618_v57  ;;  %v6761_v52 = vor.u32 %v5609_v40, %v5608_v39 }
 0x3b2   : > { %v2669_v61 = vpop.permute.xlu0 %2668  ;;  %2515 = vmatprep.mubr.f32.mxu1 %v6135_v0 }
 0x3b3   : > { %2451 = vmatprep.subr.mxu1 %v2003_v55  ;;  %v1942_v3 = vpop.permute.xlu1 %1941  ;;  %v2686_v36 = vsel %vm2680_vm13, %v2667_v46, %v2669_v61  ;;  %v2721_v55 = vrot.slane %v6709_v2, %v6641_v4 }
 0x3b4   : > { %v1950_v11 = vsel %vm1947_vm12, %v1940_v26, %v1942_v3  ;;  %2452 = vmatpush1.msra.mxu1 %v2002_v58  ;;  %v1949_v12 = vsel %vm1947_vm12, %v1942_v3, %v1944_v38  ;;  %v2736_v45 = vmul.f32 %v2705_v28, %v2686_v36 }
 0x3b5   : > { %v2005_v13 = vmul.f32 %v1983_v56, %v1950_v11  ;;  %5598 = vmatmul.mubr.msk.f32.vlgmr.msra.gmra.mrb[6].mxu1 %vm2089_vm11, %v2008_v47  ;;  %v2006_v16 = vmul.f32 %v1987_v6, %v1949_v12  ;;  %v3071_v12 = vrot.slane %v6761_v52, %v6316_v9 }
 0x3b6   : > { %v2673_v15 = vpop.permute.xlu0 %2672  ;;  %2586 = vmatprep.mubr.f32.mxu1 %v6135_v0 }
 0x3b7   : > { %2522 = vmatprep.subr.mxu1 %v2005_v13  ;;  %v2665_v17 = vpop.permute.xlu1 %2664 }
 0x3b8   : > { %v2687_v20 = vsel %vm2680_vm13, %v2665_v17, %v2667_v46  ;;  %2523 = vmatpush1.msra.mxu1 %v2004_v7  ;;  %v2713_v46 = vrot.slane %v6709_v2, %v6623_v60 }
 0x3b9   : > { %v2735_v21 = vmul.f32 %v2701_v14, %v2687_v20  ;;  %5599 = vmatmul.mubr.msk.f32.vlgmr.msra.gmra.mrb[8].mxu1 %vm2089_vm11, %v2008_v47  ;;  %2593 = vmatprep.subr.mxu1 %v2007_v19  ;;  %v3083_v19 = vrot.slane %v6761_v52, %v6602_v49  ;;  %v5610_v20 = vld [vmem:[%s7155_s4 + $0x18] sm:$0xff] }
 0x3ba   : > { %v2677_v23 = vpop.permute.xlu0 %2676  ;;  %2594 = vmatpush1.msra.mxu1 %v2006_v16  ;;  %2657 = vmatprep.mubr.f32.mxu1 %v6135_v0 }
 0x3bb   : > { %2747 = vmatprep.subr.mxu1 %v2735_v21  ;;  %v2679_v24 = vpop.permute.xlu1 %2678 }
 0x3bc   : > { %v2688_v25 = vsel %vm2680_vm13, %v2679_v24, %v2665_v17  ;;  %v2681_v54 = vsel %vm2680_vm13, %v2677_v23, %v2679_v24  ;;  %v3079_v17 = vrot.slane %v6761_v52, %v6605_v50 }
 0x3bd   : > { %v2734_v26 = vmul.f32 %v2697_v22, %v2688_v25  ;;  %5600 = vmatmul.mubr.msk.f32.vlgmr.msra.gmra.mrb[10].mxu1 %vm2089_vm11, %v2008_v47  ;;  %v2741_v3 = vmul.f32 %v2725_v48, %v2681_v54  ;;  %v3091_v25 = vrot.slane %v6761_v52, %v6618_v57  ;;  %v5615_v54 = vld [vmem:[%s7155_s4 + $0x20] sm:$0xff] }
 0x3be   : > { %v3042_v29 = vpop.permute.xlu0 %3041  ;;  %2811 = vmatprep.mubr.f32.mxu1 %v6135_v0 }
 0x3bf   : > { %2748 = vmatpush1.msra.mxu1 %v2734_v26  ;;  %v2671_v37 = vpop.permute.xlu1 %2670 }
 0x3c0   : > { %v2685_v38 = vsel %vm2680_vm13, %v2669_v61, %v2671_v37  ;;  %v2684_v51 = vsel %vm2680_vm13, %v2671_v37, %v2673_v15  ;;  %v3075_v61 = vrot.slane %v6761_v52, %v6319_v10 }
 0x3c1   : > { %v2737_v41 = vmul.f32 %v2709_v27, %v2685_v38  ;;  %5604 = vmatmul.mubr.msk.f32.vlgmr.msra.gmra.mrb[4].mxu1 %vm2089_vm11, %v5603_v18  ;;  %v2738_v63 = vmul.f32 %v2713_v46, %v2684_v51  ;;  %v3087_v27 = vrot.slane %v6761_v52, %v6623_v60  ;;  %v3095_v38 = vrot.slane %v6761_v52, %v6641_v4 }
 0x3c2   : > { %v3044_v47 = vpop.permute.xlu0 %3043  ;;  %2882 = vmatprep.mubr.f32.mxu1 %v6135_v0 }
 0x3c3   : > { %2818 = vmatprep.subr.mxu1 %v2737_v41  ;;  %v2675_v53 = vpop.permute.xlu1 %2674  ;;  %v3060_v21 = vsel %vm753_vm0, %v3042_v29, %v3044_v47 }
 0x3c4   : > { %v2683_v56 = vsel %vm2680_vm13, %v2673_v15, %v2675_v53  ;;  %2819 = vmatpush1.msra.mxu1 %v2736_v45  ;;  %v2682_v58 = vsel %vm2680_vm13, %v2675_v53, %v2677_v23  ;;  %v3110_v26 = vmul.f32 %v3079_v17, %v3060_v21 }
 0x3c5   : > { %v2739_v59 = vmul.f32 %v2717_v42, %v2683_v56  ;;  %5605 = vmatmul.mubr.msk.f32.vlgmr.msra.gmra.mrb[6].mxu1 %vm2089_vm11, %v5603_v18  ;;  %v2740_v5 = vmul.f32 %v2721_v55, %v2682_v58  ;;  %v5620_v56 = vld [vmem:[%s7162_s11 + $0x5] ss:$8 sm:$0xf] }
 0x3c6   : > { %v3048_v1 = vpop.permute.xlu0 %3047  ;;  %2953 = vmatprep.mubr.f32.mxu1 %v6135_v0  ;;  %v5621_v58 = vld [vmem:[%s7162_s11 + $0x5] ss:$8 sm:$0xf0] }
 0x3c7   : > { %2889 = vmatprep.subr.mxu1 %v2739_v59  ;;  %v3040_v2 = vpop.permute.xlu1 %3039  ;;  %v6845_v59 = vor.u32 %v5621_v58, %v5620_v56 }
 0x3c8   : > { %v3061_v6 = vsel %vm753_vm0, %v3040_v2, %v3042_v29  ;;  %2890 = vmatpush1.msra.mxu1 %v2738_v63  ;;  %v3099_v29 = vrot.slane %v6761_v52, %v6629_v62 }
 0x3c9   : > { %v3109_v11 = vmul.f32 %v3075_v61, %v3061_v6  ;;  %5606 = vmatmul.mubr.msk.f32.vlgmr.msra.gmra.mrb[8].mxu1 %vm2089_vm11, %v5603_v18  ;;  %2960 = vmatprep.subr.mxu1 %v2741_v3  ;;  %v3762_v21 = vrot.slane %v6845_v59, %v6618_v57 }
 0x3ca   : > { %v3052_v13 = vpop.permute.xlu0 %3051  ;;  %2961 = vmatpush1.msra.mxu1 %v2740_v5  ;;  %3024 = vmatprep.mubr.f32.mxu1 %v6135_v0  ;;  %v3742_v5 = vrot.slane %v6845_v59, %v6316_v9 }
 0x3cb   : > { %3121 = vmatprep.subr.mxu1 %v3109_v11  ;;  %v3054_v14 = vpop.permute.xlu1 %3053 }
 0x3cc   : > { %v3062_v7 = vsel %vm753_vm0, %v3054_v14, %v3040_v2  ;;  %v3055_v37 = vsel %vm753_vm0, %v3052_v13, %v3054_v14 }
 0x3cd   : > { %v3108_v15 = vmul.f32 %v3071_v12, %v3062_v7  ;;  %5607 = vmatmul.mubr.msk.f32.vlgmr.msra.gmra.mrb[10].mxu1 %vm2089_vm11, %v5603_v18  ;;  %v3115_v46 = vmul.f32 %v3099_v29, %v3055_v37  ;;  %v3754_v12 = vrot.slane %v6845_v59, %v6602_v49  ;;  %v3770_v29 = vrot.slane %v6845_v59, %v6629_v62 }
 0x3ce   : > { %v6788_v16 = vpop.permute.xlu0 %3714  ;;  %3185 = vmatprep.mubr.f32.mxu1 %v6135_v0 }
 0x3cf   : > { %3122 = vmatpush1.msra.mxu1 %v3108_v15  ;;  %v3046_v22 = vpop.permute.xlu1 %3045  ;;  %v3750_v15 = vrot.slane %v6845_v59, %v6605_v50 }
 0x3d0   : > { %v3059_v23 = vsel %vm753_vm0, %v3044_v47, %v3046_v22  ;;  %v3058_v18 = vsel %vm753_vm0, %v3046_v22, %v3048_v1 }
 0x3d1   : > { %v3111_v24 = vmul.f32 %v3083_v19, %v3059_v23  ;;  %5611 = vmatmul.mubr.msk.f32.vlgmr.msra.gmra.mrb[4].mxu1 %vm2089_vm11, %v5610_v20  ;;  %v3112_v42 = vmul.f32 %v3087_v27, %v3058_v18  ;;  %v5622_v23 = vld [vmem:[%s7155_s4 + $0x28] sm:$0xff] }
 0x3d2   : > { %v6803_v28 = vpop.permute.xlu0 %3716  ;;  %3256 = vmatprep.mubr.f32.mxu1 %v6135_v0  ;;  %v5627_v27 = vld [vmem:[%s7162_s11 + $0x6] ss:$8 sm:$0xf] }
 0x3d3   : > { %3192 = vmatprep.subr.mxu1 %v3111_v24  ;;  %v3050_v36 = vpop.permute.xlu1 %3049  ;;  %v3730_v17 = vsel %vm941_vm4, %v6788_v16, %v6803_v28 }
 0x3d4   : > { %v3057_v39 = vsel %vm753_vm0, %v3048_v1, %v3050_v36  ;;  %3193 = vmatpush1.msra.mxu1 %v3110_v26  ;;  %v3056_v40 = vsel %vm753_vm0, %v3050_v36, %v3052_v13  ;;  %v3746_v1 = vrot.slane %v6845_v59, %v6319_v10  ;;  %v3758_v26 = vrot.slane %v6845_v59, %v6623_v60 }
 0x3d5   : > { %v3113_v41 = vmul.f32 %v3091_v25, %v3057_v39  ;;  %5612 = vmatmul.mubr.msk.f32.vlgmr.msra.gmra.mrb[6].mxu1 %vm2089_vm11, %v5610_v20  ;;  %v3114_v48 = vmul.f32 %v3095_v38, %v3056_v40  ;;  %v3781_v25 = vmul.f32 %v3750_v15, %v3730_v17  ;;  %v5635_v17 = vld [vmem:[%s7162_s11 + $0x7] ss:$8 sm:$0xf0]  ;;  %vm4850_vm0 = vcmp.lt.s32.totalorder %v6313_v8, 95 }
 0x3d6   : > { %v6819_v45 = vpop.permute.xlu0 %3720  ;;  %3327 = vmatprep.mubr.f32.mxu1 %v6135_v0 }
 0x3d7   : > { %3263 = vmatprep.subr.mxu1 %v3113_v41  ;;  %v3713_v47 = vpop.permute.xlu1 %3712  ;;  %v3766_v41 = vrot.slane %v6845_v59, %v6641_v4 }
 0x3d8   : > { %3264 = vmatpush1.msra.mxu1 %v3112_v42  ;;  %v3731_v3 = vsel %vm941_vm4, %v3713_v47, %v6788_v16 }
 0x3d9   : > { %5613 = vmatmul.mubr.msk.f32.vlgmr.msra.gmra.mrb[8].mxu1 %vm2089_vm11, %v5610_v20  ;;  %3334 = vmatprep.subr.mxu1 %v3115_v46  ;;  %v3780_v6 = vmul.f32 %v3746_v1, %v3731_v3 }
 0x3da   : > { %v6823_v51 = vpop.permute.xlu0 %3724  ;;  %3335 = vmatpush1.msra.mxu1 %v3114_v48  ;;  %3398 = vmatprep.mubr.f32.mxu1 %v6135_v0 }
 0x3db   : > { %3418 = vmatprep.subr.mxu1 %v6484_v33  ;;  %v3711_v52 = vpop.permute.xlu1 %3710 }
 0x3dc   : > { %v3732_v11 = vsel %vm941_vm4, %v3711_v52, %v3713_v47  ;;  %v3733_v37 = vsel %vm941_vm4, %v6823_v51, %v3711_v52 }
 0x3dd   : > { %5614 = vmatmul.mubr.msk.f32.vlgmr.msra.gmra.mrb[10].mxu1 %vm2089_vm11, %v5610_v20  ;;  %v3779_v19 = vmul.f32 %v3742_v5, %v3732_v11  ;;  %v3786_v42 = vmul.f32 %v3770_v29, %v3733_v37 }
 0x3de   : > { %3419 = vmatpush1.msra.mxu1 %v6477_v30  ;;  %v6829_v53 = vpop.permute.xlu0 %4088  ;;  %3482 = vmatprep.mubr.f32.mxu1 %v6135_v0 }
 0x3df   : > { %3489 = vmatprep.subr.mxu1 %v6490_v35  ;;  %v3719_v55 = vpop.permute.xlu1 %3718 }
 0x3e0   : > { %v3729_v14 = vsel %vm941_vm4, %v6803_v28, %v3719_v55  ;;  %v5628_v28 = vld [vmem:[%s7162_s11 + $0x6] ss:$8 sm:$0xf0]  ;;  %v3728_v18 = vsel %vm941_vm4, %v3719_v55, %v6819_v45 }
 0x3e1   : > { %5616 = vmatmul.mubr.msk.f32.vlgmr.msra.gmra.mrb[4].mxu1 %vm2089_vm11, %v5615_v54  ;;  %v3782_v20 = vmul.f32 %v3754_v12, %v3729_v14  ;;  %v6911_v38 = vor.u32 %v5628_v28, %v5627_v27  ;;  %v3783_v40 = vmul.f32 %v3758_v26, %v3728_v18  ;;  %v5629_v14 = vld [vmem:[%s7155_s4 + $0x30] sm:$0xff] }
 0x3e2   : > { %3490 = vmatpush1.msra.mxu1 %v6487_v34  ;;  %3553 = vmatprep.mubr.f32.mxu1 %v6135_v0  ;;  %v6847_v61 = vpop.permute.xlu0 %4090 }
 0x3e3   : > { %3560 = vmatprep.subr.mxu1 %v6481_v32  ;;  %v3723_v63 = vpop.permute.xlu1 %3722  ;;  %v4121_v46 = vrot.slane %v6911_v38, %v6319_v10  ;;  %v4129_v58 = vrot.slane %v6911_v38, %v6602_v49  ;;  %v4125_v3 = vrot.slane %v6911_v38, %v6605_v50  ;;  %v4105_v5 = vsel %vm4100_vm14, %v6829_v53, %v6847_v61 }
 0x3e4   : > { %v3727_v22 = vsel %vm941_vm4, %v6819_v45, %v3723_v63  ;;  %v3726_v45 = vsel %vm941_vm4, %v3723_v63, %v6823_v51  ;;  %v4117_v51 = vrot.slane %v6911_v38, %v6316_v9  ;;  %v4137_v11 = vrot.slane %v6911_v38, %v6618_v57 }
 0x3e5   : > { %5617 = vmatmul.mubr.msk.f32.vlgmr.msra.gmra.mrb[6].mxu1 %vm2089_vm11, %v5615_v54  ;;  %v3784_v36 = vmul.f32 %v3762_v21, %v3727_v22 }
 0x3e6   : > { %3561 = vmatpush1.msra.mxu1 %v6479_v31  ;;  %3624 = vmatprep.mubr.f32.mxu1 %v6135_v0  ;;  %v6865_v13 = vpop.permute.xlu0 %4094 }
 0x3e7   : > { %3631 = vmatprep.subr.mxu1 %v6515_v44  ;;  %v4087_v2 = vpop.permute.xlu1 %4086 }
 0x3e8   : > { %v4106_v48 = vsel %vm4100_vm14, %v4087_v2, %v6829_v53  ;;  %v4156_v53 = vmul.f32 %v4125_v3, %v4105_v5  ;;  %v5642_v3 = vld [vmem:[%s7162_s11 + $0x40] ss:$8 sm:$0xf0] }
 0x3e9   : > { %5618 = vmatmul.mubr.msk.f32.vlgmr.msra.gmra.mrb[8].mxu1 %vm2089_vm11, %v5615_v54  ;;  %v4155_v55 = vmul.f32 %v4121_v46, %v4106_v48 }
 0x3ea   : > { %3632 = vmatpush1.msra.mxu1 %v6512_v43  ;;  %3695 = vmatprep.mubr.f32.mxu1 %v6135_v0  ;;  %v6891_v24 = vpop.permute.xlu0 %4098 }
 0x3eb   : > { %3792 = vmatprep.subr.mxu1 %v3780_v6  ;;  %v6873_v7 = vpop.permute.xlu1 %4084 }
 0x3ec   : > { %v4107_v56 = vsel %vm4100_vm14, %v6873_v7, %v4087_v2 }
 0x3ed   : > { %5619 = vmatmul.mubr.msk.f32.vlgmr.msra.gmra.mrb[10].mxu1 %vm2089_vm11, %v5615_v54  ;;  %v3785_v54 = vmul.f32 %v3766_v41, %v3726_v45  ;;  %v4154_v2 = vmul.f32 %v4117_v51, %v4107_v56  ;;  %v5636_v56 = vld [vmem:[%s7155_s4 + $0x38] sm:$0xff] }
 0x3ee   : > { %3793 = vmatpush1.msra.mxu1 %v3779_v19  ;;  %3856 = vmatprep.mubr.f32.mxu1 %v6135_v0  ;;  %v6921_v47 = vpop.permute.xlu0 %4463  ;;  %v5634_v19 = vld [vmem:[%s7162_s11 + $0x7] ss:$8 sm:$0xf] }
 0x3ef   : > { %3863 = vmatprep.subr.mxu1 %v3782_v20  ;;  %v4093_v16 = vpop.permute.xlu1 %4092  ;;  %v4145_v20 = vrot.slane %v6911_v38, %v6629_v62  ;;  %v6977_v26 = vor.u32 %v5635_v17, %v5634_v19 }
 0x3f0   : > { %v4104_v59 = vsel %vm4100_vm14, %v6847_v61, %v4093_v16  ;;  %v4133_v61 = vrot.slane %v6911_v38, %v6623_v60  ;;  %v4103_v21 = vsel %vm4100_vm14, %v4093_v16, %v6865_v13 }
 0x3f1   : > { %5623 = vmatmul.mubr.msk.f32.vlgmr.msra.gmra.mrb[4].mxu1 %vm2089_vm11, %v5622_v23  ;;  %v4157_v6 = vmul.f32 %v4129_v58, %v4104_v59  ;;  %v4500_v45 = vrot.slane %v6977_v26, %v6605_v50  ;;  %v4512_v51 = vrot.slane %v6977_v26, %v6618_v57  ;;  %v4508_v59 = vrot.slane %v6977_v26, %v6623_v60 }
 0x3f2   : > { %3864 = vmatpush1.msra.mxu1 %v3781_v25  ;;  %3927 = vmatprep.mubr.f32.mxu1 %v6135_v0  ;;  %v4466_v63 = vpop.permute.xlu0 %4465  ;;  %v4108_v25 = vsel %vm4100_vm14, %v6891_v24, %v6873_v7  ;;  %v4158_v28 = vmul.f32 %v4133_v61, %v4103_v21  ;;  %v4496_v7 = vrot.slane %v6977_v26, %v6319_v10 }
 0x3f3   : > { %3934 = vmatprep.subr.mxu1 %v3784_v36  ;;  %v4097_v39 = vpop.permute.xlu1 %4096  ;;  %v4161_v16 = vmul.f32 %v4145_v20, %v4108_v25  ;;  %v4480_v48 = vsel %vm4475_vm15, %v6921_v47, %v4466_v63  ;;  %v4516_v61 = vrot.slane %v6977_v26, %v6641_v4 }
 0x3f4   : > { %v4102_v12 = vsel %vm4100_vm14, %v6865_v13, %v4097_v39  ;;  %v4141_v13 = vrot.slane %v6911_v38, %v6641_v4  ;;  %v4101_v29 = vsel %vm4100_vm14, %v4097_v39, %v6891_v24  ;;  %v4492_v38 = vrot.slane %v6977_v26, %v6316_v9 }
 0x3f5   : > { %5624 = vmatmul.mubr.msk.f32.vlgmr.msra.gmra.mrb[6].mxu1 %vm2089_vm11, %v5622_v23  ;;  %v4159_v22 = vmul.f32 %v4137_v11, %v4102_v12  ;;  %v4504_v39 = vrot.slane %v6977_v26, %v6602_v49 }
 0x3f6   : > { %3935 = vmatpush1.msra.mxu1 %v3783_v40  ;;  %3998 = vmatprep.mubr.f32.mxu1 %v6135_v0  ;;  %v4160_v37 = vmul.f32 %v4141_v13, %v4101_v29 }
 0x3f7   : > { %4005 = vmatprep.subr.mxu1 %v3786_v42  ;;  %v4462_v52 = vpop.permute.xlu1 %4461 }
 0x3f8   : > { %v4481_v18 = vsel %vm4475_vm15, %v4462_v52, %v6921_v47  ;;  %v4531_v47 = vmul.f32 %v4500_v45, %v4480_v48 }
 0x3f9   : > { %5625 = vmatmul.mubr.msk.f32.vlgmr.msra.gmra.mrb[8].mxu1 %vm2089_vm11, %v5622_v23  ;;  %v4530_v40 = vmul.f32 %v4496_v7, %v4481_v18 }
 0x3fa   : > { %4006 = vmatpush1.msra.mxu1 %v3785_v54  ;;  %4069 = vmatprep.mubr.f32.mxu1 %v6135_v0 }
 0x3fb   : > { %4167 = vmatprep.subr.mxu1 %v4155_v55  ;;  %v6940_v1 = vpop.permute.xlu1 %4459 }
 0x3fc   : > { %v4482_v24 = vsel %vm4475_vm15, %v6940_v1, %v4462_v52 }
 0x3fd   : > { %5626 = vmatmul.mubr.msk.f32.vlgmr.msra.gmra.mrb[10].mxu1 %vm2089_vm11, %v5622_v23  ;;  %v4470_v23 = vpop.permute.xlu0 %4469  ;;  %v4529_v46 = vmul.f32 %v4492_v38, %v4482_v24  ;;  %v5643_v38 = vld [vmem:[%s7155_s4 + $0x40] sm:$0xff] }
 0x3fe   : > { %4168 = vmatpush1.msra.mxu1 %v4154_v2  ;;  %4231 = vmatprep.mubr.f32.mxu1 %v6135_v0  ;;  %v4520_v2 = vrot.slane %v6977_v26, %v6629_v62 }
 0x3ff   : > { %4238 = vmatprep.subr.mxu1 %v4157_v6  ;;  %v4468_v15 = vpop.permute.xlu1 %4467 }
 0x400   : > { %v4479_v42 = vsel %vm4475_vm15, %v4466_v63, %v4468_v15  ;;  %v5641_v63 = vld [vmem:[%s7162_s11 + $0x40] ss:$8 sm:$0xf]  ;;  %v4478_v5 = vsel %vm4475_vm15, %v4468_v15, %v4470_v23 }
 0x401   : > { %5630 = vmatmul.mubr.msk.f32.vlgmr.msra.gmra.mrb[4].mxu1 %vm2089_vm11, %v5629_v14  ;;  %v4474_v36 = vpop.permute.xlu0 %4473  ;;  %v4532_v54 = vmul.f32 %v4504_v39, %v4479_v42  ;;  %v4862_v12 = vor.u32 %v5642_v3, %v5641_v63 }
 0x402   : > { %4239 = vmatpush1.msra.mxu1 %v4156_v53  ;;  %4302 = vmatprep.mubr.f32.mxu1 %v6135_v0  ;;  %v4483_v11 = vsel %vm4475_vm15, %v4474_v36, %v6940_v1  ;;  %v4533_v53 = vmul.f32 %v4508_v59, %v4478_v5 }
 0x403   : > { %4309 = vmatprep.subr.mxu1 %v4159_v22  ;;  %v4472_v27 = vpop.permute.xlu1 %4471  ;;  %v4536_v19 = vmul.f32 %v4520_v2, %v4483_v11  ;;  %v4871_v17 = vrot.slane %v4862_v12, %v6319_v10  ;;  %v4867_v22 = vrot.slane %v4862_v12, %v6316_v9  ;;  %v4883_v39 = vrot.slane %v4862_v12, %v6623_v60 }
 0x404   : > { %v4477_v55 = vsel %vm4475_vm15, %v4470_v23, %v4472_v27  ;;  %v4476_v15 = vsel %vm4475_vm15, %v4472_v27, %v4474_v36  ;;  %v4879_v27 = vrot.slane %v4862_v12, %v6602_v49  ;;  %v4887_v36 = vrot.slane %v4862_v12, %v6618_v57 }
 0x405   : > { %5631 = vmatmul.mubr.msk.f32.vlgmr.msra.gmra.mrb[6].mxu1 %vm2089_vm11, %v5629_v14  ;;  %v4839_v52 = vpop.permute.xlu0 %4838  ;;  %v4534_v6 = vmul.f32 %v4512_v51, %v4477_v55  ;;  %v4535_v21 = vmul.f32 %v4516_v61, %v4476_v15 }
 0x406   : > { %4310 = vmatpush1.msra.mxu1 %v4158_v28  ;;  %4373 = vmatprep.mubr.f32.mxu1 %v6135_v0 }
 0x407   : > { %4380 = vmatprep.subr.mxu1 %v4161_v16  ;;  %v4837_v41 = vpop.permute.xlu1 %4836  ;;  %v4875_v16 = vrot.slane %v4862_v12, %v6605_v50 }
 0x408   : > { %v4856_v1 = vsel %vm4850_vm0, %v4837_v41, %v4839_v52 }
 0x409   : > { %5632 = vmatmul.mubr.msk.f32.vlgmr.msra.gmra.mrb[8].mxu1 %vm2089_vm11, %v5629_v14  ;;  %v4905_v25 = vmul.f32 %v4871_v17, %v4856_v1 }
 0x40a   : > { %4381 = vmatpush1.msra.mxu1 %v4160_v37  ;;  %4444 = vmatprep.mubr.f32.mxu1 %v6135_v0 }
 0x40b   : > { %4542 = vmatprep.subr.mxu1 %v4530_v40  ;;  %v4835_v58 = vpop.permute.xlu1 %4834 }
 0x40c   : > { %v4857_v26 = vsel %vm4850_vm0, %v4835_v58, %v4837_v41  ;;  %v4895_v41 = vrot.slane %v4862_v12, %v6629_v62 }
 0x40d   : > { %5633 = vmatmul.mubr.msk.f32.vlgmr.msra.gmra.mrb[10].mxu1 %vm2089_vm11, %v5629_v14  ;;  %v4841_v14 = vpop.permute.xlu0 %4840  ;;  %v4904_v29 = vmul.f32 %v4867_v22, %v4857_v26 }
 0x40e   : > { %4543 = vmatpush1.msra.mxu1 %v4529_v46  ;;  %4606 = vmatprep.mubr.f32.mxu1 %v6135_v0  ;;  %v4855_v7 = vsel %vm4850_vm0, %v4839_v52, %v4841_v14  ;;  %v4891_v52 = vrot.slane %v4862_v12, %v6641_v4 }
 0x40f   : > { %4613 = vmatprep.subr.mxu1 %v4532_v54  ;;  %v4843_v20 = vpop.permute.xlu1 %4842  ;;  %v4906_v24 = vmul.f32 %v4875_v16, %v4855_v7 }
 0x410   : > { %v4854_v28 = vsel %vm4850_vm0, %v4841_v14, %v4843_v20 }
 0x411   : > { %5637 = vmatmul.mubr.msk.f32.vlgmr.msra.gmra.mrb[4].mxu1 %vm2089_vm11, %v5636_v56  ;;  %v4845_v23 = vpop.permute.xlu0 %4844  ;;  %v4907_v18 = vmul.f32 %v4879_v27, %v4854_v28 }
 0x412   : > { %4614 = vmatpush1.msra.mxu1 %v4531_v47  ;;  %4677 = vmatprep.mubr.f32.mxu1 %v6135_v0  ;;  %v4853_v42 = vsel %vm4850_vm0, %v4843_v20, %v4845_v23 }
 0x413   : > { %4684 = vmatprep.subr.mxu1 %v4534_v6  ;;  %v4847_v13 = vpop.permute.xlu1 %4846  ;;  %v4908_v48 = vmul.f32 %v4883_v39, %v4853_v42 }
 0x414   : > { %v4852_v37 = vsel %vm4850_vm0, %v4845_v23, %v4847_v13 }
 0x415   : > { %5638 = vmatmul.mubr.msk.f32.vlgmr.msra.gmra.mrb[6].mxu1 %vm2089_vm11, %v5636_v56  ;;  %v4849_v40 = vpop.permute.xlu0 %4848  ;;  %v4909_v45 = vmul.f32 %v4887_v36, %v4852_v37 }
 0x416   : > { %4685 = vmatpush1.msra.mxu1 %v4533_v53  ;;  %4748 = vmatprep.mubr.f32.mxu1 %v6135_v0  ;;  %v4858_v46 = vsel %vm4850_vm0, %v4849_v40, %v4835_v58  ;;  %v4851_v51 = vsel %vm4850_vm0, %v4847_v13, %v4849_v40 }
 0x417   : > { %4755 = vmatprep.subr.mxu1 %v4536_v19  ;;  %v4911_v54 = vmul.f32 %v4895_v41, %v4858_v46  ;;  %v4910_v55 = vmul.f32 %v4891_v52, %v4851_v51 }
 0x419   : > { %5639 = vmatmul.mubr.msk.f32.vlgmr.msra.gmra.mrb[8].mxu1 %vm2089_vm11, %v5636_v56 }
 0x41a   : > { %4756 = vmatpush1.msra.mxu1 %v4535_v21  ;;  %4819 = vmatprep.mubr.f32.mxu1 %v6135_v0 }
 0x41b   : > { %4917 = vmatprep.subr.mxu1 %v4905_v25  ;;  %v5227_v8 = vpop.permute.xlu0 %5226 }
 0x41d   : > { %5640 = vmatmul.mubr.msk.f32.vlgmr.msra.gmra.mrb[10].mxu1 %vm2089_vm11, %v5636_v56 }
 0x41e   : > { %4918 = vmatpush1.msra.mxu1 %v4904_v29  ;;  %4981 = vmatprep.mubr.f32.mxu1 %v6135_v0 }
 0x41f   : > { %4988 = vmatprep.subr.mxu1 %v4907_v18 }
 0x421   : > { %5644 = vmatmul.mubr.msk.f32.vlgmr.msra.gmra.mrb[4].mxu1 %vm2089_vm11, %v5643_v38 }
 0x422   : > { %4989 = vmatpush1.msra.mxu1 %v4906_v24  ;;  %5052 = vmatprep.mubr.f32.mxu1 %v6135_v0 }
 0x423   : > { %5059 = vmatprep.subr.mxu1 %v4909_v45 }
 0x424   : > { %v5213_v56 = vpop.permute.xlu1 %5212 }
 0x425   : > { %5645 = vmatmul.mubr.msk.f32.vlgmr.msra.gmra.mrb[6].mxu1 %vm2089_vm11, %v5643_v38 }
 0x426   : > { %5060 = vmatpush1.msra.mxu1 %v4908_v48  ;;  %5123 = vmatprep.mubr.f32.mxu1 %v6135_v0 }
 0x427   : > { %5130 = vmatprep.subr.mxu1 %v4911_v54 }
 0x429   : > { %5646 = vmatmul.mubr.msk.f32.vlgmr.msra.gmra.mrb[8].mxu1 %vm2089_vm11, %v5643_v38 }
 0x42a   : > { %5131 = vmatpush1.msra.mxu1 %v4910_v55  ;;  %5194 = vmatprep.mubr.f32.mxu1 %v6135_v0 }
 0x42d   : > { %5647 = vmatmul.mubr.msk.f32.vlgmr.msra.gmra.mrb[10].mxu1 %vm2089_vm11, %v5643_v38  ;;  %v5248_v38 = vld [vmem:[%s7158_s7] sm:$0xf] }
 0x4f4   : > { %v4983_v58 = vpop.f32.mrb[4].mxu1 }
 0x4f5   : > { %v5215_v47 = vmul.f32 %v5213_v56, %v4983_v58  ;;  %v4985_v59 = vpop.f32.mrb[5].mxu1 }
 0x4f6   : > { %v5216_v63 = vmul.f32 %v5213_v56, %v4985_v59 }
 0x4f7   : > { %v7079_v3 = vadd.f32 %v5227_v8, %v5215_v47 }
 0x4f8   : > { %v7081_v2 = vadd.f32 %v5227_v8, %v5216_v63  ;;  %v5054_v5 = vpop.f32.mrb[6].mxu1 }
 0x4f9   : > { %v5217_v6 = vmul.f32 %v5213_v56, %v5054_v5  ;;  %v5056_v11 = vpop.f32.mrb[7].mxu1 }
 0x4fa   : > { %v5237_v12 = vadd.f32 %v7081_v2, %v7079_v3  ;;  %v5218_v14 = vmul.f32 %v5213_v56, %v5056_v11 }
 0x4fb   : > { %v7085_v0 = vadd.f32 %v5227_v8, %v5217_v6 }
 0x4fc   : > { %v7087_v53 = vadd.f32 %v5227_v8, %v5218_v14  ;;  %v5125_v61 = vpop.f32.mrb[8].mxu1 }
 0x4fd   : > { %v5238_v19 = vadd.f32 %v5237_v12, %v7085_v0  ;;  %v5219_v15 = vmul.f32 %v5213_v56, %v5125_v61  ;;  %v5127_v17 = vpop.f32.mrb[9].mxu1 }
 0x4fe   : > { %v5220_v20 = vmul.f32 %v5213_v56, %v5127_v17 }
 0x4ff   : > { %v5239_v1 = vadd.f32 %v5238_v19, %v7087_v53  ;;  %v7091_v21 = vadd.f32 %v5227_v8, %v5219_v15 }
 0x500   : > { %v7093_v22 = vadd.f32 %v5227_v8, %v5220_v20  ;;  %v5196_v23 = vpop.f32.mrb[10].mxu1 }
 0x501   : > { %v5240_v25 = vadd.f32 %v5239_v1, %v7091_v21  ;;  %v5221_v26 = vmul.f32 %v5213_v56, %v5196_v23  ;;  %v5198_v27 = vpop.f32.mrb[11].mxu1 }
 0x502   : > { %v5222_v28 = vmul.f32 %v5213_v56, %v5198_v27 }
 0x503   : > { %v5241_v13 = vadd.f32 %v5240_v25, %v7093_v22  ;;  %v7097_v16 = vadd.f32 %v5227_v8, %v5221_v26 }
 0x504   : > { %v7099_v29 = vadd.f32 %v5227_v8, %v5222_v28  ;;  %v5329_v28 = vld [vmem:[%s7159_s8] sm:$0xff] }
 0x505   : > { %v5242_v7 = vadd.f32 %v5241_v13, %v7097_v16 }
 0x507   : > { %v5243_v18 = vadd.f32 %v5242_v7, %v7099_v29 }
 0x509   : > { %5244 = vadd.xlane.f32.xlu1 %v5243_v18 }
 0x596   : > { %v5245_v36 = vpop.xlane.xlu1 %5244 }
 0x597   : > { %v5247_v37 = vmul.f32 0.0009765625, %v5245_v36 }
 0x599   : > { %v5257_v40 = vrot.slane %v5247_v37, %v6319_v10  ;;  %v5252_v24 = vrot.slane %v5247_v37, %v6316_v9  ;;  %v5267_v41 = vrot.slane %v5247_v37, %v6605_v50  ;;  %v5277_v46 = vrot.slane %v5247_v37, %v6602_v49 }
 0x59a   : > { %v5287_v52 = vrot.slane %v5247_v37, %v6623_v60  ;;  %v5297_v51 = vrot.slane %v5247_v37, %v6618_v57  ;;  %v5307_v56 = vrot.slane %v5247_v37, %v6641_v4  ;;  %v5317_v47 = vrot.slane %v5247_v37, %v6629_v62 }
 0x59b   : > { %v5258_v39 = vmul.f32 %v5257_v40, %v5248_v38  ;;  %v5253_v42 = vmul.f32 %v5252_v24, %v5248_v38  ;;  %v5268_v45 = vmul.f32 %v5267_v41, %v5248_v38  ;;  %v5278_v48 = vmul.f32 %v5277_v46, %v5248_v38 }
 0x59c   : > { %v5288_v54 = vmul.f32 %v5287_v52, %v5248_v38  ;;  %v5298_v55 = vmul.f32 %v5297_v51, %v5248_v38  ;;  %v5308_v58 = vmul.f32 %v5307_v56, %v5248_v38  ;;  %v5318_v59 = vmul.f32 %v5317_v47, %v5248_v38 }
 0x59d   : > { %5260 = vrot.lane.b32.xlu0 %v5258_v39, %s6138_s29 }
 0x5a1   : > { %5270 = vrot.lane.b32.xlu0 %v5268_v45, %s6151_s19 }
 0x5a5   : > { %5280 = vrot.lane.b32.xlu0 %v5278_v48, %s6152_s20 }
 0x5a9   : > { %5290 = vrot.lane.b32.xlu0 %v5288_v54, %s6153_s23 }
 0x5ad   : > { %5300 = vrot.lane.b32.xlu0 %v5298_v55, %s6154_s24 }
 0x5b1   : > { %5310 = vrot.lane.b32.xlu0 %v5308_v58, %s6155_s25 }
 0x5b5   : > { %5320 = vrot.lane.b32.xlu0 %v5318_v59, %s6156_s26 }
 0x60f   : > { %v5261_v60 = vpop.permute.xlu0 %5260 }
 0x610   : > { %v5263_v57 = vadd.f32 %v5261_v60, %v5253_v42 }
 0x613   : > { %v5271_v8 = vpop.permute.xlu0 %5270 }
 0x614   : > { %v5273_v6 = vadd.f32 %v5271_v8, %v5263_v57 }
 0x617   : > { %v5281_v63 = vpop.permute.xlu0 %5280 }
 0x618   : > { %v5283_v12 = vadd.f32 %v5281_v63, %v5273_v6 }
 0x61b   : > { %v5291_v5 = vpop.permute.xlu0 %5290 }
 0x61c   : > { %v5293_v14 = vadd.f32 %v5291_v5, %v5283_v12 }
 0x61f   : > { %v5301_v11 = vpop.permute.xlu0 %5300 }
 0x620   : > { %v5303_v61 = vadd.f32 %v5301_v11, %v5293_v14 }
 0x623   : > { %v5311_v4 = vpop.permute.xlu0 %5310 }
 0x624   : > { %v5313_v19 = vadd.f32 %v5311_v4, %v5303_v61 }
 0x627   : > { %v5321_v15 = vpop.permute.xlu0 %5320 }
 0x628   : > { %v5323_v17 = vadd.f32 %v5321_v15, %v5313_v19 }
 0x62a   : > { %v5325_v62 = vmul.f32 1.442695, %v5323_v17  ;;  %vm5324_vm1 = vcmp.gt.f32.partialorder %v5323_v17, 0.0 }
 0x62c   : > { %6054 = vpow2.f32 %v5325_v62 }
 0x636   : > { %v6055_v20 = vpop.eup %6054 }
 0x637   : > { %v5648_v1 = vadd.f32 -1.0, %v6055_v20 }
 0x639   : > { %v5328_v23 = vsel %vm5324_vm1, %v5323_v17, %v5648_v1 }
 0x63a   : > { %v5366_v25 = vrot.slane %v5328_v23, %v6602_v49  ;;  %v5338_v26 = vrot.slane %v5328_v23, %v6319_v10  ;;  %v5352_v27 = vrot.slane %v5328_v23, %v6605_v50  ;;  %v5333_v50 = vrot.slane %v5328_v23, %v6316_v9 }
 0x63c   : > { %5368 = vrot.lane.b32.xlu1 %v5366_v25, %s6157_s28  ;;  %5340 = vrot.lane.b32.xlu0 %v5338_v26, %s6136_s27  ;;  %v5334_v38 = vmul.f32 %v5333_v50, %v5329_v28  ;;  %s5661_s27 = sshll.u32 %s7172_s22, 6 }
 0x63d   : > { %s428_s16 = scalar_lea.vmem %s7163_s12, %s5661_s27 }
 0x640   : > { %5354 = vrot.lane.b32.xlu0 %v5352_v27, %s6158_s30 }
 0x6ae   : > { %v5341_v13 = vpop.permute.xlu0 %5340  ;;  %v5369_v36 = vpop.permute.xlu1 %5368 }
 0x6af   : > { %v5343_v7 = vmul.f32 %v5341_v13, %v5329_v28  ;;  %v5371_v10 = vmul.f32 %v5369_v36, %v5329_v28 }
 0x6b1   : > { %5345 = vrot.lane.b32.xlu0 %v5343_v7, %s6138_s29 }
 0x6b2   : > { %v5355_v18 = vpop.permute.xlu0 %5354 }
 0x6b3   : > { %v5357_v49 = vmul.f32 %v5355_v18, %v5329_v28 }
 0x6b5   : > { %5359 = vrot.lane.b32.xlu0 %v5357_v49, %s6151_s19 }
 0x6b9   : > { %5373 = vrot.lane.b32.xlu0 %v5371_v10, %s6152_s20 }
 0x723   : > { %v5346_v37 = vpop.permute.xlu0 %5345 }
 0x724   : > { %v5348_v24 = vadd.f32 %v5346_v37, %v5334_v38 }
 0x727   : > { %v5360_v40 = vpop.permute.xlu0 %5359 }
 0x728   : > { %v5362_v39 = vadd.f32 %v5360_v40, %v5348_v24 }
 0x72b   : > { %v5374_v41 = vpop.permute.xlu0 %5373 }
 0x72c   : > { %v5376_v42 = vadd.f32 %v5374_v41, %v5362_v39 }
 0x72e   : > { %v5649_v45 = vmul.f32 -1.442695, %v5376_v42 }
 0x730   : > { %6056 = vpow2.f32 %v5649_v45 }
 0x73a   : > { %v6057_v46 = vpop.eup %6056 }
 0x73b   : > { %v5380_v48 = vadd.f32 1.0, %v6057_v46 }
 0x73d   : > { %6058 = vrcp.f32 %v5380_v48 }
 0x747   : > { %v6059_v52 = vpop.eup %6058 }
 0x748   : > { %5385 = vperm.xlu0 %6043, %v6059_v52  }
 0x7c7   : > { %v5386_v54 = vpop.permute.xlu0 %5385 }
 0x7c8   : > { %v5388_v51 = vmul.f32 %v5386_v54, %v7079_v3  ;;  %v5389_v55 = vmul.f32 %v5386_v54, %v7081_v2  ;;  %v5390_v9 = vmul.f32 %v5386_v54, %v7085_v0  ;;  %v5391_v56 = vmul.f32 %v5386_v54, %v7087_v53 }
 0x7c9   : > { %v5392_v58 = vmul.f32 %v5386_v54, %v7091_v21  ;;  %v5393_v47 = vmul.f32 %v5386_v54, %v7093_v22  ;;  %v5394_v59 = vmul.f32 %v5386_v54, %v7097_v16  ;;  %v5395_v60 = vmul.f32 %v5386_v54, %v7099_v29 }
 0x7ca   : > { %v5396_v8 = vadd.f32 %v5388_v51, %v6477_v30  ;;  %v5397_v63 = vadd.f32 %v5389_v55, %v6484_v33  ;;  %v5398_v3 = vadd.f32 %v5390_v9, %v6487_v34  ;;  %v5399_v2 = vadd.f32 %v5391_v56, %v6490_v35 }
 0x7cb   : > { %v5400_v0 = vadd.f32 %v5392_v58, %v6479_v31  ;;  %v5401_v53 = vadd.f32 %v5393_v47, %v6481_v32  ;;  %v5402_v21 = vadd.f32 %v5394_v59, %v6512_v43  ;;  %v5403_v16 = vadd.f32 %v5395_v60, %v6515_v44 }
 0x7cc   : > { %v5650_v5 = vmul.f32 -1.442695, %v5396_v8  ;;  %v5651_v22 = vmul.f32 -1.442695, %v5397_v63  ;;  %v5652_v57 = vmul.f32 -1.442695, %v5398_v3 }
 0x7cd   : > { %v5653_v29 = vmul.f32 -1.442695, %v5399_v2  ;;  %v5654_v30 = vmul.f32 -1.442695, %v5400_v0  ;;  %v5655_v33 = vmul.f32 -1.442695, %v5401_v53 }
 0x7ce   : > { %6060 = vpow2.f32 %v5650_v5  ;;  %v5656_v34 = vmul.f32 -1.442695, %v5402_v21  ;;  %v5657_v35 = vmul.f32 -1.442695, %v5403_v16 }
 0x7cf   : > { %6062 = vpow2.f32 %v5651_v22 }
 0x7d0   : > { %6064 = vpow2.f32 %v5652_v57 }
 0x7d1   : > { %6066 = vpow2.f32 %v5653_v29 }
 0x7d2   : > { %6068 = vpow2.f32 %v5654_v30 }
 0x7d3   : > { %6070 = vpow2.f32 %v5655_v33 }
 0x7d4   : > { %6072 = vpow2.f32 %v5656_v34 }
 0x7d5   : > { %6074 = vpow2.f32 %v5657_v35 }
 0x7d8   : > { %v6061_v31 = vpop.eup %6060 }
 0x7d9   : > { %v6063_v32 = vpop.eup %6062  ;;  %v5428_v43 = vadd.f32 1.0, %v6061_v31 }
 0x7da   : > { %v6065_v6 = vpop.eup %6064  ;;  %v5429_v11 = vadd.f32 1.0, %v6063_v32 }
 0x7db   : > { %v6067_v12 = vpop.eup %6066  ;;  %v5430_v44 = vadd.f32 1.0, %v6065_v6  ;;  %6076 = vrcp.f32 %v5428_v43 }
 0x7dc   : > { %v6069_v14 = vpop.eup %6068  ;;  %v5431_v4 = vadd.f32 1.0, %v6067_v12  ;;  %6078 = vrcp.f32 %v5429_v11 }
 0x7dd   : > { %v6071_v61 = vpop.eup %6070  ;;  %v5432_v19 = vadd.f32 1.0, %v6069_v14  ;;  %6080 = vrcp.f32 %v5430_v44 }
 0x7de   : > { %v6073_v15 = vpop.eup %6072  ;;  %v5433_v17 = vadd.f32 1.0, %v6071_v61  ;;  %6082 = vrcp.f32 %v5431_v4 }
 0x7df   : > { %v6075_v62 = vpop.eup %6074  ;;  %v5434_v20 = vadd.f32 1.0, %v6073_v15  ;;  %6084 = vrcp.f32 %v5432_v19 }
 0x7e0   : > { %v5435_v1 = vadd.f32 1.0, %v6075_v62  ;;  %6086 = vrcp.f32 %v5433_v17 }
 0x7e1   : > { %6088 = vrcp.f32 %v5434_v20 }
 0x7e2   : > { %6090 = vrcp.f32 %v5435_v1 }
 0x7e5   : > { %v6077_v23 = vpop.eup %6076 }
 0x7e6   : > { %v6079_v25 = vpop.eup %6078  ;;  %v5452_v26 = vmul.f32 %v6077_v23, %v5396_v8 }
 0x7e7   : > { %v6081_v27 = vpop.eup %6080  ;;  %v5453_v28 = vmul.f32 %v6079_v25, %v5397_v63 }
 0x7e8   : > { %v6083_v13 = vpop.eup %6082  ;;  %v5454_v7 = vmul.f32 %v6081_v27, %v5398_v3  ;;  %5460 = vst [vmem:[%s428_s16] sm:$0xff] %v5452_v26 }
 0x7e9   : > { %v6085_v18 = vpop.eup %6084  ;;  %v5455_v49 = vmul.f32 %v6083_v13, %v5399_v2  ;;  %5461 = vst [vmem:[%s428_s16 + $0x8] sm:$0xff] %v5453_v28 }
 0x7ea   : > { %v6087_v36 = vpop.eup %6086  ;;  %v5456_v10 = vmul.f32 %v6085_v18, %v5400_v0  ;;  %5462 = vst [vmem:[%s428_s16 + $0x10] sm:$0xff] %v5454_v7 }
 0x7eb   : > { %v6089_v50 = vpop.eup %6088  ;;  %v5457_v37 = vmul.f32 %v6087_v36, %v5401_v53  ;;  %5463 = vst [vmem:[%s428_s16 + $0x18] sm:$0xff] %v5455_v49 }
 0x7ec   : > { %v6091_v38 = vpop.eup %6090  ;;  %v5458_v40 = vmul.f32 %v6089_v50, %v5402_v21  ;;  %5464 = vst [vmem:[%s428_s16 + $0x20] sm:$0xff] %v5456_v10 }
 0x7ed   : > { %v5459_v24 = vmul.f32 %v6091_v38, %v5403_v16  ;;  %5465 = vst [vmem:[%s428_s16 + $0x28] sm:$0xff] %v5457_v37 }
 0x7ee   : > { %5466 = vst [vmem:[%s428_s16 + $0x30] sm:$0xff] %v5458_v40 }
 0x7ef   : > { %5467 = vst [vmem:[%s428_s16 + $0x38] sm:$0xff] %v5459_v24 }
 0x7f0 PF: > { %s23_s21 = sadd.s32 1, %s6130_s21  }
 0x7f1   : > { %p20_p3 = scmp.ge.s32.totalorder %s23_s21, 4  }
 0x7f3   :  { %22 = sbr.rel (!%p20_p3) target bundleno = 1 (0x1), region = 133 }
 0x7fa   :  { %5489 = vsyncpa [#allocation3], 1 }
 0x7fb   :  { %5491 = vsyncpa [#allocation3 + $0x1], 1 }

</bundles_post_ra>
